<compile_context>
chip_gen: v7x
topology: tpu7x:2x2x1
jax: 0.10.0
libtpu: 0.0.40
codegen_flags: <defaults>
</compile_context>

<pallas_src>
import functools

import jax
import jax.numpy as jnp
from jax import lax
from jax.experimental import pallas as pl
from jax.experimental.pallas import tpu as pltpu


# --------------------------- Pallas kernels ---------------------------------

def _linear_kernel(x_ref, w_ref, b_ref, o_ref):
    # (tm, K) @ (K, N) + (1, N) on the MXU, f32 accumulation.
    o_ref[...] = (
        jnp.dot(x_ref[...], w_ref[...], preferred_element_type=jnp.float32)
        + b_ref[...]
    ).astype(o_ref.dtype)


def linear(x, w, b, *, tile_m=512):
    """y = x @ w + b with a simple M-tiled Pallas matmul (K, N kept whole)."""
    M, K = x.shape
    N = w.shape[1]
    tm = min(tile_m, M)
    grid = (pl.cdiv(M, tm),)
    return pl.pallas_call(
        _linear_kernel,
        out_shape=jax.ShapeDtypeStruct((M, N), jnp.float32),
        grid_spec=pltpu.PrefetchScalarGridSpec(
            num_scalar_prefetch=0,
            grid=grid,
            in_specs=[
                pl.BlockSpec((tm, K), lambda i: (i, 0)),
                pl.BlockSpec((K, N), lambda i: (0, 0)),
                pl.BlockSpec((1, N), lambda i: (0, 0)),
            ],
            out_specs=pl.BlockSpec((tm, N), lambda i: (i, 0)),
        ),
        compiler_params=pltpu.CompilerParams(dimension_semantics=("parallel",)),
    )(x, w, b.reshape(1, -1))


def _gru_rec_kernel(lens_ref, gi_ref, whh_ref, bhn_ref, *out_refs,
                    emit_out, unroll):
    # Grid axis 0 = direction d (0: forward, 1: backward).
    # lens_ref: (Bp, 1) int32   valid lengths (already // KS; 0 for pad rows)
    # gi_ref:   (T, Bp, 3H)     precomputed x@Wih + b_i (+ b_hr, b_hz folded)
    # whh_ref:  (H, 3H)         fused hidden weights, gate order [r | z | n]
    # bhn_ref:  (1, H)          b_hn (stays inside the reset-gate product)
    # out_refs: (out, hT) if emit_out else (hT,)
    #   out: (T, Bp, H) this direction's slice of the (T, Bp, ndir*H) output
    #   hT:  (Bp, H)    this direction's slice of (Bp, ndir*H)
    if emit_out:
        out_ref, hT_ref = out_refs
    else:
        (hT_ref,) = out_refs

    T, Bp, H3 = gi_ref.shape
    H = H3 // 3
    d = pl.program_id(0)
    reverse = d == 1

    def step(i, h):
        t = jnp.where(reverse, T - 1 - i, i)
        gi = gi_ref[t]                                          # (Bp, 3H)
        gh = jnp.dot(h, whh_ref[...],                           # (Bp, 3H)
                     preferred_element_type=jnp.float32)
        r = jax.nn.sigmoid(gi[:, :H] + gh[:, :H])
        z = jax.nn.sigmoid(gi[:, H:2 * H] + gh[:, H:2 * H])
        n = jnp.tanh(gi[:, 2 * H:] + r * (gh[:, 2 * H:] + bhn_ref[...]))
        h_new = (1.0 - z) * n + z * h
        valid = t < lens_ref[...]                               # (Bp, 1) bool
        h_next = jnp.where(valid, h_new, h)                     # packed-seq mask
        if emit_out:
            # pad_packed_sequence emits zeros at padded positions.
            out_ref[t] = jnp.where(valid, h_next, 0.0)
        return h_next

    hT_ref[...] = lax.fori_loop(0, T, step,
                                jnp.zeros((Bp, H), jnp.float32),
                                unroll=unroll)


def gru_layer(gi, lens_p, whh_all, bhn_all, *, emit_out):
    """One (bi)directional GRU layer.

    gi:      (T, Bp, ndir*3H)  precomputed input gates, columns [dir0 | dir1]
    whh_all: (ndir, H, 3H)
    bhn_all: (ndir, 1, H)
    Returns (out or None, hT) with out: (T, Bp, ndir*H), hT: (Bp, ndir*H).
    """
    T, Bp, _ = gi.shape
    ndir, H, H3 = whh_all.shape
    unroll = True if T <= 32 else 8

    out_shapes = []
    out_specs = []
    if emit_out:
        out_shapes.append(jax.ShapeDtypeStruct((T, Bp, ndir * H), jnp.float32))
        out_specs.append(pl.BlockSpec((T, Bp, H), lambda d: (0, 0, d)))
    out_shapes.append(jax.ShapeDtypeStruct((Bp, ndir * H), jnp.float32))
    out_specs.append(pl.BlockSpec((Bp, H), lambda d: (0, d)))

    res = pl.pallas_call(
        functools.partial(_gru_rec_kernel, emit_out=emit_out, unroll=unroll),
        out_shape=tuple(out_shapes),
        grid_spec=pltpu.PrefetchScalarGridSpec(
            num_scalar_prefetch=0,
            grid=(ndir,),
            in_specs=[
                pl.BlockSpec((Bp, 1), lambda d: (0, 0)),
                pl.BlockSpec((T, Bp, H3), lambda d: (0, 0, d)),
                pl.BlockSpec((None, H, H3), lambda d: (d, 0, 0)),
                pl.BlockSpec((None, 1, H), lambda d: (d, 0, 0)),
            ],
            out_specs=tuple(out_specs),
        ),
        # Directions are independent -> runs on both TensorCores on v7x.
        compiler_params=pltpu.CompilerParams(dimension_semantics=("parallel",)),
    )(lens_p, gi, whh_all, bhn_all)

    if emit_out:
        out, hT = res
        return out, hT
    (hT,) = res
    return None, hT


# --------------------------- parameters -------------------------------------

def init_params(key, *, in_channels, rnn_dim, ks, num_layers, bidirectional,
                n_targ):
    ndir = 2 if bidirectional else 1
    H = rnn_dim
    params = {}
    k_conv, k_gru, k_dense = jax.random.split(key, 3)

    # Conv1d(in_channels, H, kernel_size=KS, stride=KS) as a patch matmul.
    # Equivalent to PyTorch weight (H, C, KS) flattened with (k, c) ordering.
    s = 1.0 / float(in_channels * ks) ** 0.5
    kc1, kc2 = jax.random.split(k_conv)
    params["w_conv"] = jax.random.uniform(kc1, (ks * in_channels, H),
                                          jnp.float32, -s, s)
    params["b_conv"] = jax.random.uniform(kc2, (H,), jnp.float32, -s, s)

    # GRU layers.  Fused storage:
    #   wih : (Din, ndir*3H)  columns ordered [dir0:(r,z,n) | dir1:(r,z,n)]
    #   whh : (ndir, H, 3H)
    #   b_gi: (ndir*3H,)      = b_ih + [b_hr, b_hz, 0]   (r/z hidden biases folded)
    #   bhn : (ndir, 1, H)    = b_hn                     (stays inside r * (...))
    sh = 1.0 / float(H) ** 0.5
    layers = []
    kk = k_gru
    for l in range(num_layers):
        din = H if l == 0 else H * ndir
        kk, k1, k2, k3, k4 = jax.random.split(kk, 5)
        wih = jax.random.uniform(k1, (din, ndir * 3 * H), jnp.float32, -sh, sh)
        whh = jax.random.uniform(k2, (ndir, H, 3 * H), jnp.float32, -sh, sh)
        bih = jax.random.uniform(k3, (ndir, 3 * H), jnp.float32, -sh, sh)
        bhh = jax.random.uniform(k4, (ndir, 3 * H), jnp.float32, -sh, sh)
        b_gi = bih + jnp.concatenate(
            [bhh[:, :2 * H], jnp.zeros((ndir, H), jnp.float32)], axis=1)
        layers.append(dict(
            wih=wih,
            whh=whh,
            b_gi=b_gi.reshape(ndir * 3 * H),
            bhn=bhh[:, 2 * H:].reshape(ndir, 1, H),
        ))
    params["gru"] = layers

    sd = 1.0 / float(H * ndir) ** 0.5
    kd1, kd2 = jax.random.split(k_dense)
    params["w_dense"] = jax.random.uniform(kd1, (H * ndir, n_targ),
                                           jnp.float32, -sd, sd)
    params["b_dense"] = jax.random.uniform(kd2, (n_targ,), jnp.float32, -sd, sd)
    return params


# --------------------------- forward -----------------------------------------

def forward(params, x, lens, *, ks, num_layers, bidirectional):
    # x: (B, T, C_in), lens: (B,) valid lengths in raw time steps.
    B, T, C = x.shape
    Tp = T // ks
    H = params["w_conv"].shape[1]
    ndir = 2 if bidirectional else 1
    Bp = ((B + 7) // 8) * 8                       # pad batch to sublane multiple

    lens_ds = (lens // ks).astype(jnp.int32)
    lens_p = jnp.zeros((Bp, 1), jnp.int32).at[:B, 0].set(lens_ds)

    # Non-overlapping conv patches in seq-first layout (Tp, Bp, ks*C).
    xp = x[:, :Tp * ks, :].reshape(B, Tp, ks * C)
    xp = jnp.transpose(xp, (1, 0, 2))             # (Tp, B, ks*C)
    xp = jnp.pad(xp, ((0, 0), (0, Bp - B), (0, 0)))
    x_flat = xp.reshape(Tp * Bp, ks * C)

    # Fold Conv1d + dropout(eval=identity) into the layer-0 input projection:
    #   gi0 = (patch @ Wconv + bconv) @ Wih0 + b0  ==  patch @ (Wconv Wih0) + b0'
    l0 = params["gru"][0]
    w0 = jnp.dot(params["w_conv"], l0["wih"])                      # (ks*C, ndir*3H)
    b0 = (jnp.dot(params["b_conv"].reshape(1, H), l0["wih"])
          + l0["b_gi"]).reshape(-1)                                # (ndir*3H,)

    gi = linear(x_flat, w0, b0).reshape(Tp, Bp, ndir * 3 * H)
    seq_out, hT = gru_layer(gi, lens_p, l0["whh"], l0["bhn"],
                            emit_out=(num_layers > 1))

    for l in range(1, num_layers):
        # inter-layer GRU dropout: identity in eval mode.
        p = params["gru"][l]
        seq_flat = seq_out.reshape(Tp * Bp, ndir * H)
        gi = linear(seq_flat, p["wih"], p["b_gi"]).reshape(Tp, Bp, ndir * 3 * H)
        seq_out, hT = gru_layer(gi, lens_p, p["whh"], p["bhn"],
                                emit_out=(l < num_layers - 1))

    # hiddens[-mult:] -> permute(1,0,2) -> view(B, -1) == concat [fwd, bwd].
    # dropout before dense: identity in eval mode.
    logits = linear(hT, params["w_dense"], params["b_dense"])      # (Bp, n_targ)
    return logits[:B]


# --------------------------------- main ---------------------------------------

if __name__ == "__main__":
    B, T, C_IN = 2, 16, 16
    KS, RNN_DIM, NUM_LAYERS, N_TARG = 2, 128, 2, 5     # H=128 -> lane-dense tiles
    BIDIRECTIONAL = True

    key = jax.random.PRNGKey(0)
    k_p, k_x = jax.random.split(key)
    params = init_params(k_p, in_channels=C_IN, rnn_dim=RNN_DIM, ks=KS,
                         num_layers=NUM_LAYERS, bidirectional=BIDIRECTIONAL,
                         n_targ=N_TARG)
    x = jax.random.normal(k_x, (B, T, C_IN), jnp.float32)
    lens = jnp.array([16, 12], jnp.int32)              # valid lengths per batch

    fwd = jax.jit(functools.partial(forward, ks=KS, num_layers=NUM_LAYERS,
                                    bidirectional=BIDIRECTIONAL))
    out = fwd(params, x, lens)
    jax.block_until_ready(out)
    assert out.shape == (B, N_TARG) and out.dtype == jnp.float32
    print("KERNEL_OK")
</pallas_src>

<mosaic_0001>
module attributes {stable_mosaic.version = 11 : i64} {
  func.func @_gru_rec_kernel(%arg0: i32, %arg1: memref<8x1xi32, #tpu.memory_space<vmem>>, %arg2: memref<8x8x384xf32, #tpu.memory_space<vmem>>, %arg3: memref<1x128x384xf32, #tpu.memory_space<vmem>>, %arg4: memref<1x1x128xf32, #tpu.memory_space<vmem>>, %arg5: memref<8x8x128xf32, #tpu.memory_space<vmem>>, %arg6: memref<8x128xf32, #tpu.memory_space<vmem>>) attributes {dimension_semantics = [#tpu.dimension_semantics<parallel>], iteration_bounds = array<i64: 2>, scalar_prefetch = 0 : i64, scratch_operands = 0 : i64, tpu.core_type = #tpu.core_type<tc>, window_params = [{pipeline_mode = #tpu.pipeline_mode<synchronous>, transform_indices = @transform_0, window_bounds = array<i64: 8, 1>}, {transform_indices = @transform_1, window_bounds = array<i64: 8, 8, 384>}, {transform_indices = @transform_2, window_bounds = array<i64: 1, 128, 384>}, {transform_indices = @transform_3, window_bounds = array<i64: 1, 1, 128>}, {transform_indices = @transform_4, window_bounds = array<i64: 8, 8, 128>}, {transform_indices = @transform_5, window_bounds = array<i64: 8, 128>}]} {
    %c1_i32 = arith.constant 1 : i32
    %0 = arith.cmpi eq, %arg0, %c1_i32 : i32
    %cst = arith.constant 0.000000e+00 : f32
    %1 = vector.broadcast %cst : f32 to vector<8x128xf32>
    %c0_i32 = arith.constant 0 : i32
    %c7_i32 = arith.constant 7 : i32
    %2 = arith.subi %c7_i32, %c0_i32 : i32
    %3 = arith.select %0, %2, %c0_i32 : i32
    %4 = arith.index_cast %3 : i32 to index
    %c0 = arith.constant 0 : index
    %c0_0 = arith.constant 0 : index
    %5 = vector.load %arg2[%4, %c0, %c0_0] : memref<8x8x384xf32, #tpu.memory_space<vmem>>, vector<1x8x384xf32>
    %6 = vector.shape_cast %5 : vector<1x8x384xf32> to vector<8x384xf32>
    %c0_1 = arith.constant 0 : index
    %c0_2 = arith.constant 0 : index
    %c0_3 = arith.constant 0 : index
    %7 = vector.load %arg3[%c0_1, %c0_2, %c0_3] : memref<1x128x384xf32, #tpu.memory_space<vmem>>, vector<1x128x384xf32>
    %8 = vector.shape_cast %7 : vector<1x128x384xf32> to vector<128x384xf32>
    %cst_4 = arith.constant dense<0.000000e+00> : vector<8x384xf32>
    %9 = tpu.matmul %1, %8, %cst_4 {dimension_numbers = #tpu.dot_dimension_numbers<[1], [0], [0], [1], [0, 0, 1, 1], [], []>} : vector<8x128xf32>, vector<128x384xf32>, vector<8x384xf32> -> vector<8x384xf32>
    %10 = vector.extract_strided_slice %6 {offsets = [0, 0], sizes = [8, 128], strides = [1, 1]} : vector<8x384xf32> to vector<8x128xf32>
    %11 = vector.extract_strided_slice %9 {offsets = [0, 0], sizes = [8, 128], strides = [1, 1]} : vector<8x384xf32> to vector<8x128xf32>
    %12 = arith.addf %10, %11 : vector<8x128xf32>
    %13 = arith.negf %12 : vector<8x128xf32>
    %14 = math.exp %13 : vector<8x128xf32>
    %cst_5 = arith.constant 1.000000e+00 : f32
    %15 = vector.broadcast %cst_5 : f32 to vector<8x128xf32>
    %16 = arith.addf %15, %14 : vector<8x128xf32>
    %17 = arith.divf %15, %16 : vector<8x128xf32>
    %18 = vector.extract_strided_slice %6 {offsets = [0, 128], sizes = [8, 128], strides = [1, 1]} : vector<8x384xf32> to vector<8x128xf32>
    %19 = vector.extract_strided_slice %9 {offsets = [0, 128], sizes = [8, 128], strides = [1, 1]} : vector<8x384xf32> to vector<8x128xf32>
    %20 = arith.addf %18, %19 : vector<8x128xf32>
    %21 = arith.negf %20 : vector<8x128xf32>
    %22 = math.exp %21 : vector<8x128xf32>
    %cst_6 = arith.constant 1.000000e+00 : f32
    %23 = vector.broadcast %cst_6 : f32 to vector<8x128xf32>
    %24 = arith.addf %23, %22 : vector<8x128xf32>
    %25 = arith.divf %23, %24 : vector<8x128xf32>
    %26 = vector.extract_strided_slice %6 {offsets = [0, 256], sizes = [8, 128], strides = [1, 1]} : vector<8x384xf32> to vector<8x128xf32>
    %27 = vector.extract_strided_slice %9 {offsets = [0, 256], sizes = [8, 128], strides = [1, 1]} : vector<8x384xf32> to vector<8x128xf32>
    %c0_7 = arith.constant 0 : index
    %c0_8 = arith.constant 0 : index
    %c0_9 = arith.constant 0 : index
    %28 = vector.load %arg4[%c0_7, %c0_8, %c0_9] : memref<1x1x128xf32, #tpu.memory_space<vmem>>, vector<1x1x128xf32>
    %29 = vector.shape_cast %28 : vector<1x1x128xf32> to vector<1x128xf32>
    %30 = vector.broadcast %29 : vector<1x128xf32> to vector<8x128xf32>
    %31 = arith.addf %27, %30 : vector<8x128xf32>
    %32 = arith.mulf %17, %31 : vector<8x128xf32>
    %33 = arith.addf %26, %32 : vector<8x128xf32>
    %34 = math.tanh %33 : vector<8x128xf32>
    %cst_10 = arith.constant 1.000000e+00 : f32
    %35 = vector.broadcast %cst_10 : f32 to vector<8x128xf32>
    %36 = arith.subf %35, %25 : vector<8x128xf32>
    %37 = arith.mulf %36, %34 : vector<8x128xf32>
    %38 = arith.mulf %25, %1 : vector<8x128xf32>
    %39 = arith.addf %37, %38 : vector<8x128xf32>
    %c0_11 = arith.constant 0 : index
    %c0_12 = arith.constant 0 : index
    %40 = vector.load %arg1[%c0_11, %c0_12] : memref<8x1xi32, #tpu.memory_space<vmem>>, vector<8x1xi32>
    %41 = vector.broadcast %3 : i32 to vector<8x1xi32>
    %42 = arith.cmpi slt, %41, %40 : vector<8x1xi32>
    %43 = vector.shape_cast %42 : vector<8x1xi1> to vector<8x1xi1>
    %44 = vector.broadcast %43 : vector<8x1xi1> to vector<8x128xi1>
    %45 = arith.select %44, %39, %1 : vector<8x128xi1>, vector<8x128xf32>
    %cst_13 = arith.constant 0.000000e+00 : f32
    %46 = vector.shape_cast %42 : vector<8x1xi1> to vector<8x1xi1>
    %47 = vector.broadcast %46 : vector<8x1xi1> to vector<8x128xi1>
    %48 = vector.broadcast %cst_13 : f32 to vector<8x128xf32>
    %49 = arith.select %47, %45, %48 : vector<8x128xi1>, vector<8x128xf32>
    %50 = arith.index_cast %3 : i32 to index
    %c0_14 = arith.constant 0 : index
    %c0_15 = arith.constant 0 : index
    %51 = vector.load %arg5[%50, %c0_14, %c0_15] : memref<8x8x128xf32, #tpu.memory_space<vmem>>, vector<1x8x128xf32>
    %52 = vector.shape_cast %51 : vector<1x8x128xf32> to vector<8x128xf32>
    %53 = vector.shape_cast %49 : vector<8x128xf32> to vector<1x8x128xf32>
    tpu.vector_store %arg5[%50, %c0_14, %c0_15], %53 {strides = array<i32>} : memref<8x8x128xf32, #tpu.memory_space<vmem>>, vector<1x8x128xf32>,
    %c1_i32_16 = arith.constant 1 : i32
    %c7_i32_17 = arith.constant 7 : i32
    %54 = arith.subi %c7_i32_17, %c1_i32_16 : i32
    %55 = arith.select %0, %54, %c1_i32_16 : i32
    %56 = arith.index_cast %55 : i32 to index
    %c0_18 = arith.constant 0 : index
    %c0_19 = arith.constant 0 : index
    %57 = vector.load %arg2[%56, %c0_18, %c0_19] : memref<8x8x384xf32, #tpu.memory_space<vmem>>, vector<1x8x384xf32>
    %58 = vector.shape_cast %57 : vector<1x8x384xf32> to vector<8x384xf32>
    %c0_20 = arith.constant 0 : index
    %c0_21 = arith.constant 0 : index
    %c0_22 = arith.constant 0 : index
    %59 = vector.load %arg3[%c0_20, %c0_21, %c0_22] : memref<1x128x384xf32, #tpu.memory_space<vmem>>, vector<1x128x384xf32>
    %60 = vector.shape_cast %59 : vector<1x128x384xf32> to vector<128x384xf32>
    %cst_23 = arith.constant dense<0.000000e+00> : vector<8x384xf32>
    %61 = tpu.matmul %45, %60, %cst_23 {dimension_numbers = #tpu.dot_dimension_numbers<[1], [0], [0], [1], [0, 0, 1, 1], [], []>} : vector<8x128xf32>, vector<128x384xf32>, vector<8x384xf32> -> vector<8x384xf32>
    %62 = vector.extract_strided_slice %58 {offsets = [0, 0], sizes = [8, 128], strides = [1, 1]} : vector<8x384xf32> to vector<8x128xf32>
    %63 = vector.extract_strided_slice %61 {offsets = [0, 0], sizes = [8, 128], strides = [1, 1]} : vector<8x384xf32> to vector<8x128xf32>
    %64 = arith.addf %62, %63 : vector<8x128xf32>
    %65 = arith.negf %64 : vector<8x128xf32>
    %66 = math.exp %65 : vector<8x128xf32>
    %cst_24 = arith.constant 1.000000e+00 : f32
    %67 = vector.broadcast %cst_24 : f32 to vector<8x128xf32>
    %68 = arith.addf %67, %66 : vector<8x128xf32>
    %69 = arith.divf %67, %68 : vector<8x128xf32>
    %70 = vector.extract_strided_slice %58 {offsets = [0, 128], sizes = [8, 128], strides = [1, 1]} : vector<8x384xf32> to vector<8x128xf32>
    %71 = vector.extract_strided_slice %61 {offsets = [0, 128], sizes = [8, 128], strides = [1, 1]} : vector<8x384xf32> to vector<8x128xf32>
    %72 = arith.addf %70, %71 : vector<8x128xf32>
    %73 = arith.negf %72 : vector<8x128xf32>
    %74 = math.exp %73 : vector<8x128xf32>
    %cst_25 = arith.constant 1.000000e+00 : f32
    %75 = vector.broadcast %cst_25 : f32 to vector<8x128xf32>
    %76 = arith.addf %75, %74 : vector<8x128xf32>
    %77 = arith.divf %75, %76 : vector<8x128xf32>
    %78 = vector.extract_strided_slice %58 {offsets = [0, 256], sizes = [8, 128], strides = [1, 1]} : vector<8x384xf32> to vector<8x128xf32>
    %79 = vector.extract_strided_slice %61 {offsets = [0, 256], sizes = [8, 128], strides = [1, 1]} : vector<8x384xf32> to vector<8x128xf32>
    %c0_26 = arith.constant 0 : index
    %c0_27 = arith.constant 0 : index
    %c0_28 = arith.constant 0 : index
    %80 = vector.load %arg4[%c0_26, %c0_27, %c0_28] : memref<1x1x128xf32, #tpu.memory_space<vmem>>, vector<1x1x128xf32>
    %81 = vector.shape_cast %80 : vector<1x1x128xf32> to vector<1x128xf32>
    %82 = vector.broadcast %81 : vector<1x128xf32> to vector<8x128xf32>
    %83 = arith.addf %79, %82 : vector<8x128xf32>
    %84 = arith.mulf %69, %83 : vector<8x128xf32>
    %85 = arith.addf %78, %84 : vector<8x128xf32>
    %86 = math.tanh %85 : vector<8x128xf32>
    %cst_29 = arith.constant 1.000000e+00 : f32
    %87 = vector.broadcast %cst_29 : f32 to vector<8x128xf32>
    %88 = arith.subf %87, %77 : vector<8x128xf32>
    %89 = arith.mulf %88, %86 : vector<8x128xf32>
    %90 = arith.mulf %77, %45 : vector<8x128xf32>
    %91 = arith.addf %89, %90 : vector<8x128xf32>
    %c0_30 = arith.constant 0 : index
    %c0_31 = arith.constant 0 : index
    %92 = vector.load %arg1[%c0_30, %c0_31] : memref<8x1xi32, #tpu.memory_space<vmem>>, vector<8x1xi32>
    %93 = vector.broadcast %55 : i32 to vector<8x1xi32>
    %94 = arith.cmpi slt, %93, %92 : vector<8x1xi32>
    %95 = vector.shape_cast %94 : vector<8x1xi1> to vector<8x1xi1>
    %96 = vector.broadcast %95 : vector<8x1xi1> to vector<8x128xi1>
    %97 = arith.select %96, %91, %45 : vector<8x128xi1>, vector<8x128xf32>
    %cst_32 = arith.constant 0.000000e+00 : f32
    %98 = vector.shape_cast %94 : vector<8x1xi1> to vector<8x1xi1>
    %99 = vector.broadcast %98 : vector<8x1xi1> to vector<8x128xi1>
    %100 = vector.broadcast %cst_32 : f32 to vector<8x128xf32>
    %101 = arith.select %99, %97, %100 : vector<8x128xi1>, vector<8x128xf32>
    %102 = arith.index_cast %55 : i32 to index
    %c0_33 = arith.constant 0 : index
    %c0_34 = arith.constant 0 : index
    %103 = vector.load %arg5[%102, %c0_33, %c0_34] : memref<8x8x128xf32, #tpu.memory_space<vmem>>, vector<1x8x128xf32>
    %104 = vector.shape_cast %103 : vector<1x8x128xf32> to vector<8x128xf32>
    %105 = vector.shape_cast %101 : vector<8x128xf32> to vector<1x8x128xf32>
    tpu.vector_store %arg5[%102, %c0_33, %c0_34], %105 {strides = array<i32>} : memref<8x8x128xf32, #tpu.memory_space<vmem>>, vector<1x8x128xf32>,
    %c2_i32 = arith.constant 2 : i32
    %c7_i32_35 = arith.constant 7 : i32
    %106 = arith.subi %c7_i32_35, %c2_i32 : i32
    %107 = arith.select %0, %106, %c2_i32 : i32
    %108 = arith.index_cast %107 : i32 to index
    %c0_36 = arith.constant 0 : index
    %c0_37 = arith.constant 0 : index
    %109 = vector.load %arg2[%108, %c0_36, %c0_37] : memref<8x8x384xf32, #tpu.memory_space<vmem>>, vector<1x8x384xf32>
    %110 = vector.shape_cast %109 : vector<1x8x384xf32> to vector<8x384xf32>
    %c0_38 = arith.constant 0 : index
    %c0_39 = arith.constant 0 : index
    %c0_40 = arith.constant 0 : index
    %111 = vector.load %arg3[%c0_38, %c0_39, %c0_40] : memref<1x128x384xf32, #tpu.memory_space<vmem>>, vector<1x128x384xf32>
    %112 = vector.shape_cast %111 : vector<1x128x384xf32> to vector<128x384xf32>
    %cst_41 = arith.constant dense<0.000000e+00> : vector<8x384xf32>
    %113 = tpu.matmul %97, %112, %cst_41 {dimension_numbers = #tpu.dot_dimension_numbers<[1], [0], [0], [1], [0, 0, 1, 1], [], []>} : vector<8x128xf32>, vector<128x384xf32>, vector<8x384xf32> -> vector<8x384xf32>
    %114 = vector.extract_strided_slice %110 {offsets = [0, 0], sizes = [8, 128], strides = [1, 1]} : vector<8x384xf32> to vector<8x128xf32>
    %115 = vector.extract_strided_slice %113 {offsets = [0, 0], sizes = [8, 128], strides = [1, 1]} : vector<8x384xf32> to vector<8x128xf32>
    %116 = arith.addf %114, %115 : vector<8x128xf32>
    %117 = arith.negf %116 : vector<8x128xf32>
    %118 = math.exp %117 : vector<8x128xf32>
    %cst_42 = arith.constant 1.000000e+00 : f32
    %119 = vector.broadcast %cst_42 : f32 to vector<8x128xf32>
    %120 = arith.addf %119, %118 : vector<8x128xf32>
    %121 = arith.divf %119, %120 : vector<8x128xf32>
    %122 = vector.extract_strided_slice %110 {offsets = [0, 128], sizes = [8, 128], strides = [1, 1]} : vector<8x384xf32> to vector<8x128xf32>
    %123 = vector.extract_strided_slice %113 {offsets = [0, 128], sizes = [8, 128], strides = [1, 1]} : vector<8x384xf32> to vector<8x128xf32>
    %124 = arith.addf %122, %123 : vector<8x128xf32>
    %125 = arith.negf %124 : vector<8x128xf32>
    %126 = math.exp %125 : vector<8x128xf32>
    %cst_43 = arith.constant 1.000000e+00 : f32
    %127 = vector.broadcast %cst_43 : f32 to vector<8x128xf32>
    %128 = arith.addf %127, %126 : vector<8x128xf32>
    %129 = arith.divf %127, %128 : vector<8x128xf32>
    %130 = vector.extract_strided_slice %110 {offsets = [0, 256], sizes = [8, 128], strides = [1, 1]} : vector<8x384xf32> to vector<8x128xf32>
    %131 = vector.extract_strided_slice %113 {offsets = [0, 256], sizes = [8, 128], strides = [1, 1]} : vector<8x384xf32> to vector<8x128xf32>
    %c0_44 = arith.constant 0 : index
    %c0_45 = arith.constant 0 : index
    %c0_46 = arith.constant 0 : index
    %132 = vector.load %arg4[%c0_44, %c0_45, %c0_46] : memref<1x1x128xf32, #tpu.memory_space<vmem>>, vector<1x1x128xf32>
    %133 = vector.shape_cast %132 : vector<1x1x128xf32> to vector<1x128xf32>
    %134 = vector.broadcast %133 : vector<1x128xf32> to vector<8x128xf32>
    %135 = arith.addf %131, %134 : vector<8x128xf32>
    %136 = arith.mulf %121, %135 : vector<8x128xf32>
    %137 = arith.addf %130, %136 : vector<8x128xf32>
    %138 = math.tanh %137 : vector<8x128xf32>
    %cst_47 = arith.constant 1.000000e+00 : f32
    %139 = vector.broadcast %cst_47 : f32 to vector<8x128xf32>
    %140 = arith.subf %139, %129 : vector<8x128xf32>
    %141 = arith.mulf %140, %138 : vector<8x128xf32>
    %142 = arith.mulf %129, %97 : vector<8x128xf32>
    %143 = arith.addf %141, %142 : vector<8x128xf32>
    %c0_48 = arith.constant 0 : index
    %c0_49 = arith.constant 0 : index
    %144 = vector.load %arg1[%c0_48, %c0_49] : memref<8x1xi32, #tpu.memory_space<vmem>>, vector<8x1xi32>
    %145 = vector.broadcast %107 : i32 to vector<8x1xi32>
    %146 = arith.cmpi slt, %145, %144 : vector<8x1xi32>
    %147 = vector.shape_cast %146 : vector<8x1xi1> to vector<8x1xi1>
    %148 = vector.broadcast %147 : vector<8x1xi1> to vector<8x128xi1>
    %149 = arith.select %148, %143, %97 : vector<8x128xi1>, vector<8x128xf32>
    %cst_50 = arith.constant 0.000000e+00 : f32
    %150 = vector.shape_cast %146 : vector<8x1xi1> to vector<8x1xi1>
    %151 = vector.broadcast %150 : vector<8x1xi1> to vector<8x128xi1>
    %152 = vector.broadcast %cst_50 : f32 to vector<8x128xf32>
    %153 = arith.select %151, %149, %152 : vector<8x128xi1>, vector<8x128xf32>
    %154 = arith.index_cast %107 : i32 to index
    %c0_51 = arith.constant 0 : index
    %c0_52 = arith.constant 0 : index
    %155 = vector.load %arg5[%154, %c0_51, %c0_52] : memref<8x8x128xf32, #tpu.memory_space<vmem>>, vector<1x8x128xf32>
    %156 = vector.shape_cast %155 : vector<1x8x128xf32> to vector<8x128xf32>
    %157 = vector.shape_cast %153 : vector<8x128xf32> to vector<1x8x128xf32>
    tpu.vector_store %arg5[%154, %c0_51, %c0_52], %157 {strides = array<i32>} : memref<8x8x128xf32, #tpu.memory_space<vmem>>, vector<1x8x128xf32>,
    %c3_i32 = arith.constant 3 : i32
    %c7_i32_53 = arith.constant 7 : i32
    %158 = arith.subi %c7_i32_53, %c3_i32 : i32
    %159 = arith.select %0, %158, %c3_i32 : i32
    %160 = arith.index_cast %159 : i32 to index
    %c0_54 = arith.constant 0 : index
    %c0_55 = arith.constant 0 : index
    %161 = vector.load %arg2[%160, %c0_54, %c0_55] : memref<8x8x384xf32, #tpu.memory_space<vmem>>, vector<1x8x384xf32>
    %162 = vector.shape_cast %161 : vector<1x8x384xf32> to vector<8x384xf32>
    %c0_56 = arith.constant 0 : index
    %c0_57 = arith.constant 0 : index
    %c0_58 = arith.constant 0 : index
    %163 = vector.load %arg3[%c0_56, %c0_57, %c0_58] : memref<1x128x384xf32, #tpu.memory_space<vmem>>, vector<1x128x384xf32>
    %164 = vector.shape_cast %163 : vector<1x128x384xf32> to vector<128x384xf32>
    %cst_59 = arith.constant dense<0.000000e+00> : vector<8x384xf32>
    %165 = tpu.matmul %149, %164, %cst_59 {dimension_numbers = #tpu.dot_dimension_numbers<[1], [0], [0], [1], [0, 0, 1, 1], [], []>} : vector<8x128xf32>, vector<128x384xf32>, vector<8x384xf32> -> vector<8x384xf32>
    %166 = vector.extract_strided_slice %162 {offsets = [0, 0], sizes = [8, 128], strides = [1, 1]} : vector<8x384xf32> to vector<8x128xf32>
    %167 = vector.extract_strided_slice %165 {offsets = [0, 0], sizes = [8, 128], strides = [1, 1]} : vector<8x384xf32> to vector<8x128xf32>
    %168 = arith.addf %166, %167 : vector<8x128xf32>
    %169 = arith.negf %168 : vector<8x128xf32>
    %170 = math.exp %169 : vector<8x128xf32>
    %cst_60 = arith.constant 1.000000e+00 : f32
    %171 = vector.broadcast %cst_60 : f32 to vector<8x128xf32>
    %172 = arith.addf %171, %170 : vector<8x128xf32>
    %173 = arith.divf %171, %172 : vector<8x128xf32>
    %174 = vector.extract_strided_slice %162 {offsets = [0, 128], sizes = [8, 128], strides = [1, 1]} : vector<8x384xf32> to vector<8x128xf32>
    %175 = vector.extract_strided_slice %165 {offsets = [0, 128], sizes = [8, 128], strides = [1, 1]} : vector<8x384xf32> to vector<8x128xf32>
    %176 = arith.addf %174, %175 : vector<8x128xf32>
    %177 = arith.negf %176 : vector<8x128xf32>
    %178 = math.exp %177 : vector<8x128xf32>
    %cst_61 = arith.constant 1.000000e+00 : f32
    %179 = vector.broadcast %cst_61 : f32 to vector<8x128xf32>
    %180 = arith.addf %179, %178 : vector<8x128xf32>
    %181 = arith.divf %179, %180 : vector<8x128xf32>
    %182 = vector.extract_strided_slice %162 {offsets = [0, 256], sizes = [8, 128], strides = [1, 1]} : vector<8x384xf32> to vector<8x128xf32>
    %183 = vector.extract_strided_slice %165 {offsets = [0, 256], sizes = [8, 128], strides = [1, 1]} : vector<8x384xf32> to vector<8x128xf32>
    %c0_62 = arith.constant 0 : index
    %c0_63 = arith.constant 0 : index
    %c0_64 = arith.constant 0 : index
    %184 = vector.load %arg4[%c0_62, %c0_63, %c0_64] : memref<1x1x128xf32, #tpu.memory_space<vmem>>, vector<1x1x128xf32>
    %185 = vector.shape_cast %184 : vector<1x1x128xf32> to vector<1x128xf32>
    %186 = vector.broadcast %185 : vector<1x128xf32> to vector<8x128xf32>
    %187 = arith.addf %183, %186 : vector<8x128xf32>
    %188 = arith.mulf %173, %187 : vector<8x128xf32>
    %189 = arith.addf %182, %188 : vector<8x128xf32>
    %190 = math.tanh %189 : vector<8x128xf32>
    %cst_65 = arith.constant 1.000000e+00 : f32
    %191 = vector.broadcast %cst_65 : f32 to vector<8x128xf32>
    %192 = arith.subf %191, %181 : vector<8x128xf32>
    %193 = arith.mulf %192, %190 : vector<8x128xf32>
    %194 = arith.mulf %181, %149 : vector<8x128xf32>
    %195 = arith.addf %193, %194 : vector<8x128xf32>
    %c0_66 = arith.constant 0 : index
    %c0_67 = arith.constant 0 : index
    %196 = vector.load %arg1[%c0_66, %c0_67] : memref<8x1xi32, #tpu.memory_space<vmem>>, vector<8x1xi32>
    %197 = vector.broadcast %159 : i32 to vector<8x1xi32>
    %198 = arith.cmpi slt, %197, %196 : vector<8x1xi32>
    %199 = vector.shape_cast %198 : vector<8x1xi1> to vector<8x1xi1>
    %200 = vector.broadcast %199 : vector<8x1xi1> to vector<8x128xi1>
    %201 = arith.select %200, %195, %149 : vector<8x128xi1>, vector<8x128xf32>
    %cst_68 = arith.constant 0.000000e+00 : f32
    %202 = vector.shape_cast %198 : vector<8x1xi1> to vector<8x1xi1>
    %203 = vector.broadcast %202 : vector<8x1xi1> to vector<8x128xi1>
    %204 = vector.broadcast %cst_68 : f32 to vector<8x128xf32>
    %205 = arith.select %203, %201, %204 : vector<8x128xi1>, vector<8x128xf32>
    %206 = arith.index_cast %159 : i32 to index
    %c0_69 = arith.constant 0 : index
    %c0_70 = arith.constant 0 : index
    %207 = vector.load %arg5[%206, %c0_69, %c0_70] : memref<8x8x128xf32, #tpu.memory_space<vmem>>, vector<1x8x128xf32>
    %208 = vector.shape_cast %207 : vector<1x8x128xf32> to vector<8x128xf32>
    %209 = vector.shape_cast %205 : vector<8x128xf32> to vector<1x8x128xf32>
    tpu.vector_store %arg5[%206, %c0_69, %c0_70], %209 {strides = array<i32>} : memref<8x8x128xf32, #tpu.memory_space<vmem>>, vector<1x8x128xf32>,
    %c4_i32 = arith.constant 4 : i32
    %c7_i32_71 = arith.constant 7 : i32
    %210 = arith.subi %c7_i32_71, %c4_i32 : i32
    %211 = arith.select %0, %210, %c4_i32 : i32
    %212 = arith.index_cast %211 : i32 to index
    %c0_72 = arith.constant 0 : index
    %c0_73 = arith.constant 0 : index
    %213 = vector.load %arg2[%212, %c0_72, %c0_73] : memref<8x8x384xf32, #tpu.memory_space<vmem>>, vector<1x8x384xf32>
    %214 = vector.shape_cast %213 : vector<1x8x384xf32> to vector<8x384xf32>
    %c0_74 = arith.constant 0 : index
    %c0_75 = arith.constant 0 : index
    %c0_76 = arith.constant 0 : index
    %215 = vector.load %arg3[%c0_74, %c0_75, %c0_76] : memref<1x128x384xf32, #tpu.memory_space<vmem>>, vector<1x128x384xf32>
    %216 = vector.shape_cast %215 : vector<1x128x384xf32> to vector<128x384xf32>
    %cst_77 = arith.constant dense<0.000000e+00> : vector<8x384xf32>
    %217 = tpu.matmul %201, %216, %cst_77 {dimension_numbers = #tpu.dot_dimension_numbers<[1], [0], [0], [1], [0, 0, 1, 1], [], []>} : vector<8x128xf32>, vector<128x384xf32>, vector<8x384xf32> -> vector<8x384xf32>
    %218 = vector.extract_strided_slice %214 {offsets = [0, 0], sizes = [8, 128], strides = [1, 1]} : vector<8x384xf32> to vector<8x128xf32>
    %219 = vector.extract_strided_slice %217 {offsets = [0, 0], sizes = [8, 128], strides = [1, 1]} : vector<8x384xf32> to vector<8x128xf32>
    %220 = arith.addf %218, %219 : vector<8x128xf32>
    %221 = arith.negf %220 : vector<8x128xf32>
    %222 = math.exp %221 : vector<8x128xf32>
    %cst_78 = arith.constant 1.000000e+00 : f32
    %223 = vector.broadcast %cst_78 : f32 to vector<8x128xf32>
    %224 = arith.addf %223, %222 : vector<8x128xf32>
    %225 = arith.divf %223, %224 : vector<8x128xf32>
    %226 = vector.extract_strided_slice %214 {offsets = [0, 128], sizes = [8, 128], strides = [1, 1]} : vector<8x384xf32> to vector<8x128xf32>
    %227 = vector.extract_strided_slice %217 {offsets = [0, 128], sizes = [8, 128], strides = [1, 1]} : vector<8x384xf32> to vector<8x128xf32>
    %228 = arith.addf %226, %227 : vector<8x128xf32>
    %229 = arith.negf %228 : vector<8x128xf32>
    %230 = math.exp %229 : vector<8x128xf32>
    %cst_79 = arith.constant 1.000000e+00 : f32
    %231 = vector.broadcast %cst_79 : f32 to vector<8x128xf32>
    %232 = arith.addf %231, %230 : vector<8x128xf32>
    %233 = arith.divf %231, %232 : vector<8x128xf32>
    %234 = vector.extract_strided_slice %214 {offsets = [0, 256], sizes = [8, 128], strides = [1, 1]} : vector<8x384xf32> to vector<8x128xf32>
    %235 = vector.extract_strided_slice %217 {offsets = [0, 256], sizes = [8, 128], strides = [1, 1]} : vector<8x384xf32> to vector<8x128xf32>
    %c0_80 = arith.constant 0 : index
    %c0_81 = arith.constant 0 : index
    %c0_82 = arith.constant 0 : index
    %236 = vector.load %arg4[%c0_80, %c0_81, %c0_82] : memref<1x1x128xf32, #tpu.memory_space<vmem>>, vector<1x1x128xf32>
    %237 = vector.shape_cast %236 : vector<1x1x128xf32> to vector<1x128xf32>
    %238 = vector.broadcast %237 : vector<1x128xf32> to vector<8x128xf32>
    %239 = arith.addf %235, %238 : vector<8x128xf32>
    %240 = arith.mulf %225, %239 : vector<8x128xf32>
    %241 = arith.addf %234, %240 : vector<8x128xf32>
    %242 = math.tanh %241 : vector<8x128xf32>
    %cst_83 = arith.constant 1.000000e+00 : f32
    %243 = vector.broadcast %cst_83 : f32 to vector<8x128xf32>
    %244 = arith.subf %243, %233 : vector<8x128xf32>
    %245 = arith.mulf %244, %242 : vector<8x128xf32>
    %246 = arith.mulf %233, %201 : vector<8x128xf32>
    %247 = arith.addf %245, %246 : vector<8x128xf32>
    %c0_84 = arith.constant 0 : index
    %c0_85 = arith.constant 0 : index
    %248 = vector.load %arg1[%c0_84, %c0_85] : memref<8x1xi32, #tpu.memory_space<vmem>>, vector<8x1xi32>
    %249 = vector.broadcast %211 : i32 to vector<8x1xi32>
    %250 = arith.cmpi slt, %249, %248 : vector<8x1xi32>
    %251 = vector.shape_cast %250 : vector<8x1xi1> to vector<8x1xi1>
    %252 = vector.broadcast %251 : vector<8x1xi1> to vector<8x128xi1>
    %253 = arith.select %252, %247, %201 : vector<8x128xi1>, vector<8x128xf32>
    %cst_86 = arith.constant 0.000000e+00 : f32
    %254 = vector.shape_cast %250 : vector<8x1xi1> to vector<8x1xi1>
    %255 = vector.broadcast %254 : vector<8x1xi1> to vector<8x128xi1>
    %256 = vector.broadcast %cst_86 : f32 to vector<8x128xf32>
    %257 = arith.select %255, %253, %256 : vector<8x128xi1>, vector<8x128xf32>
    %258 = arith.index_cast %211 : i32 to index
    %c0_87 = arith.constant 0 : index
    %c0_88 = arith.constant 0 : index
    %259 = vector.load %arg5[%258, %c0_87, %c0_88] : memref<8x8x128xf32, #tpu.memory_space<vmem>>, vector<1x8x128xf32>
    %260 = vector.shape_cast %259 : vector<1x8x128xf32> to vector<8x128xf32>
    %261 = vector.shape_cast %257 : vector<8x128xf32> to vector<1x8x128xf32>
    tpu.vector_store %arg5[%258, %c0_87, %c0_88], %261 {strides = array<i32>} : memref<8x8x128xf32, #tpu.memory_space<vmem>>, vector<1x8x128xf32>,
    %c5_i32 = arith.constant 5 : i32
    %c7_i32_89 = arith.constant 7 : i32
    %262 = arith.subi %c7_i32_89, %c5_i32 : i32
    %263 = arith.select %0, %262, %c5_i32 : i32
    %264 = arith.index_cast %263 : i32 to index
    %c0_90 = arith.constant 0 : index
    %c0_91 = arith.constant 0 : index
    %265 = vector.load %arg2[%264, %c0_90, %c0_91] : memref<8x8x384xf32, #tpu.memory_space<vmem>>, vector<1x8x384xf32>
    %266 = vector.shape_cast %265 : vector<1x8x384xf32> to vector<8x384xf32>
    %c0_92 = arith.constant 0 : index
    %c0_93 = arith.constant 0 : index
    %c0_94 = arith.constant 0 : index
    %267 = vector.load %arg3[%c0_92, %c0_93, %c0_94] : memref<1x128x384xf32, #tpu.memory_space<vmem>>, vector<1x128x384xf32>
    %268 = vector.shape_cast %267 : vector<1x128x384xf32> to vector<128x384xf32>
    %cst_95 = arith.constant dense<0.000000e+00> : vector<8x384xf32>
    %269 = tpu.matmul %253, %268, %cst_95 {dimension_numbers = #tpu.dot_dimension_numbers<[1], [0], [0], [1], [0, 0, 1, 1], [], []>} : vector<8x128xf32>, vector<128x384xf32>, vector<8x384xf32> -> vector<8x384xf32>
    %270 = vector.extract_strided_slice %266 {offsets = [0, 0], sizes = [8, 128], strides = [1, 1]} : vector<8x384xf32> to vector<8x128xf32>
    %271 = vector.extract_strided_slice %269 {offsets = [0, 0], sizes = [8, 128], strides = [1, 1]} : vector<8x384xf32> to vector<8x128xf32>
    %272 = arith.addf %270, %271 : vector<8x128xf32>
    %273 = arith.negf %272 : vector<8x128xf32>
    %274 = math.exp %273 : vector<8x128xf32>
    %cst_96 = arith.constant 1.000000e+00 : f32
    %275 = vector.broadcast %cst_96 : f32 to vector<8x128xf32>
    %276 = arith.addf %275, %274 : vector<8x128xf32>
    %277 = arith.divf %275, %276 : vector<8x128xf32>
    %278 = vector.extract_strided_slice %266 {offsets = [0, 128], sizes = [8, 128], strides = [1, 1]} : vector<8x384xf32> to vector<8x128xf32>
    %279 = vector.extract_strided_slice %269 {offsets = [0, 128], sizes = [8, 128], strides = [1, 1]} : vector<8x384xf32> to vector<8x128xf32>
    %280 = arith.addf %278, %279 : vector<8x128xf32>
    %281 = arith.negf %280 : vector<8x128xf32>
    %282 = math.exp %281 : vector<8x128xf32>
    %cst_97 = arith.constant 1.000000e+00 : f32
    %283 = vector.broadcast %cst_97 : f32 to vector<8x128xf32>
    %284 = arith.addf %283, %282 : vector<8x128xf32>
    %285 = arith.divf %283, %284 : vector<8x128xf32>
    %286 = vector.extract_strided_slice %266 {offsets = [0, 256], sizes = [8, 128], strides = [1, 1]} : vector<8x384xf32> to vector<8x128xf32>
    %287 = vector.extract_strided_slice %269 {offsets = [0, 256], sizes = [8, 128], strides = [1, 1]} : vector<8x384xf32> to vector<8x128xf32>
    %c0_98 = arith.constant 0 : index
    %c0_99 = arith.constant 0 : index
    %c0_100 = arith.constant 0 : index
    %288 = vector.load %arg4[%c0_98, %c0_99, %c0_100] : memref<1x1x128xf32, #tpu.memory_space<vmem>>, vector<1x1x128xf32>
    %289 = vector.shape_cast %288 : vector<1x1x128xf32> to vector<1x128xf32>
    %290 = vector.broadcast %289 : vector<1x128xf32> to vector<8x128xf32>
    %291 = arith.addf %287, %290 : vector<8x128xf32>
    %292 = arith.mulf %277, %291 : vector<8x128xf32>
    %293 = arith.addf %286, %292 : vector<8x128xf32>
    %294 = math.tanh %293 : vector<8x128xf32>
    %cst_101 = arith.constant 1.000000e+00 : f32
    %295 = vector.broadcast %cst_101 : f32 to vector<8x128xf32>
    %296 = arith.subf %295, %285 : vector<8x128xf32>
    %297 = arith.mulf %296, %294 : vector<8x128xf32>
    %298 = arith.mulf %285, %253 : vector<8x128xf32>
    %299 = arith.addf %297, %298 : vector<8x128xf32>
    %c0_102 = arith.constant 0 : index
    %c0_103 = arith.constant 0 : index
    %300 = vector.load %arg1[%c0_102, %c0_103] : memref<8x1xi32, #tpu.memory_space<vmem>>, vector<8x1xi32>
    %301 = vector.broadcast %263 : i32 to vector<8x1xi32>
    %302 = arith.cmpi slt, %301, %300 : vector<8x1xi32>
    %303 = vector.shape_cast %302 : vector<8x1xi1> to vector<8x1xi1>
    %304 = vector.broadcast %303 : vector<8x1xi1> to vector<8x128xi1>
    %305 = arith.select %304, %299, %253 : vector<8x128xi1>, vector<8x128xf32>
    %cst_104 = arith.constant 0.000000e+00 : f32
    %306 = vector.shape_cast %302 : vector<8x1xi1> to vector<8x1xi1>
    %307 = vector.broadcast %306 : vector<8x1xi1> to vector<8x128xi1>
    %308 = vector.broadcast %cst_104 : f32 to vector<8x128xf32>
    %309 = arith.select %307, %305, %308 : vector<8x128xi1>, vector<8x128xf32>
    %310 = arith.index_cast %263 : i32 to index
    %c0_105 = arith.constant 0 : index
    %c0_106 = arith.constant 0 : index
    %311 = vector.load %arg5[%310, %c0_105, %c0_106] : memref<8x8x128xf32, #tpu.memory_space<vmem>>, vector<1x8x128xf32>
    %312 = vector.shape_cast %311 : vector<1x8x128xf32> to vector<8x128xf32>
    %313 = vector.shape_cast %309 : vector<8x128xf32> to vector<1x8x128xf32>
    tpu.vector_store %arg5[%310, %c0_105, %c0_106], %313 {strides = array<i32>} : memref<8x8x128xf32, #tpu.memory_space<vmem>>, vector<1x8x128xf32>,
    %c6_i32 = arith.constant 6 : i32
    %c7_i32_107 = arith.constant 7 : i32
    %314 = arith.subi %c7_i32_107, %c6_i32 : i32
    %315 = arith.select %0, %314, %c6_i32 : i32
    %316 = arith.index_cast %315 : i32 to index
    %c0_108 = arith.constant 0 : index
    %c0_109 = arith.constant 0 : index
    %317 = vector.load %arg2[%316, %c0_108, %c0_109] : memref<8x8x384xf32, #tpu.memory_space<vmem>>, vector<1x8x384xf32>
    %318 = vector.shape_cast %317 : vector<1x8x384xf32> to vector<8x384xf32>
    %c0_110 = arith.constant 0 : index
    %c0_111 = arith.constant 0 : index
    %c0_112 = arith.constant 0 : index
    %319 = vector.load %arg3[%c0_110, %c0_111, %c0_112] : memref<1x128x384xf32, #tpu.memory_space<vmem>>, vector<1x128x384xf32>
    %320 = vector.shape_cast %319 : vector<1x128x384xf32> to vector<128x384xf32>
    %cst_113 = arith.constant dense<0.000000e+00> : vector<8x384xf32>
    %321 = tpu.matmul %305, %320, %cst_113 {dimension_numbers = #tpu.dot_dimension_numbers<[1], [0], [0], [1], [0, 0, 1, 1], [], []>} : vector<8x128xf32>, vector<128x384xf32>, vector<8x384xf32> -> vector<8x384xf32>
    %322 = vector.extract_strided_slice %318 {offsets = [0, 0], sizes = [8, 128], strides = [1, 1]} : vector<8x384xf32> to vector<8x128xf32>
    %323 = vector.extract_strided_slice %321 {offsets = [0, 0], sizes = [8, 128], strides = [1, 1]} : vector<8x384xf32> to vector<8x128xf32>
    %324 = arith.addf %322, %323 : vector<8x128xf32>
    %325 = arith.negf %324 : vector<8x128xf32>
    %326 = math.exp %325 : vector<8x128xf32>
    %cst_114 = arith.constant 1.000000e+00 : f32
    %327 = vector.broadcast %cst_114 : f32 to vector<8x128xf32>
    %328 = arith.addf %327, %326 : vector<8x128xf32>
    %329 = arith.divf %327, %328 : vector<8x128xf32>
    %330 = vector.extract_strided_slice %318 {offsets = [0, 128], sizes = [8, 128], strides = [1, 1]} : vector<8x384xf32> to vector<8x128xf32>
    %331 = vector.extract_strided_slice %321 {offsets = [0, 128], sizes = [8, 128], strides = [1, 1]} : vector<8x384xf32> to vector<8x128xf32>
    %332 = arith.addf %330, %331 : vector<8x128xf32>
    %333 = arith.negf %332 : vector<8x128xf32>
    %334 = math.exp %333 : vector<8x128xf32>
    %cst_115 = arith.constant 1.000000e+00 : f32
    %335 = vector.broadcast %cst_115 : f32 to vector<8x128xf32>
    %336 = arith.addf %335, %334 : vector<8x128xf32>
    %337 = arith.divf %335, %336 : vector<8x128xf32>
    %338 = vector.extract_strided_slice %318 {offsets = [0, 256], sizes = [8, 128], strides = [1, 1]} : vector<8x384xf32> to vector<8x128xf32>
    %339 = vector.extract_strided_slice %321 {offsets = [0, 256], sizes = [8, 128], strides = [1, 1]} : vector<8x384xf32> to vector<8x128xf32>
    %c0_116 = arith.constant 0 : index
    %c0_117 = arith.constant 0 : index
    %c0_118 = arith.constant 0 : index
    %340 = vector.load %arg4[%c0_116, %c0_117, %c0_118] : memref<1x1x128xf32, #tpu.memory_space<vmem>>, vector<1x1x128xf32>
    %341 = vector.shape_cast %340 : vector<1x1x128xf32> to vector<1x128xf32>
    %342 = vector.broadcast %341 : vector<1x128xf32> to vector<8x128xf32>
    %343 = arith.addf %339, %342 : vector<8x128xf32>
    %344 = arith.mulf %329, %343 : vector<8x128xf32>
    %345 = arith.addf %338, %344 : vector<8x128xf32>
    %346 = math.tanh %345 : vector<8x128xf32>
    %cst_119 = arith.constant 1.000000e+00 : f32
    %347 = vector.broadcast %cst_119 : f32 to vector<8x128xf32>
    %348 = arith.subf %347, %337 : vector<8x128xf32>
    %349 = arith.mulf %348, %346 : vector<8x128xf32>
    %350 = arith.mulf %337, %305 : vector<8x128xf32>
    %351 = arith.addf %349, %350 : vector<8x128xf32>
    %c0_120 = arith.constant 0 : index
    %c0_121 = arith.constant 0 : index
    %352 = vector.load %arg1[%c0_120, %c0_121] : memref<8x1xi32, #tpu.memory_space<vmem>>, vector<8x1xi32>
    %353 = vector.broadcast %315 : i32 to vector<8x1xi32>
    %354 = arith.cmpi slt, %353, %352 : vector<8x1xi32>
    %355 = vector.shape_cast %354 : vector<8x1xi1> to vector<8x1xi1>
    %356 = vector.broadcast %355 : vector<8x1xi1> to vector<8x128xi1>
    %357 = arith.select %356, %351, %305 : vector<8x128xi1>, vector<8x128xf32>
    %cst_122 = arith.constant 0.000000e+00 : f32
    %358 = vector.shape_cast %354 : vector<8x1xi1> to vector<8x1xi1>
    %359 = vector.broadcast %358 : vector<8x1xi1> to vector<8x128xi1>
    %360 = vector.broadcast %cst_122 : f32 to vector<8x128xf32>
    %361 = arith.select %359, %357, %360 : vector<8x128xi1>, vector<8x128xf32>
    %362 = arith.index_cast %315 : i32 to index
    %c0_123 = arith.constant 0 : index
    %c0_124 = arith.constant 0 : index
    %363 = vector.load %arg5[%362, %c0_123, %c0_124] : memref<8x8x128xf32, #tpu.memory_space<vmem>>, vector<1x8x128xf32>
    %364 = vector.shape_cast %363 : vector<1x8x128xf32> to vector<8x128xf32>
    %365 = vector.shape_cast %361 : vector<8x128xf32> to vector<1x8x128xf32>
    tpu.vector_store %arg5[%362, %c0_123, %c0_124], %365 {strides = array<i32>} : memref<8x8x128xf32, #tpu.memory_space<vmem>>, vector<1x8x128xf32>,
    %c7_i32_125 = arith.constant 7 : i32
    %c7_i32_126 = arith.constant 7 : i32
    %366 = arith.subi %c7_i32_126, %c7_i32_125 : i32
    %367 = arith.select %0, %366, %c7_i32_125 : i32
    %368 = arith.index_cast %367 : i32 to index
    %c0_127 = arith.constant 0 : index
    %c0_128 = arith.constant 0 : index
    %369 = vector.load %arg2[%368, %c0_127, %c0_128] : memref<8x8x384xf32, #tpu.memory_space<vmem>>, vector<1x8x384xf32>
    %370 = vector.shape_cast %369 : vector<1x8x384xf32> to vector<8x384xf32>
    %c0_129 = arith.constant 0 : index
    %c0_130 = arith.constant 0 : index
    %c0_131 = arith.constant 0 : index
    %371 = vector.load %arg3[%c0_129, %c0_130, %c0_131] : memref<1x128x384xf32, #tpu.memory_space<vmem>>, vector<1x128x384xf32>
    %372 = vector.shape_cast %371 : vector<1x128x384xf32> to vector<128x384xf32>
    %cst_132 = arith.constant dense<0.000000e+00> : vector<8x384xf32>
    %373 = tpu.matmul %357, %372, %cst_132 {dimension_numbers = #tpu.dot_dimension_numbers<[1], [0], [0], [1], [0, 0, 1, 1], [], []>} : vector<8x128xf32>, vector<128x384xf32>, vector<8x384xf32> -> vector<8x384xf32>
    %374 = vector.extract_strided_slice %370 {offsets = [0, 0], sizes = [8, 128], strides = [1, 1]} : vector<8x384xf32> to vector<8x128xf32>
    %375 = vector.extract_strided_slice %373 {offsets = [0, 0], sizes = [8, 128], strides = [1, 1]} : vector<8x384xf32> to vector<8x128xf32>
    %376 = arith.addf %374, %375 : vector<8x128xf32>
    %377 = arith.negf %376 : vector<8x128xf32>
    %378 = math.exp %377 : vector<8x128xf32>
    %cst_133 = arith.constant 1.000000e+00 : f32
    %379 = vector.broadcast %cst_133 : f32 to vector<8x128xf32>
    %380 = arith.addf %379, %378 : vector<8x128xf32>
    %381 = arith.divf %379, %380 : vector<8x128xf32>
    %382 = vector.extract_strided_slice %370 {offsets = [0, 128], sizes = [8, 128], strides = [1, 1]} : vector<8x384xf32> to vector<8x128xf32>
    %383 = vector.extract_strided_slice %373 {offsets = [0, 128], sizes = [8, 128], strides = [1, 1]} : vector<8x384xf32> to vector<8x128xf32>
    %384 = arith.addf %382, %383 : vector<8x128xf32>
    %385 = arith.negf %384 : vector<8x128xf32>
    %386 = math.exp %385 : vector<8x128xf32>
    %cst_134 = arith.constant 1.000000e+00 : f32
    %387 = vector.broadcast %cst_134 : f32 to vector<8x128xf32>
    %388 = arith.addf %387, %386 : vector<8x128xf32>
    %389 = arith.divf %387, %388 : vector<8x128xf32>
    %390 = vector.extract_strided_slice %370 {offsets = [0, 256], sizes = [8, 128], strides = [1, 1]} : vector<8x384xf32> to vector<8x128xf32>
    %391 = vector.extract_strided_slice %373 {offsets = [0, 256], sizes = [8, 128], strides = [1, 1]} : vector<8x384xf32> to vector<8x128xf32>
    %c0_135 = arith.constant 0 : index
    %c0_136 = arith.constant 0 : index
    %c0_137 = arith.constant 0 : index
    %392 = vector.load %arg4[%c0_135, %c0_136, %c0_137] : memref<1x1x128xf32, #tpu.memory_space<vmem>>, vector<1x1x128xf32>
    %393 = vector.shape_cast %392 : vector<1x1x128xf32> to vector<1x128xf32>
    %394 = vector.broadcast %393 : vector<1x128xf32> to vector<8x128xf32>
    %395 = arith.addf %391, %394 : vector<8x128xf32>
    %396 = arith.mulf %381, %395 : vector<8x128xf32>
    %397 = arith.addf %390, %396 : vector<8x128xf32>
    %398 = math.tanh %397 : vector<8x128xf32>
    %cst_138 = arith.constant 1.000000e+00 : f32
    %399 = vector.broadcast %cst_138 : f32 to vector<8x128xf32>
    %400 = arith.subf %399, %389 : vector<8x128xf32>
    %401 = arith.mulf %400, %398 : vector<8x128xf32>
    %402 = arith.mulf %389, %357 : vector<8x128xf32>
    %403 = arith.addf %401, %402 : vector<8x128xf32>
    %c0_139 = arith.constant 0 : index
    %c0_140 = arith.constant 0 : index
    %404 = vector.load %arg1[%c0_139, %c0_140] : memref<8x1xi32, #tpu.memory_space<vmem>>, vector<8x1xi32>
    %405 = vector.broadcast %367 : i32 to vector<8x1xi32>
    %406 = arith.cmpi slt, %405, %404 : vector<8x1xi32>
    %407 = vector.shape_cast %406 : vector<8x1xi1> to vector<8x1xi1>
    %408 = vector.broadcast %407 : vector<8x1xi1> to vector<8x128xi1>
    %409 = arith.select %408, %403, %357 : vector<8x128xi1>, vector<8x128xf32>
    %cst_141 = arith.constant 0.000000e+00 : f32
    %410 = vector.shape_cast %406 : vector<8x1xi1> to vector<8x1xi1>
    %411 = vector.broadcast %410 : vector<8x1xi1> to vector<8x128xi1>
    %412 = vector.broadcast %cst_141 : f32 to vector<8x128xf32>
    %413 = arith.select %411, %409, %412 : vector<8x128xi1>, vector<8x128xf32>
    %414 = arith.index_cast %367 : i32 to index
    %c0_142 = arith.constant 0 : index
    %c0_143 = arith.constant 0 : index
    %415 = vector.load %arg5[%414, %c0_142, %c0_143] : memref<8x8x128xf32, #tpu.memory_space<vmem>>, vector<1x8x128xf32>
    %416 = vector.shape_cast %415 : vector<1x8x128xf32> to vector<8x128xf32>
    %417 = vector.shape_cast %413 : vector<8x128xf32> to vector<1x8x128xf32>
    tpu.vector_store %arg5[%414, %c0_142, %c0_143], %417 {strides = array<i32>} : memref<8x8x128xf32, #tpu.memory_space<vmem>>, vector<1x8x128xf32>,
    %c8_i32 = arith.constant 8 : i32
    %c0_144 = arith.constant 0 : index
    %c0_145 = arith.constant 0 : index
    %418 = vector.load %arg6[%c0_144, %c0_145] : memref<8x128xf32, #tpu.memory_space<vmem>>, vector<8x128xf32>
    tpu.vector_store %arg6[%c0_144, %c0_145], %409 {strides = array<i32>} : memref<8x128xf32, #tpu.memory_space<vmem>>, vector<8x128xf32>,
    return
  }
  func.func @transform_0(%arg0: i32) -> (i32, i32) {
    %c0_i32 = arith.constant 0 : i32
    %c0_i32_0 = arith.constant 0 : i32
    %c0_i32_1 = arith.constant 0 : i32
    return %c0_i32, %c0_i32_0 : i32, i32
  }
  func.func @transform_1(%arg0: i32) -> (i32, i32, i32) {
    %c0_i32 = arith.constant 0 : i32
    %c0_i32_0 = arith.constant 0 : i32
    %c0_i32_1 = arith.constant 0 : i32
    return %c0_i32, %c0_i32_0, %arg0 : i32, i32, i32
  }
  func.func @transform_2(%arg0: i32) -> (i32, i32, i32) {
    %c0_i32 = arith.constant 0 : i32
    %c0_i32_0 = arith.constant 0 : i32
    %c0_i32_1 = arith.constant 0 : i32
    return %arg0, %c0_i32, %c0_i32_0 : i32, i32, i32
  }
  func.func @transform_3(%arg0: i32) -> (i32, i32, i32) {
    %c0_i32 = arith.constant 0 : i32
    %c0_i32_0 = arith.constant 0 : i32
    %c0_i32_1 = arith.constant 0 : i32
    return %arg0, %c0_i32, %c0_i32_0 : i32, i32, i32
  }
  func.func @transform_4(%arg0: i32) -> (i32, i32, i32) {
    %c0_i32 = arith.constant 0 : i32
    %c0_i32_0 = arith.constant 0 : i32
    %c0_i32_1 = arith.constant 0 : i32
    return %c0_i32, %c0_i32_0, %arg0 : i32, i32, i32
  }
  func.func @transform_5(%arg0: i32) -> (i32, i32) {
    %c0_i32 = arith.constant 0 : i32
    %c0_i32_0 = arith.constant 0 : i32
    return %c0_i32, %arg0 : i32, i32
  }
}

module attributes {stable_mosaic.version = 11 : i64} {
  func.func @_linear_kernel(%arg0: i32, %arg1: memref<64x32xf32, #tpu.memory_space<vmem>>, %arg2: memref<32x768xf32, #tpu.memory_space<vmem>>, %arg3: memref<1x768xf32, #tpu.memory_space<vmem>>, %arg4: memref<64x768xf32, #tpu.memory_space<vmem>>) attributes {dimension_semantics = [#tpu.dimension_semantics<parallel>], iteration_bounds = array<i64: 1>, scalar_prefetch = 0 : i64, scratch_operands = 0 : i64, tpu.core_type = #tpu.core_type<tc>, window_params = [{transform_indices = @transform_0, window_bounds = array<i64: 64, 32>}, {pipeline_mode = #tpu.pipeline_mode<synchronous>, transform_indices = @transform_1, window_bounds = array<i64: 32, 768>}, {pipeline_mode = #tpu.pipeline_mode<synchronous>, transform_indices = @transform_2, window_bounds = array<i64: 1, 768>}, {transform_indices = @transform_3, window_bounds = array<i64: 64, 768>}]} {
    %c0 = arith.constant 0 : index
    %c0_0 = arith.constant 0 : index
    %0 = vector.load %arg1[%c0, %c0_0] : memref<64x32xf32, #tpu.memory_space<vmem>>, vector<64x32xf32>
    %c0_1 = arith.constant 0 : index
    %c0_2 = arith.constant 0 : index
    %1 = vector.load %arg2[%c0_1, %c0_2] : memref<32x768xf32, #tpu.memory_space<vmem>>, vector<32x768xf32>
    %cst = arith.constant dense<0.000000e+00> : vector<64x768xf32>
    %2 = tpu.matmul %0, %1, %cst {dimension_numbers = #tpu.dot_dimension_numbers<[1], [0], [0], [1], [0, 0, 1, 1], [], []>} : vector<64x32xf32>, vector<32x768xf32>, vector<64x768xf32> -> vector<64x768xf32>
    %c0_3 = arith.constant 0 : index
    %c0_4 = arith.constant 0 : index
    %3 = vector.load %arg3[%c0_3, %c0_4] : memref<1x768xf32, #tpu.memory_space<vmem>>, vector<1x768xf32>
    %4 = vector.broadcast %3 : vector<1x768xf32> to vector<64x768xf32>
    %5 = arith.addf %2, %4 : vector<64x768xf32>
    %c0_5 = arith.constant 0 : index
    %c0_6 = arith.constant 0 : index
    %6 = vector.load %arg4[%c0_5, %c0_6] : memref<64x768xf32, #tpu.memory_space<vmem>>, vector<64x768xf32>
    tpu.vector_store %arg4[%c0_5, %c0_6], %5 {strides = array<i32>} : memref<64x768xf32, #tpu.memory_space<vmem>>, vector<64x768xf32>,
    return
  }
  func.func @transform_0(%arg0: i32) -> (i32, i32) {
    %c0_i32 = arith.constant 0 : i32
    %c0_i32_0 = arith.constant 0 : i32
    return %arg0, %c0_i32 : i32, i32
  }
  func.func @transform_1(%arg0: i32) -> (i32, i32) {
    %c0_i32 = arith.constant 0 : i32
    %c0_i32_0 = arith.constant 0 : i32
    %c0_i32_1 = arith.constant 0 : i32
    return %c0_i32, %c0_i32_0 : i32, i32
  }
  func.func @transform_2(%arg0: i32) -> (i32, i32) {
    %c0_i32 = arith.constant 0 : i32
    %c0_i32_0 = arith.constant 0 : i32
    %c0_i32_1 = arith.constant 0 : i32
    return %c0_i32, %c0_i32_0 : i32, i32
  }
  func.func @transform_3(%arg0: i32) -> (i32, i32) {
    %c0_i32 = arith.constant 0 : i32
    %c0_i32_0 = arith.constant 0 : i32
    return %arg0, %c0_i32 : i32, i32
  }
}

module attributes {stable_mosaic.version = 11 : i64} {
  func.func @_linear_kernel(%arg0: i32, %arg1: memref<64x256xf32, #tpu.memory_space<vmem>>, %arg2: memref<256x768xf32, #tpu.memory_space<vmem>>, %arg3: memref<1x768xf32, #tpu.memory_space<vmem>>, %arg4: memref<64x768xf32, #tpu.memory_space<vmem>>) attributes {dimension_semantics = [#tpu.dimension_semantics<parallel>], iteration_bounds = array<i64: 1>, scalar_prefetch = 0 : i64, scratch_operands = 0 : i64, tpu.core_type = #tpu.core_type<tc>, window_params = [{transform_indices = @transform_0, window_bounds = array<i64: 64, 256>}, {pipeline_mode = #tpu.pipeline_mode<synchronous>, transform_indices = @transform_1, window_bounds = array<i64: 256, 768>}, {pipeline_mode = #tpu.pipeline_mode<synchronous>, transform_indices = @transform_2, window_bounds = array<i64: 1, 768>}, {transform_indices = @transform_3, window_bounds = array<i64: 64, 768>}]} {
    %c0 = arith.constant 0 : index
    %c0_0 = arith.constant 0 : index
    %0 = vector.load %arg1[%c0, %c0_0] : memref<64x256xf32, #tpu.memory_space<vmem>>, vector<64x256xf32>
    %c0_1 = arith.constant 0 : index
    %c0_2 = arith.constant 0 : index
    %1 = vector.load %arg2[%c0_1, %c0_2] : memref<256x768xf32, #tpu.memory_space<vmem>>, vector<256x768xf32>
    %cst = arith.constant dense<0.000000e+00> : vector<64x768xf32>
    %2 = tpu.matmul %0, %1, %cst {dimension_numbers = #tpu.dot_dimension_numbers<[1], [0], [0], [1], [0, 0, 1, 1], [], []>} : vector<64x256xf32>, vector<256x768xf32>, vector<64x768xf32> -> vector<64x768xf32>
    %c0_3 = arith.constant 0 : index
    %c0_4 = arith.constant 0 : index
    %3 = vector.load %arg3[%c0_3, %c0_4] : memref<1x768xf32, #tpu.memory_space<vmem>>, vector<1x768xf32>
    %4 = vector.broadcast %3 : vector<1x768xf32> to vector<64x768xf32>
    %5 = arith.addf %2, %4 : vector<64x768xf32>
    %c0_5 = arith.constant 0 : index
    %c0_6 = arith.constant 0 : index
    %6 = vector.load %arg4[%c0_5, %c0_6] : memref<64x768xf32, #tpu.memory_space<vmem>>, vector<64x768xf32>
    tpu.vector_store %arg4[%c0_5, %c0_6], %5 {strides = array<i32>} : memref<64x768xf32, #tpu.memory_space<vmem>>, vector<64x768xf32>,
    return
  }
  func.func @transform_0(%arg0: i32) -> (i32, i32) {
    %c0_i32 = arith.constant 0 : i32
    %c0_i32_0 = arith.constant 0 : i32
    return %arg0, %c0_i32 : i32, i32
  }
  func.func @transform_1(%arg0: i32) -> (i32, i32) {
    %c0_i32 = arith.constant 0 : i32
    %c0_i32_0 = arith.constant 0 : i32
    %c0_i32_1 = arith.constant 0 : i32
    return %c0_i32, %c0_i32_0 : i32, i32
  }
  func.func @transform_2(%arg0: i32) -> (i32, i32) {
    %c0_i32 = arith.constant 0 : i32
    %c0_i32_0 = arith.constant 0 : i32
    %c0_i32_1 = arith.constant 0 : i32
    return %c0_i32, %c0_i32_0 : i32, i32
  }
  func.func @transform_3(%arg0: i32) -> (i32, i32) {
    %c0_i32 = arith.constant 0 : i32
    %c0_i32_0 = arith.constant 0 : i32
    return %arg0, %c0_i32 : i32, i32
  }
}

module attributes {stable_mosaic.version = 11 : i64} {
  func.func @_gru_rec_kernel(%arg0: i32, %arg1: memref<8x1xi32, #tpu.memory_space<vmem>>, %arg2: memref<8x8x384xf32, #tpu.memory_space<vmem>>, %arg3: memref<1x128x384xf32, #tpu.memory_space<vmem>>, %arg4: memref<1x1x128xf32, #tpu.memory_space<vmem>>, %arg5: memref<8x128xf32, #tpu.memory_space<vmem>>) attributes {dimension_semantics = [#tpu.dimension_semantics<parallel>], iteration_bounds = array<i64: 2>, scalar_prefetch = 0 : i64, scratch_operands = 0 : i64, tpu.core_type = #tpu.core_type<tc>, window_params = [{pipeline_mode = #tpu.pipeline_mode<synchronous>, transform_indices = @transform_0, window_bounds = array<i64: 8, 1>}, {transform_indices = @transform_1, window_bounds = array<i64: 8, 8, 384>}, {transform_indices = @transform_2, window_bounds = array<i64: 1, 128, 384>}, {transform_indices = @transform_3, window_bounds = array<i64: 1, 1, 128>}, {transform_indices = @transform_4, window_bounds = array<i64: 8, 128>}]} {
    %c1_i32 = arith.constant 1 : i32
    %0 = arith.cmpi eq, %arg0, %c1_i32 : i32
    %cst = arith.constant 0.000000e+00 : f32
    %1 = vector.broadcast %cst : f32 to vector<8x128xf32>
    %c0_i32 = arith.constant 0 : i32
    %c7_i32 = arith.constant 7 : i32
    %2 = arith.subi %c7_i32, %c0_i32 : i32
    %3 = arith.select %0, %2, %c0_i32 : i32
    %4 = arith.index_cast %3 : i32 to index
    %c0 = arith.constant 0 : index
    %c0_0 = arith.constant 0 : index
    %5 = vector.load %arg2[%4, %c0, %c0_0] : memref<8x8x384xf32, #tpu.memory_space<vmem>>, vector<1x8x384xf32>
    %6 = vector.shape_cast %5 : vector<1x8x384xf32> to vector<8x384xf32>
    %c0_1 = arith.constant 0 : index
    %c0_2 = arith.constant 0 : index
    %c0_3 = arith.constant 0 : index
    %7 = vector.load %arg3[%c0_1, %c0_2, %c0_3] : memref<1x128x384xf32, #tpu.memory_space<vmem>>, vector<1x128x384xf32>
    %8 = vector.shape_cast %7 : vector<1x128x384xf32> to vector<128x384xf32>
    %cst_4 = arith.constant dense<0.000000e+00> : vector<8x384xf32>
    %9 = tpu.matmul %1, %8, %cst_4 {dimension_numbers = #tpu.dot_dimension_numbers<[1], [0], [0], [1], [0, 0, 1, 1], [], []>} : vector<8x128xf32>, vector<128x384xf32>, vector<8x384xf32> -> vector<8x384xf32>
    %10 = vector.extract_strided_slice %6 {offsets = [0, 0], sizes = [8, 128], strides = [1, 1]} : vector<8x384xf32> to vector<8x128xf32>
    %11 = vector.extract_strided_slice %9 {offsets = [0, 0], sizes = [8, 128], strides = [1, 1]} : vector<8x384xf32> to vector<8x128xf32>
    %12 = arith.addf %10, %11 : vector<8x128xf32>
    %13 = arith.negf %12 : vector<8x128xf32>
    %14 = math.exp %13 : vector<8x128xf32>
    %cst_5 = arith.constant 1.000000e+00 : f32
    %15 = vector.broadcast %cst_5 : f32 to vector<8x128xf32>
    %16 = arith.addf %15, %14 : vector<8x128xf32>
    %17 = arith.divf %15, %16 : vector<8x128xf32>
    %18 = vector.extract_strided_slice %6 {offsets = [0, 128], sizes = [8, 128], strides = [1, 1]} : vector<8x384xf32> to vector<8x128xf32>
    %19 = vector.extract_strided_slice %9 {offsets = [0, 128], sizes = [8, 128], strides = [1, 1]} : vector<8x384xf32> to vector<8x128xf32>
    %20 = arith.addf %18, %19 : vector<8x128xf32>
    %21 = arith.negf %20 : vector<8x128xf32>
    %22 = math.exp %21 : vector<8x128xf32>
    %cst_6 = arith.constant 1.000000e+00 : f32
    %23 = vector.broadcast %cst_6 : f32 to vector<8x128xf32>
    %24 = arith.addf %23, %22 : vector<8x128xf32>
    %25 = arith.divf %23, %24 : vector<8x128xf32>
    %26 = vector.extract_strided_slice %6 {offsets = [0, 256], sizes = [8, 128], strides = [1, 1]} : vector<8x384xf32> to vector<8x128xf32>
    %27 = vector.extract_strided_slice %9 {offsets = [0, 256], sizes = [8, 128], strides = [1, 1]} : vector<8x384xf32> to vector<8x128xf32>
    %c0_7 = arith.constant 0 : index
    %c0_8 = arith.constant 0 : index
    %c0_9 = arith.constant 0 : index
    %28 = vector.load %arg4[%c0_7, %c0_8, %c0_9] : memref<1x1x128xf32, #tpu.memory_space<vmem>>, vector<1x1x128xf32>
    %29 = vector.shape_cast %28 : vector<1x1x128xf32> to vector<1x128xf32>
    %30 = vector.broadcast %29 : vector<1x128xf32> to vector<8x128xf32>
    %31 = arith.addf %27, %30 : vector<8x128xf32>
    %32 = arith.mulf %17, %31 : vector<8x128xf32>
    %33 = arith.addf %26, %32 : vector<8x128xf32>
    %34 = math.tanh %33 : vector<8x128xf32>
    %cst_10 = arith.constant 1.000000e+00 : f32
    %35 = vector.broadcast %cst_10 : f32 to vector<8x128xf32>
    %36 = arith.subf %35, %25 : vector<8x128xf32>
    %37 = arith.mulf %36, %34 : vector<8x128xf32>
    %38 = arith.mulf %25, %1 : vector<8x128xf32>
    %39 = arith.addf %37, %38 : vector<8x128xf32>
    %c0_11 = arith.constant 0 : index
    %c0_12 = arith.constant 0 : index
    %40 = vector.load %arg1[%c0_11, %c0_12] : memref<8x1xi32, #tpu.memory_space<vmem>>, vector<8x1xi32>
    %41 = vector.broadcast %3 : i32 to vector<8x1xi32>
    %42 = arith.cmpi slt, %41, %40 : vector<8x1xi32>
    %43 = vector.shape_cast %42 : vector<8x1xi1> to vector<8x1xi1>
    %44 = vector.broadcast %43 : vector<8x1xi1> to vector<8x128xi1>
    %45 = arith.select %44, %39, %1 : vector<8x128xi1>, vector<8x128xf32>
    %c1_i32_13 = arith.constant 1 : i32
    %c7_i32_14 = arith.constant 7 : i32
    %46 = arith.subi %c7_i32_14, %c1_i32_13 : i32
    %47 = arith.select %0, %46, %c1_i32_13 : i32
    %48 = arith.index_cast %47 : i32 to index
    %c0_15 = arith.constant 0 : index
    %c0_16 = arith.constant 0 : index
    %49 = vector.load %arg2[%48, %c0_15, %c0_16] : memref<8x8x384xf32, #tpu.memory_space<vmem>>, vector<1x8x384xf32>
    %50 = vector.shape_cast %49 : vector<1x8x384xf32> to vector<8x384xf32>
    %c0_17 = arith.constant 0 : index
    %c0_18 = arith.constant 0 : index
    %c0_19 = arith.constant 0 : index
    %51 = vector.load %arg3[%c0_17, %c0_18, %c0_19] : memref<1x128x384xf32, #tpu.memory_space<vmem>>, vector<1x128x384xf32>
    %52 = vector.shape_cast %51 : vector<1x128x384xf32> to vector<128x384xf32>
    %cst_20 = arith.constant dense<0.000000e+00> : vector<8x384xf32>
    %53 = tpu.matmul %45, %52, %cst_20 {dimension_numbers = #tpu.dot_dimension_numbers<[1], [0], [0], [1], [0, 0, 1, 1], [], []>} : vector<8x128xf32>, vector<128x384xf32>, vector<8x384xf32> -> vector<8x384xf32>
    %54 = vector.extract_strided_slice %50 {offsets = [0, 0], sizes = [8, 128], strides = [1, 1]} : vector<8x384xf32> to vector<8x128xf32>
    %55 = vector.extract_strided_slice %53 {offsets = [0, 0], sizes = [8, 128], strides = [1, 1]} : vector<8x384xf32> to vector<8x128xf32>
    %56 = arith.addf %54, %55 : vector<8x128xf32>
    %57 = arith.negf %56 : vector<8x128xf32>
    %58 = math.exp %57 : vector<8x128xf32>
    %cst_21 = arith.constant 1.000000e+00 : f32
    %59 = vector.broadcast %cst_21 : f32 to vector<8x128xf32>
    %60 = arith.addf %59, %58 : vector<8x128xf32>
    %61 = arith.divf %59, %60 : vector<8x128xf32>
    %62 = vector.extract_strided_slice %50 {offsets = [0, 128], sizes = [8, 128], strides = [1, 1]} : vector<8x384xf32> to vector<8x128xf32>
    %63 = vector.extract_strided_slice %53 {offsets = [0, 128], sizes = [8, 128], strides = [1, 1]} : vector<8x384xf32> to vector<8x128xf32>
    %64 = arith.addf %62, %63 : vector<8x128xf32>
    %65 = arith.negf %64 : vector<8x128xf32>
    %66 = math.exp %65 : vector<8x128xf32>
    %cst_22 = arith.constant 1.000000e+00 : f32
    %67 = vector.broadcast %cst_22 : f32 to vector<8x128xf32>
    %68 = arith.addf %67, %66 : vector<8x128xf32>
    %69 = arith.divf %67, %68 : vector<8x128xf32>
    %70 = vector.extract_strided_slice %50 {offsets = [0, 256], sizes = [8, 128], strides = [1, 1]} : vector<8x384xf32> to vector<8x128xf32>
    %71 = vector.extract_strided_slice %53 {offsets = [0, 256], sizes = [8, 128], strides = [1, 1]} : vector<8x384xf32> to vector<8x128xf32>
    %c0_23 = arith.constant 0 : index
    %c0_24 = arith.constant 0 : index
    %c0_25 = arith.constant 0 : index
    %72 = vector.load %arg4[%c0_23, %c0_24, %c0_25] : memref<1x1x128xf32, #tpu.memory_space<vmem>>, vector<1x1x128xf32>
    %73 = vector.shape_cast %72 : vector<1x1x128xf32> to vector<1x128xf32>
    %74 = vector.broadcast %73 : vector<1x128xf32> to vector<8x128xf32>
    %75 = arith.addf %71, %74 : vector<8x128xf32>
    %76 = arith.mulf %61, %75 : vector<8x128xf32>
    %77 = arith.addf %70, %76 : vector<8x128xf32>
    %78 = math.tanh %77 : vector<8x128xf32>
    %cst_26 = arith.constant 1.000000e+00 : f32
    %79 = vector.broadcast %cst_26 : f32 to vector<8x128xf32>
    %80 = arith.subf %79, %69 : vector<8x128xf32>
    %81 = arith.mulf %80, %78 : vector<8x128xf32>
    %82 = arith.mulf %69, %45 : vector<8x128xf32>
    %83 = arith.addf %81, %82 : vector<8x128xf32>
    %c0_27 = arith.constant 0 : index
    %c0_28 = arith.constant 0 : index
    %84 = vector.load %arg1[%c0_27, %c0_28] : memref<8x1xi32, #tpu.memory_space<vmem>>, vector<8x1xi32>
    %85 = vector.broadcast %47 : i32 to vector<8x1xi32>
    %86 = arith.cmpi slt, %85, %84 : vector<8x1xi32>
    %87 = vector.shape_cast %86 : vector<8x1xi1> to vector<8x1xi1>
    %88 = vector.broadcast %87 : vector<8x1xi1> to vector<8x128xi1>
    %89 = arith.select %88, %83, %45 : vector<8x128xi1>, vector<8x128xf32>
    %c2_i32 = arith.constant 2 : i32
    %c7_i32_29 = arith.constant 7 : i32
    %90 = arith.subi %c7_i32_29, %c2_i32 : i32
    %91 = arith.select %0, %90, %c2_i32 : i32
    %92 = arith.index_cast %91 : i32 to index
    %c0_30 = arith.constant 0 : index
    %c0_31 = arith.constant 0 : index
    %93 = vector.load %arg2[%92, %c0_30, %c0_31] : memref<8x8x384xf32, #tpu.memory_space<vmem>>, vector<1x8x384xf32>
    %94 = vector.shape_cast %93 : vector<1x8x384xf32> to vector<8x384xf32>
    %c0_32 = arith.constant 0 : index
    %c0_33 = arith.constant 0 : index
    %c0_34 = arith.constant 0 : index
    %95 = vector.load %arg3[%c0_32, %c0_33, %c0_34] : memref<1x128x384xf32, #tpu.memory_space<vmem>>, vector<1x128x384xf32>
    %96 = vector.shape_cast %95 : vector<1x128x384xf32> to vector<128x384xf32>
    %cst_35 = arith.constant dense<0.000000e+00> : vector<8x384xf32>
    %97 = tpu.matmul %89, %96, %cst_35 {dimension_numbers = #tpu.dot_dimension_numbers<[1], [0], [0], [1], [0, 0, 1, 1], [], []>} : vector<8x128xf32>, vector<128x384xf32>, vector<8x384xf32> -> vector<8x384xf32>
    %98 = vector.extract_strided_slice %94 {offsets = [0, 0], sizes = [8, 128], strides = [1, 1]} : vector<8x384xf32> to vector<8x128xf32>
    %99 = vector.extract_strided_slice %97 {offsets = [0, 0], sizes = [8, 128], strides = [1, 1]} : vector<8x384xf32> to vector<8x128xf32>
    %100 = arith.addf %98, %99 : vector<8x128xf32>
    %101 = arith.negf %100 : vector<8x128xf32>
    %102 = math.exp %101 : vector<8x128xf32>
    %cst_36 = arith.constant 1.000000e+00 : f32
    %103 = vector.broadcast %cst_36 : f32 to vector<8x128xf32>
    %104 = arith.addf %103, %102 : vector<8x128xf32>
    %105 = arith.divf %103, %104 : vector<8x128xf32>
    %106 = vector.extract_strided_slice %94 {offsets = [0, 128], sizes = [8, 128], strides = [1, 1]} : vector<8x384xf32> to vector<8x128xf32>
    %107 = vector.extract_strided_slice %97 {offsets = [0, 128], sizes = [8, 128], strides = [1, 1]} : vector<8x384xf32> to vector<8x128xf32>
    %108 = arith.addf %106, %107 : vector<8x128xf32>
    %109 = arith.negf %108 : vector<8x128xf32>
    %110 = math.exp %109 : vector<8x128xf32>
    %cst_37 = arith.constant 1.000000e+00 : f32
    %111 = vector.broadcast %cst_37 : f32 to vector<8x128xf32>
    %112 = arith.addf %111, %110 : vector<8x128xf32>
    %113 = arith.divf %111, %112 : vector<8x128xf32>
    %114 = vector.extract_strided_slice %94 {offsets = [0, 256], sizes = [8, 128], strides = [1, 1]} : vector<8x384xf32> to vector<8x128xf32>
    %115 = vector.extract_strided_slice %97 {offsets = [0, 256], sizes = [8, 128], strides = [1, 1]} : vector<8x384xf32> to vector<8x128xf32>
    %c0_38 = arith.constant 0 : index
    %c0_39 = arith.constant 0 : index
    %c0_40 = arith.constant 0 : index
    %116 = vector.load %arg4[%c0_38, %c0_39, %c0_40] : memref<1x1x128xf32, #tpu.memory_space<vmem>>, vector<1x1x128xf32>
    %117 = vector.shape_cast %116 : vector<1x1x128xf32> to vector<1x128xf32>
    %118 = vector.broadcast %117 : vector<1x128xf32> to vector<8x128xf32>
    %119 = arith.addf %115, %118 : vector<8x128xf32>
    %120 = arith.mulf %105, %119 : vector<8x128xf32>
    %121 = arith.addf %114, %120 : vector<8x128xf32>
    %122 = math.tanh %121 : vector<8x128xf32>
    %cst_41 = arith.constant 1.000000e+00 : f32
    %123 = vector.broadcast %cst_41 : f32 to vector<8x128xf32>
    %124 = arith.subf %123, %113 : vector<8x128xf32>
    %125 = arith.mulf %124, %122 : vector<8x128xf32>
    %126 = arith.mulf %113, %89 : vector<8x128xf32>
    %127 = arith.addf %125, %126 : vector<8x128xf32>
    %c0_42 = arith.constant 0 : index
    %c0_43 = arith.constant 0 : index
    %128 = vector.load %arg1[%c0_42, %c0_43] : memref<8x1xi32, #tpu.memory_space<vmem>>, vector<8x1xi32>
    %129 = vector.broadcast %91 : i32 to vector<8x1xi32>
    %130 = arith.cmpi slt, %129, %128 : vector<8x1xi32>
    %131 = vector.shape_cast %130 : vector<8x1xi1> to vector<8x1xi1>
    %132 = vector.broadcast %131 : vector<8x1xi1> to vector<8x128xi1>
    %133 = arith.select %132, %127, %89 : vector<8x128xi1>, vector<8x128xf32>
    %c3_i32 = arith.constant 3 : i32
    %c7_i32_44 = arith.constant 7 : i32
    %134 = arith.subi %c7_i32_44, %c3_i32 : i32
    %135 = arith.select %0, %134, %c3_i32 : i32
    %136 = arith.index_cast %135 : i32 to index
    %c0_45 = arith.constant 0 : index
    %c0_46 = arith.constant 0 : index
    %137 = vector.load %arg2[%136, %c0_45, %c0_46] : memref<8x8x384xf32, #tpu.memory_space<vmem>>, vector<1x8x384xf32>
    %138 = vector.shape_cast %137 : vector<1x8x384xf32> to vector<8x384xf32>
    %c0_47 = arith.constant 0 : index
    %c0_48 = arith.constant 0 : index
    %c0_49 = arith.constant 0 : index
    %139 = vector.load %arg3[%c0_47, %c0_48, %c0_49] : memref<1x128x384xf32, #tpu.memory_space<vmem>>, vector<1x128x384xf32>
    %140 = vector.shape_cast %139 : vector<1x128x384xf32> to vector<128x384xf32>
    %cst_50 = arith.constant dense<0.000000e+00> : vector<8x384xf32>
    %141 = tpu.matmul %133, %140, %cst_50 {dimension_numbers = #tpu.dot_dimension_numbers<[1], [0], [0], [1], [0, 0, 1, 1], [], []>} : vector<8x128xf32>, vector<128x384xf32>, vector<8x384xf32> -> vector<8x384xf32>
    %142 = vector.extract_strided_slice %138 {offsets = [0, 0], sizes = [8, 128], strides = [1, 1]} : vector<8x384xf32> to vector<8x128xf32>
    %143 = vector.extract_strided_slice %141 {offsets = [0, 0], sizes = [8, 128], strides = [1, 1]} : vector<8x384xf32> to vector<8x128xf32>
    %144 = arith.addf %142, %143 : vector<8x128xf32>
    %145 = arith.negf %144 : vector<8x128xf32>
    %146 = math.exp %145 : vector<8x128xf32>
    %cst_51 = arith.constant 1.000000e+00 : f32
    %147 = vector.broadcast %cst_51 : f32 to vector<8x128xf32>
    %148 = arith.addf %147, %146 : vector<8x128xf32>
    %149 = arith.divf %147, %148 : vector<8x128xf32>
    %150 = vector.extract_strided_slice %138 {offsets = [0, 128], sizes = [8, 128], strides = [1, 1]} : vector<8x384xf32> to vector<8x128xf32>
    %151 = vector.extract_strided_slice %141 {offsets = [0, 128], sizes = [8, 128], strides = [1, 1]} : vector<8x384xf32> to vector<8x128xf32>
    %152 = arith.addf %150, %151 : vector<8x128xf32>
    %153 = arith.negf %152 : vector<8x128xf32>
    %154 = math.exp %153 : vector<8x128xf32>
    %cst_52 = arith.constant 1.000000e+00 : f32
    %155 = vector.broadcast %cst_52 : f32 to vector<8x128xf32>
    %156 = arith.addf %155, %154 : vector<8x128xf32>
    %157 = arith.divf %155, %156 : vector<8x128xf32>
    %158 = vector.extract_strided_slice %138 {offsets = [0, 256], sizes = [8, 128], strides = [1, 1]} : vector<8x384xf32> to vector<8x128xf32>
    %159 = vector.extract_strided_slice %141 {offsets = [0, 256], sizes = [8, 128], strides = [1, 1]} : vector<8x384xf32> to vector<8x128xf32>
    %c0_53 = arith.constant 0 : index
    %c0_54 = arith.constant 0 : index
    %c0_55 = arith.constant 0 : index
    %160 = vector.load %arg4[%c0_53, %c0_54, %c0_55] : memref<1x1x128xf32, #tpu.memory_space<vmem>>, vector<1x1x128xf32>
    %161 = vector.shape_cast %160 : vector<1x1x128xf32> to vector<1x128xf32>
    %162 = vector.broadcast %161 : vector<1x128xf32> to vector<8x128xf32>
    %163 = arith.addf %159, %162 : vector<8x128xf32>
    %164 = arith.mulf %149, %163 : vector<8x128xf32>
    %165 = arith.addf %158, %164 : vector<8x128xf32>
    %166 = math.tanh %165 : vector<8x128xf32>
    %cst_56 = arith.constant 1.000000e+00 : f32
    %167 = vector.broadcast %cst_56 : f32 to vector<8x128xf32>
    %168 = arith.subf %167, %157 : vector<8x128xf32>
    %169 = arith.mulf %168, %166 : vector<8x128xf32>
    %170 = arith.mulf %157, %133 : vector<8x128xf32>
    %171 = arith.addf %169, %170 : vector<8x128xf32>
    %c0_57 = arith.constant 0 : index
    %c0_58 = arith.constant 0 : index
    %172 = vector.load %arg1[%c0_57, %c0_58] : memref<8x1xi32, #tpu.memory_space<vmem>>, vector<8x1xi32>
    %173 = vector.broadcast %135 : i32 to vector<8x1xi32>
    %174 = arith.cmpi slt, %173, %172 : vector<8x1xi32>
    %175 = vector.shape_cast %174 : vector<8x1xi1> to vector<8x1xi1>
    %176 = vector.broadcast %175 : vector<8x1xi1> to vector<8x128xi1>
    %177 = arith.select %176, %171, %133 : vector<8x128xi1>, vector<8x128xf32>
    %c4_i32 = arith.constant 4 : i32
    %c7_i32_59 = arith.constant 7 : i32
    %178 = arith.subi %c7_i32_59, %c4_i32 : i32
    %179 = arith.select %0, %178, %c4_i32 : i32
    %180 = arith.index_cast %179 : i32 to index
    %c0_60 = arith.constant 0 : index
    %c0_61 = arith.constant 0 : index
    %181 = vector.load %arg2[%180, %c0_60, %c0_61] : memref<8x8x384xf32, #tpu.memory_space<vmem>>, vector<1x8x384xf32>
    %182 = vector.shape_cast %181 : vector<1x8x384xf32> to vector<8x384xf32>
    %c0_62 = arith.constant 0 : index
    %c0_63 = arith.constant 0 : index
    %c0_64 = arith.constant 0 : index
    %183 = vector.load %arg3[%c0_62, %c0_63, %c0_64] : memref<1x128x384xf32, #tpu.memory_space<vmem>>, vector<1x128x384xf32>
    %184 = vector.shape_cast %183 : vector<1x128x384xf32> to vector<128x384xf32>
    %cst_65 = arith.constant dense<0.000000e+00> : vector<8x384xf32>
    %185 = tpu.matmul %177, %184, %cst_65 {dimension_numbers = #tpu.dot_dimension_numbers<[1], [0], [0], [1], [0, 0, 1, 1], [], []>} : vector<8x128xf32>, vector<128x384xf32>, vector<8x384xf32> -> vector<8x384xf32>
    %186 = vector.extract_strided_slice %182 {offsets = [0, 0], sizes = [8, 128], strides = [1, 1]} : vector<8x384xf32> to vector<8x128xf32>
    %187 = vector.extract_strided_slice %185 {offsets = [0, 0], sizes = [8, 128], strides = [1, 1]} : vector<8x384xf32> to vector<8x128xf32>
    %188 = arith.addf %186, %187 : vector<8x128xf32>
    %189 = arith.negf %188 : vector<8x128xf32>
    %190 = math.exp %189 : vector<8x128xf32>
    %cst_66 = arith.constant 1.000000e+00 : f32
    %191 = vector.broadcast %cst_66 : f32 to vector<8x128xf32>
    %192 = arith.addf %191, %190 : vector<8x128xf32>
    %193 = arith.divf %191, %192 : vector<8x128xf32>
    %194 = vector.extract_strided_slice %182 {offsets = [0, 128], sizes = [8, 128], strides = [1, 1]} : vector<8x384xf32> to vector<8x128xf32>
    %195 = vector.extract_strided_slice %185 {offsets = [0, 128], sizes = [8, 128], strides = [1, 1]} : vector<8x384xf32> to vector<8x128xf32>
    %196 = arith.addf %194, %195 : vector<8x128xf32>
    %197 = arith.negf %196 : vector<8x128xf32>
    %198 = math.exp %197 : vector<8x128xf32>
    %cst_67 = arith.constant 1.000000e+00 : f32
    %199 = vector.broadcast %cst_67 : f32 to vector<8x128xf32>
    %200 = arith.addf %199, %198 : vector<8x128xf32>
    %201 = arith.divf %199, %200 : vector<8x128xf32>
    %202 = vector.extract_strided_slice %182 {offsets = [0, 256], sizes = [8, 128], strides = [1, 1]} : vector<8x384xf32> to vector<8x128xf32>
    %203 = vector.extract_strided_slice %185 {offsets = [0, 256], sizes = [8, 128], strides = [1, 1]} : vector<8x384xf32> to vector<8x128xf32>
    %c0_68 = arith.constant 0 : index
    %c0_69 = arith.constant 0 : index
    %c0_70 = arith.constant 0 : index
    %204 = vector.load %arg4[%c0_68, %c0_69, %c0_70] : memref<1x1x128xf32, #tpu.memory_space<vmem>>, vector<1x1x128xf32>
    %205 = vector.shape_cast %204 : vector<1x1x128xf32> to vector<1x128xf32>
    %206 = vector.broadcast %205 : vector<1x128xf32> to vector<8x128xf32>
    %207 = arith.addf %203, %206 : vector<8x128xf32>
    %208 = arith.mulf %193, %207 : vector<8x128xf32>
    %209 = arith.addf %202, %208 : vector<8x128xf32>
    %210 = math.tanh %209 : vector<8x128xf32>
    %cst_71 = arith.constant 1.000000e+00 : f32
    %211 = vector.broadcast %cst_71 : f32 to vector<8x128xf32>
    %212 = arith.subf %211, %201 : vector<8x128xf32>
    %213 = arith.mulf %212, %210 : vector<8x128xf32>
    %214 = arith.mulf %201, %177 : vector<8x128xf32>
    %215 = arith.addf %213, %214 : vector<8x128xf32>
    %c0_72 = arith.constant 0 : index
    %c0_73 = arith.constant 0 : index
    %216 = vector.load %arg1[%c0_72, %c0_73] : memref<8x1xi32, #tpu.memory_space<vmem>>, vector<8x1xi32>
    %217 = vector.broadcast %179 : i32 to vector<8x1xi32>
    %218 = arith.cmpi slt, %217, %216 : vector<8x1xi32>
    %219 = vector.shape_cast %218 : vector<8x1xi1> to vector<8x1xi1>
    %220 = vector.broadcast %219 : vector<8x1xi1> to vector<8x128xi1>
    %221 = arith.select %220, %215, %177 : vector<8x128xi1>, vector<8x128xf32>
    %c5_i32 = arith.constant 5 : i32
    %c7_i32_74 = arith.constant 7 : i32
    %222 = arith.subi %c7_i32_74, %c5_i32 : i32
    %223 = arith.select %0, %222, %c5_i32 : i32
    %224 = arith.index_cast %223 : i32 to index
    %c0_75 = arith.constant 0 : index
    %c0_76 = arith.constant 0 : index
    %225 = vector.load %arg2[%224, %c0_75, %c0_76] : memref<8x8x384xf32, #tpu.memory_space<vmem>>, vector<1x8x384xf32>
    %226 = vector.shape_cast %225 : vector<1x8x384xf32> to vector<8x384xf32>
    %c0_77 = arith.constant 0 : index
    %c0_78 = arith.constant 0 : index
    %c0_79 = arith.constant 0 : index
    %227 = vector.load %arg3[%c0_77, %c0_78, %c0_79] : memref<1x128x384xf32, #tpu.memory_space<vmem>>, vector<1x128x384xf32>
    %228 = vector.shape_cast %227 : vector<1x128x384xf32> to vector<128x384xf32>
    %cst_80 = arith.constant dense<0.000000e+00> : vector<8x384xf32>
    %229 = tpu.matmul %221, %228, %cst_80 {dimension_numbers = #tpu.dot_dimension_numbers<[1], [0], [0], [1], [0, 0, 1, 1], [], []>} : vector<8x128xf32>, vector<128x384xf32>, vector<8x384xf32> -> vector<8x384xf32>
    %230 = vector.extract_strided_slice %226 {offsets = [0, 0], sizes = [8, 128], strides = [1, 1]} : vector<8x384xf32> to vector<8x128xf32>
    %231 = vector.extract_strided_slice %229 {offsets = [0, 0], sizes = [8, 128], strides = [1, 1]} : vector<8x384xf32> to vector<8x128xf32>
    %232 = arith.addf %230, %231 : vector<8x128xf32>
    %233 = arith.negf %232 : vector<8x128xf32>
    %234 = math.exp %233 : vector<8x128xf32>
    %cst_81 = arith.constant 1.000000e+00 : f32
    %235 = vector.broadcast %cst_81 : f32 to vector<8x128xf32>
    %236 = arith.addf %235, %234 : vector<8x128xf32>
    %237 = arith.divf %235, %236 : vector<8x128xf32>
    %238 = vector.extract_strided_slice %226 {offsets = [0, 128], sizes = [8, 128], strides = [1, 1]} : vector<8x384xf32> to vector<8x128xf32>
    %239 = vector.extract_strided_slice %229 {offsets = [0, 128], sizes = [8, 128], strides = [1, 1]} : vector<8x384xf32> to vector<8x128xf32>
    %240 = arith.addf %238, %239 : vector<8x128xf32>
    %241 = arith.negf %240 : vector<8x128xf32>
    %242 = math.exp %241 : vector<8x128xf32>
    %cst_82 = arith.constant 1.000000e+00 : f32
    %243 = vector.broadcast %cst_82 : f32 to vector<8x128xf32>
    %244 = arith.addf %243, %242 : vector<8x128xf32>
    %245 = arith.divf %243, %244 : vector<8x128xf32>
    %246 = vector.extract_strided_slice %226 {offsets = [0, 256], sizes = [8, 128], strides = [1, 1]} : vector<8x384xf32> to vector<8x128xf32>
    %247 = vector.extract_strided_slice %229 {offsets = [0, 256], sizes = [8, 128], strides = [1, 1]} : vector<8x384xf32> to vector<8x128xf32>
    %c0_83 = arith.constant 0 : index
    %c0_84 = arith.constant 0 : index
    %c0_85 = arith.constant 0 : index
    %248 = vector.load %arg4[%c0_83, %c0_84, %c0_85] : memref<1x1x128xf32, #tpu.memory_space<vmem>>, vector<1x1x128xf32>
    %249 = vector.shape_cast %248 : vector<1x1x128xf32> to vector<1x128xf32>
    %250 = vector.broadcast %249 : vector<1x128xf32> to vector<8x128xf32>
    %251 = arith.addf %247, %250 : vector<8x128xf32>
    %252 = arith.mulf %237, %251 : vector<8x128xf32>
    %253 = arith.addf %246, %252 : vector<8x128xf32>
    %254 = math.tanh %253 : vector<8x128xf32>
    %cst_86 = arith.constant 1.000000e+00 : f32
    %255 = vector.broadcast %cst_86 : f32 to vector<8x128xf32>
    %256 = arith.subf %255, %245 : vector<8x128xf32>
    %257 = arith.mulf %256, %254 : vector<8x128xf32>
    %258 = arith.mulf %245, %221 : vector<8x128xf32>
    %259 = arith.addf %257, %258 : vector<8x128xf32>
    %c0_87 = arith.constant 0 : index
    %c0_88 = arith.constant 0 : index
    %260 = vector.load %arg1[%c0_87, %c0_88] : memref<8x1xi32, #tpu.memory_space<vmem>>, vector<8x1xi32>
    %261 = vector.broadcast %223 : i32 to vector<8x1xi32>
    %262 = arith.cmpi slt, %261, %260 : vector<8x1xi32>
    %263 = vector.shape_cast %262 : vector<8x1xi1> to vector<8x1xi1>
    %264 = vector.broadcast %263 : vector<8x1xi1> to vector<8x128xi1>
    %265 = arith.select %264, %259, %221 : vector<8x128xi1>, vector<8x128xf32>
    %c6_i32 = arith.constant 6 : i32
    %c7_i32_89 = arith.constant 7 : i32
    %266 = arith.subi %c7_i32_89, %c6_i32 : i32
    %267 = arith.select %0, %266, %c6_i32 : i32
    %268 = arith.index_cast %267 : i32 to index
    %c0_90 = arith.constant 0 : index
    %c0_91 = arith.constant 0 : index
    %269 = vector.load %arg2[%268, %c0_90, %c0_91] : memref<8x8x384xf32, #tpu.memory_space<vmem>>, vector<1x8x384xf32>
    %270 = vector.shape_cast %269 : vector<1x8x384xf32> to vector<8x384xf32>
    %c0_92 = arith.constant 0 : index
    %c0_93 = arith.constant 0 : index
    %c0_94 = arith.constant 0 : index
    %271 = vector.load %arg3[%c0_92, %c0_93, %c0_94] : memref<1x128x384xf32, #tpu.memory_space<vmem>>, vector<1x128x384xf32>
    %272 = vector.shape_cast %271 : vector<1x128x384xf32> to vector<128x384xf32>
    %cst_95 = arith.constant dense<0.000000e+00> : vector<8x384xf32>
    %273 = tpu.matmul %265, %272, %cst_95 {dimension_numbers = #tpu.dot_dimension_numbers<[1], [0], [0], [1], [0, 0, 1, 1], [], []>} : vector<8x128xf32>, vector<128x384xf32>, vector<8x384xf32> -> vector<8x384xf32>
    %274 = vector.extract_strided_slice %270 {offsets = [0, 0], sizes = [8, 128], strides = [1, 1]} : vector<8x384xf32> to vector<8x128xf32>
    %275 = vector.extract_strided_slice %273 {offsets = [0, 0], sizes = [8, 128], strides = [1, 1]} : vector<8x384xf32> to vector<8x128xf32>
    %276 = arith.addf %274, %275 : vector<8x128xf32>
    %277 = arith.negf %276 : vector<8x128xf32>
    %278 = math.exp %277 : vector<8x128xf32>
    %cst_96 = arith.constant 1.000000e+00 : f32
    %279 = vector.broadcast %cst_96 : f32 to vector<8x128xf32>
    %280 = arith.addf %279, %278 : vector<8x128xf32>
    %281 = arith.divf %279, %280 : vector<8x128xf32>
    %282 = vector.extract_strided_slice %270 {offsets = [0, 128], sizes = [8, 128], strides = [1, 1]} : vector<8x384xf32> to vector<8x128xf32>
    %283 = vector.extract_strided_slice %273 {offsets = [0, 128], sizes = [8, 128], strides = [1, 1]} : vector<8x384xf32> to vector<8x128xf32>
    %284 = arith.addf %282, %283 : vector<8x128xf32>
    %285 = arith.negf %284 : vector<8x128xf32>
    %286 = math.exp %285 : vector<8x128xf32>
    %cst_97 = arith.constant 1.000000e+00 : f32
    %287 = vector.broadcast %cst_97 : f32 to vector<8x128xf32>
    %288 = arith.addf %287, %286 : vector<8x128xf32>
    %289 = arith.divf %287, %288 : vector<8x128xf32>
    %290 = vector.extract_strided_slice %270 {offsets = [0, 256], sizes = [8, 128], strides = [1, 1]} : vector<8x384xf32> to vector<8x128xf32>
    %291 = vector.extract_strided_slice %273 {offsets = [0, 256], sizes = [8, 128], strides = [1, 1]} : vector<8x384xf32> to vector<8x128xf32>
    %c0_98 = arith.constant 0 : index
    %c0_99 = arith.constant 0 : index
    %c0_100 = arith.constant 0 : index
    %292 = vector.load %arg4[%c0_98, %c0_99, %c0_100] : memref<1x1x128xf32, #tpu.memory_space<vmem>>, vector<1x1x128xf32>
    %293 = vector.shape_cast %292 : vector<1x1x128xf32> to vector<1x128xf32>
    %294 = vector.broadcast %293 : vector<1x128xf32> to vector<8x128xf32>
    %295 = arith.addf %291, %294 : vector<8x128xf32>
    %296 = arith.mulf %281, %295 : vector<8x128xf32>
    %297 = arith.addf %290, %296 : vector<8x128xf32>
    %298 = math.tanh %297 : vector<8x128xf32>
    %cst_101 = arith.constant 1.000000e+00 : f32
    %299 = vector.broadcast %cst_101 : f32 to vector<8x128xf32>
    %300 = arith.subf %299, %289 : vector<8x128xf32>
    %301 = arith.mulf %300, %298 : vector<8x128xf32>
    %302 = arith.mulf %289, %265 : vector<8x128xf32>
    %303 = arith.addf %301, %302 : vector<8x128xf32>
    %c0_102 = arith.constant 0 : index
    %c0_103 = arith.constant 0 : index
    %304 = vector.load %arg1[%c0_102, %c0_103] : memref<8x1xi32, #tpu.memory_space<vmem>>, vector<8x1xi32>
    %305 = vector.broadcast %267 : i32 to vector<8x1xi32>
    %306 = arith.cmpi slt, %305, %304 : vector<8x1xi32>
    %307 = vector.shape_cast %306 : vector<8x1xi1> to vector<8x1xi1>
    %308 = vector.broadcast %307 : vector<8x1xi1> to vector<8x128xi1>
    %309 = arith.select %308, %303, %265 : vector<8x128xi1>, vector<8x128xf32>
    %c7_i32_104 = arith.constant 7 : i32
    %c7_i32_105 = arith.constant 7 : i32
    %310 = arith.subi %c7_i32_105, %c7_i32_104 : i32
    %311 = arith.select %0, %310, %c7_i32_104 : i32
    %312 = arith.index_cast %311 : i32 to index
    %c0_106 = arith.constant 0 : index
    %c0_107 = arith.constant 0 : index
    %313 = vector.load %arg2[%312, %c0_106, %c0_107] : memref<8x8x384xf32, #tpu.memory_space<vmem>>, vector<1x8x384xf32>
    %314 = vector.shape_cast %313 : vector<1x8x384xf32> to vector<8x384xf32>
    %c0_108 = arith.constant 0 : index
    %c0_109 = arith.constant 0 : index
    %c0_110 = arith.constant 0 : index
    %315 = vector.load %arg3[%c0_108, %c0_109, %c0_110] : memref<1x128x384xf32, #tpu.memory_space<vmem>>, vector<1x128x384xf32>
    %316 = vector.shape_cast %315 : vector<1x128x384xf32> to vector<128x384xf32>
    %cst_111 = arith.constant dense<0.000000e+00> : vector<8x384xf32>
    %317 = tpu.matmul %309, %316, %cst_111 {dimension_numbers = #tpu.dot_dimension_numbers<[1], [0], [0], [1], [0, 0, 1, 1], [], []>} : vector<8x128xf32>, vector<128x384xf32>, vector<8x384xf32> -> vector<8x384xf32>
    %318 = vector.extract_strided_slice %314 {offsets = [0, 0], sizes = [8, 128], strides = [1, 1]} : vector<8x384xf32> to vector<8x128xf32>
    %319 = vector.extract_strided_slice %317 {offsets = [0, 0], sizes = [8, 128], strides = [1, 1]} : vector<8x384xf32> to vector<8x128xf32>
    %320 = arith.addf %318, %319 : vector<8x128xf32>
    %321 = arith.negf %320 : vector<8x128xf32>
    %322 = math.exp %321 : vector<8x128xf32>
    %cst_112 = arith.constant 1.000000e+00 : f32
    %323 = vector.broadcast %cst_112 : f32 to vector<8x128xf32>
    %324 = arith.addf %323, %322 : vector<8x128xf32>
    %325 = arith.divf %323, %324 : vector<8x128xf32>
    %326 = vector.extract_strided_slice %314 {offsets = [0, 128], sizes = [8, 128], strides = [1, 1]} : vector<8x384xf32> to vector<8x128xf32>
    %327 = vector.extract_strided_slice %317 {offsets = [0, 128], sizes = [8, 128], strides = [1, 1]} : vector<8x384xf32> to vector<8x128xf32>
    %328 = arith.addf %326, %327 : vector<8x128xf32>
    %329 = arith.negf %328 : vector<8x128xf32>
    %330 = math.exp %329 : vector<8x128xf32>
    %cst_113 = arith.constant 1.000000e+00 : f32
    %331 = vector.broadcast %cst_113 : f32 to vector<8x128xf32>
    %332 = arith.addf %331, %330 : vector<8x128xf32>
    %333 = arith.divf %331, %332 : vector<8x128xf32>
    %334 = vector.extract_strided_slice %314 {offsets = [0, 256], sizes = [8, 128], strides = [1, 1]} : vector<8x384xf32> to vector<8x128xf32>
    %335 = vector.extract_strided_slice %317 {offsets = [0, 256], sizes = [8, 128], strides = [1, 1]} : vector<8x384xf32> to vector<8x128xf32>
    %c0_114 = arith.constant 0 : index
    %c0_115 = arith.constant 0 : index
    %c0_116 = arith.constant 0 : index
    %336 = vector.load %arg4[%c0_114, %c0_115, %c0_116] : memref<1x1x128xf32, #tpu.memory_space<vmem>>, vector<1x1x128xf32>
    %337 = vector.shape_cast %336 : vector<1x1x128xf32> to vector<1x128xf32>
    %338 = vector.broadcast %337 : vector<1x128xf32> to vector<8x128xf32>
    %339 = arith.addf %335, %338 : vector<8x128xf32>
    %340 = arith.mulf %325, %339 : vector<8x128xf32>
    %341 = arith.addf %334, %340 : vector<8x128xf32>
    %342 = math.tanh %341 : vector<8x128xf32>
    %cst_117 = arith.constant 1.000000e+00 : f32
    %343 = vector.broadcast %cst_117 : f32 to vector<8x128xf32>
    %344 = arith.subf %343, %333 : vector<8x128xf32>
    %345 = arith.mulf %344, %342 : vector<8x128xf32>
    %346 = arith.mulf %333, %309 : vector<8x128xf32>
    %347 = arith.addf %345, %346 : vector<8x128xf32>
    %c0_118 = arith.constant 0 : index
    %c0_119 = arith.constant 0 : index
    %348 = vector.load %arg1[%c0_118, %c0_119] : memref<8x1xi32, #tpu.memory_space<vmem>>, vector<8x1xi32>
    %349 = vector.broadcast %311 : i32 to vector<8x1xi32>
    %350 = arith.cmpi slt, %349, %348 : vector<8x1xi32>
    %351 = vector.shape_cast %350 : vector<8x1xi1> to vector<8x1xi1>
    %352 = vector.broadcast %351 : vector<8x1xi1> to vector<8x128xi1>
    %353 = arith.select %352, %347, %309 : vector<8x128xi1>, vector<8x128xf32>
    %c8_i32 = arith.constant 8 : i32
    %c0_120 = arith.constant 0 : index
    %c0_121 = arith.constant 0 : index
    %354 = vector.load %arg5[%c0_120, %c0_121] : memref<8x128xf32, #tpu.memory_space<vmem>>, vector<8x128xf32>
    tpu.vector_store %arg5[%c0_120, %c0_121], %353 {strides = array<i32>} : memref<8x128xf32, #tpu.memory_space<vmem>>, vector<8x128xf32>,
    return
  }
  func.func @transform_0(%arg0: i32) -> (i32, i32) {
    %c0_i32 = arith.constant 0 : i32
    %c0_i32_0 = arith.constant 0 : i32
    %c0_i32_1 = arith.constant 0 : i32
    return %c0_i32, %c0_i32_0 : i32, i32
  }
  func.func @transform_1(%arg0: i32) -> (i32, i32, i32) {
    %c0_i32 = arith.constant 0 : i32
    %c0_i32_0 = arith.constant 0 : i32
    %c0_i32_1 = arith.constant 0 : i32
    return %c0_i32, %c0_i32_0, %arg0 : i32, i32, i32
  }
  func.func @transform_2(%arg0: i32) -> (i32, i32, i32) {
    %c0_i32 = arith.constant 0 : i32
    %c0_i32_0 = arith.constant 0 : i32
    %c0_i32_1 = arith.constant 0 : i32
    return %arg0, %c0_i32, %c0_i32_0 : i32, i32, i32
  }
  func.func @transform_3(%arg0: i32) -> (i32, i32, i32) {
    %c0_i32 = arith.constant 0 : i32
    %c0_i32_0 = arith.constant 0 : i32
    %c0_i32_1 = arith.constant 0 : i32
    return %arg0, %c0_i32, %c0_i32_0 : i32, i32, i32
  }
  func.func @transform_4(%arg0: i32) -> (i32, i32) {
    %c0_i32 = arith.constant 0 : i32
    %c0_i32_0 = arith.constant 0 : i32
    return %c0_i32, %arg0 : i32, i32
  }
}

module attributes {stable_mosaic.version = 11 : i64} {
  func.func @_linear_kernel(%arg0: i32, %arg1: memref<8x256xf32, #tpu.memory_space<vmem>>, %arg2: memref<256x5xf32, #tpu.memory_space<vmem>>, %arg3: memref<1x5xf32, #tpu.memory_space<vmem>>, %arg4: memref<8x5xf32, #tpu.memory_space<vmem>>) attributes {dimension_semantics = [#tpu.dimension_semantics<parallel>], iteration_bounds = array<i64: 1>, scalar_prefetch = 0 : i64, scratch_operands = 0 : i64, tpu.core_type = #tpu.core_type<tc>, window_params = [{transform_indices = @transform_0, window_bounds = array<i64: 8, 256>}, {pipeline_mode = #tpu.pipeline_mode<synchronous>, transform_indices = @transform_1, window_bounds = array<i64: 256, 5>}, {pipeline_mode = #tpu.pipeline_mode<synchronous>, transform_indices = @transform_2, window_bounds = array<i64: 1, 5>}, {transform_indices = @transform_3, window_bounds = array<i64: 8, 5>}]} {
    %c0 = arith.constant 0 : index
    %c0_0 = arith.constant 0 : index
    %0 = vector.load %arg1[%c0, %c0_0] : memref<8x256xf32, #tpu.memory_space<vmem>>, vector<8x256xf32>
    %c0_1 = arith.constant 0 : index
    %c0_2 = arith.constant 0 : index
    %1 = vector.load %arg2[%c0_1, %c0_2] : memref<256x5xf32, #tpu.memory_space<vmem>>, vector<256x5xf32>
    %cst = arith.constant dense<0.000000e+00> : vector<8x5xf32>
    %2 = tpu.matmul %0, %1, %cst {dimension_numbers = #tpu.dot_dimension_numbers<[1], [0], [0], [1], [0, 0, 1, 1], [], []>} : vector<8x256xf32>, vector<256x5xf32>, vector<8x5xf32> -> vector<8x5xf32>
    %c0_3 = arith.constant 0 : index
    %c0_4 = arith.constant 0 : index
    %3 = vector.load %arg3[%c0_3, %c0_4] : memref<1x5xf32, #tpu.memory_space<vmem>>, vector<1x5xf32>
    %4 = vector.broadcast %3 : vector<1x5xf32> to vector<8x5xf32>
    %5 = arith.addf %2, %4 : vector<8x5xf32>
    %c0_5 = arith.constant 0 : index
    %c0_6 = arith.constant 0 : index
    %6 = vector.load %arg4[%c0_5, %c0_6] : memref<8x5xf32, #tpu.memory_space<vmem>>, vector<8x5xf32>
    tpu.vector_store %arg4[%c0_5, %c0_6], %5 {strides = array<i32>} : memref<8x5xf32, #tpu.memory_space<vmem>>, vector<8x5xf32>,
    return
  }
  func.func @transform_0(%arg0: i32) -> (i32, i32) {
    %c0_i32 = arith.constant 0 : i32
    %c0_i32_0 = arith.constant 0 : i32
    return %arg0, %c0_i32 : i32, i32
  }
  func.func @transform_1(%arg0: i32) -> (i32, i32) {
    %c0_i32 = arith.constant 0 : i32
    %c0_i32_0 = arith.constant 0 : i32
    %c0_i32_1 = arith.constant 0 : i32
    return %c0_i32, %c0_i32_0 : i32, i32
  }
  func.func @transform_2(%arg0: i32) -> (i32, i32) {
    %c0_i32 = arith.constant 0 : i32
    %c0_i32_0 = arith.constant 0 : i32
    %c0_i32_1 = arith.constant 0 : i32
    return %c0_i32, %c0_i32_0 : i32, i32
  }
  func.func @transform_3(%arg0: i32) -> (i32, i32) {
    %c0_i32 = arith.constant 0 : i32
    %c0_i32_0 = arith.constant 0 : i32
    return %arg0, %c0_i32 : i32, i32
  }
}

</mosaic_0001>

<bundles_post_ra>
// kernel: forward.5
= control target key start
LH: loop header
LB: loop body
LE: loop exit
PB: predicated region body
PF: predicated region fallthrough
CT: control target
= control target key end

     0   :  { %v547_v3 = vmov 0.0   ;;  %vm78_vm0 = vcmask 261120   ;;  %v48_v45 = vlaneseq  ;;  %s899_s1 = inlined_call_operand.vmem [shape: f32[32,768], index: 1, kind: input, shape index: {}]   ;;  %s900_s0 = inlined_call_operand.vmem [shape: f32[64,32], index: 0, kind: input, shape index: {}]   ;;  %s901_s2 = inlined_call_operand.vmem [shape: f32[1,768], index: 2, kind: input, shape index: {}]   ;;  %s902_s3 = inlined_call_operand.vmem [shape: f32[64,768], index: 3, kind: output, shape index: {}]  }
   0x1   :  { %v23_v0 = vld [vmem:[%s899_s1 + $0x8] sm:$0xff]  ;;  %v29_v1 = vld [vmem:[%s899_s1 + $0x38] sm:$0xff]  ;;  %v22_v2 = vld [vmem:[%s899_s1] sm:$0xff]  ;;  %167 = vmatprep.mubr.f32.mxu0 %v547_v3  ;;  %191 = vmatprep.mubr.f32.mxu1 %v547_v3 }
   0x2   :  { %v518_v4 = vpack.c.bf16 %v29_v1, %v23_v0  ;;  %v28_v5 = vld [vmem:[%s899_s1 + $0x30] sm:$0xff]  ;;  %v35_v6 = vld [vmem:[%s899_s1 + $0x68] sm:$0xff]  ;;  %v41_v7 = vld [vmem:[%s899_s1 + $0x98] sm:$0xff]  ;;  %v49_v46 = vshrl.u32 %v48_v45, 7 }
   0x3   :  { %v520_v8 = vpack.c.bf16 %v28_v5, %v22_v2  ;;  %v522_v9 = vpack.c.bf16 %v41_v7, %v35_v6  ;;  %v34_v10 = vld [vmem:[%s899_s1 + $0x60] sm:$0xff]  ;;  %v40_v11 = vld [vmem:[%s899_s1 + $0x90] sm:$0xff]  ;;  %v25_v12 = vld [vmem:[%s899_s1 + $0x18] sm:$0xff] }
   0x4   :  { %519 = vmatprep.subr.bf16.mxu0 %v518_v4  ;;  %542 = vmatprep.subr.bf16.mxu1 %v518_v4  ;;  %v31_v13 = vld [vmem:[%s899_s1 + $0x48] sm:$0xff]  ;;  %v524_v14 = vpack.c.bf16 %v40_v11, %v34_v10  ;;  %v33_v16 = vld [vmem:[%s899_s1 + $0x58] sm:$0xff]  ;;  %v24_v17 = vld [vmem:[%s899_s1 + $0x10] sm:$0xff]  ;;  %v50_v47 = vsub.s32 0, %v49_v46  ;;  %v54_v49 = vsub.s32 1, %v49_v46  ;;  %v58_v10 = vsub.s32 2, %v49_v46 }
   0x5   :  { %521 = vmatpush1.bf16.msra.mxu0 %v520_v8  ;;  %544 = vmatpush1.bf16.msra.mxu1 %v520_v8  ;;  %v27_v15 = vld [vmem:[%s899_s1 + $0x28] sm:$0xff]  ;;  %v526_v18 = vpack.c.bf16 %v31_v13, %v25_v12  ;;  %v30_v20 = vld [vmem:[%s899_s1 + $0x40] sm:$0xff]  ;;  %v32_v22 = vld [vmem:[%s899_s1 + $0x50] sm:$0xff]  ;;  %v66_v11 = vsub.s32 4, %v49_v46 }
   0x6   :  { %523 = vmatprep.subr.bf16.mxu0 %v522_v9  ;;  %543 = vmatprep.subr.bf16.mxu1 %v522_v9  ;;  %v534_v19 = vpack.c.bf16 %v33_v16, %v27_v15  ;;  %v26_v21 = vld [vmem:[%s899_s1 + $0x20] sm:$0xff]  ;;  %v37_v24 = vld [vmem:[%s899_s1 + $0x78] sm:$0xff]  ;;  %v43_v25 = vld [vmem:[%s899_s1 + $0xa8] sm:$0xff]  ;;  %v528_v27 = vpack.c.bf16 %v30_v20, %v24_v17  ;;  %v70_v15 = vsub.s32 5, %v49_v46 }
   0x7   :  { %v14_v23 = vld [vmem:[%s900_s0] sm:$0xff]  ;;  %v536_v28 = vpack.c.bf16 %v32_v22, %v26_v21  ;;  %v39_v29 = vld [vmem:[%s899_s1 + $0x88] sm:$0xff]  ;;  %v45_v30 = vld [vmem:[%s899_s1 + $0xb8] sm:$0xff]  ;;  %v530_v32 = vpack.c.bf16 %v43_v25, %v37_v24 }
   0x8   :  { %v18_v26 = vld [vmem:[%s900_s0 + $0x20] sm:$0xff]  ;;  %v36_v31 = vld [vmem:[%s899_s1 + $0x70] sm:$0xff]  ;;  %v538_v33 = vpack.c.bf16 %v45_v30, %v39_v29  ;;  %v15_v37 = vld [vmem:[%s900_s0 + $0x8] sm:$0xff] }
   0x9   :  { %525 = vmatpush1.bf16.msra.mxu0 %v524_v14  ;;  %545 = vmatpush1.bf16.msra.mxu1 %v524_v14  ;;  %v42_v34 = vld [vmem:[%s899_s1 + $0xa0] sm:$0xff]  ;;  %v44_v36 = vld [vmem:[%s899_s1 + $0xb0] sm:$0xff]  ;;  %v19_v38 = vld [vmem:[%s900_s0 + $0x28] sm:$0xff]  ;;  %v62_v14 = vsub.s32 3, %v49_v46 }
   0xa   :  { %527 = vmatprep.subr.bf16.mxu1 %v526_v18  ;;  %535 = vmatprep.subr.bf16.mxu0 %v534_v19  ;;  %v38_v35 = vld [vmem:[%s899_s1 + $0x80] sm:$0xff]  ;;  %v532_v39 = vpack.c.bf16 %v42_v34, %v36_v31  ;;  %v16_v41 = vld [vmem:[%s900_s0 + $0x10] sm:$0xff]  ;;  %v17_v43 = vld [vmem:[%s900_s0 + $0x18] sm:$0xff] }
   0xb   :  { %v540_v40 = vpack.c.bf16 %v44_v36, %v38_v35  ;;  %v20_v42 = vld [vmem:[%s900_s0 + $0x30] sm:$0xff]  ;;  %v21_v44 = vld [vmem:[%s900_s0 + $0x38] sm:$0xff]  ;;  %v46_v48 = vld [vmem:[%s901_s2] sm:$0x3f] }
   0xc   :  { %494 = vmatmul.mubr.msk.f32.vlgmr.msra.gmra.mrb[0].mxu0 %vm78_vm0, %v14_v23  ;;  %498 = vmatmul.mubr.msk.f32.vlgmr.msra.gmra.mrb[0].mxu1 %vm78_vm0, %v18_v26  ;;  %v51_v50 = vrot.slane %v46_v48, %v50_v47  ;;  %v55_v51 = vrot.slane %v46_v48, %v54_v49  ;;  %v751_v22 = vrot.slane %v46_v48, %v58_v10 }
   0xd   :  { %529 = vmatpush1.bf16.msra.mxu1 %v528_v27  ;;  %537 = vmatpush1.bf16.msra.mxu0 %v536_v28  ;;  %v757_v27 = vrot.slane %v46_v48, %v70_v15 }
   0xe   :  { %173 = vmatprep.mubr.f32.mxu0 %v547_v3  ;;  %197 = vmatprep.mubr.f32.mxu1 %v547_v3 }
   0xf   :  { %531 = vmatprep.subr.bf16.mxu1 %v530_v32  ;;  %539 = vmatprep.subr.bf16.mxu0 %v538_v33 }
  0x10   :  { %495 = vmatmul.mubr.msk.f32.gmra.mrb[2].mxu0 %vm78_vm0, %v15_v37  ;;  %499 = vmatmul.mubr.msk.f32.gmra.mrb[2].mxu1 %vm78_vm0, %v19_v38 }
  0x11   :  { %179 = vmatprep.mubr.f32.mxu0 %v547_v3  ;;  %203 = vmatprep.mubr.f32.mxu1 %v547_v3 }
  0x12   :  { %533 = vmatpush1.bf16.msra.mxu1 %v532_v39  ;;  %541 = vmatpush1.bf16.msra.mxu0 %v540_v40 }
  0x14   :  { %496 = vmatmul.mubr.msk.f32.gmra.mrb[4].mxu0 %vm78_vm0, %v16_v41  ;;  %500 = vmatmul.mubr.msk.f32.gmra.mrb[4].mxu1 %vm78_vm0, %v20_v42 }
  0x15   :  { %185 = vmatprep.mubr.f32.mxu0 %v547_v3  ;;  %209 = vmatprep.mubr.f32.mxu1 %v547_v3 }
  0x18   :  { %497 = vmatmul.mubr.msk.f32.gmra.mrb[6].mxu0 %vm78_vm0, %v17_v43  ;;  %501 = vmatmul.mubr.msk.f32.gmra.mrb[6].mxu1 %vm78_vm0, %v21_v44 }
  0x19   :  { %280 = vmatprep.mubr.f32.mxu1 %v547_v3  ;;  %393 = vmatprep.mubr.f32.mxu0 %v547_v3 }
  0x1c   :  { %502 = vmatmul.mubr.msk.f32.vlgmr.msra.gmra.mrb[8].mxu1 %vm78_vm0, %v14_v23  ;;  %510 = vmatmul.mubr.msk.f32.vlgmr.msra.gmra.mrb[8].mxu0 %vm78_vm0, %v14_v23  ;;  %v753_v23 = vrot.slane %v46_v48, %v66_v11 }
  0x1d   :  { %286 = vmatprep.mubr.f32.mxu1 %v547_v3  ;;  %399 = vmatprep.mubr.f32.mxu0 %v547_v3 }
  0x20   :  { %503 = vmatmul.mubr.msk.f32.gmra.mrb[10].mxu1 %vm78_vm0, %v15_v37  ;;  %511 = vmatmul.mubr.msk.f32.gmra.mrb[10].mxu0 %vm78_vm0, %v15_v37 }
  0x21   :  { %292 = vmatprep.mubr.f32.mxu1 %v547_v3  ;;  %405 = vmatprep.mubr.f32.mxu0 %v547_v3 }
  0x24   :  { %504 = vmatmul.mubr.msk.f32.gmra.mrb[12].mxu1 %vm78_vm0, %v16_v41  ;;  %512 = vmatmul.mubr.msk.f32.gmra.mrb[12].mxu0 %vm78_vm0, %v16_v41 }
  0x25   :  { %298 = vmatprep.mubr.f32.mxu1 %v547_v3  ;;  %411 = vmatprep.mubr.f32.mxu0 %v547_v3 }
  0x28   :  { %505 = vmatmul.mubr.msk.f32.gmra.mrb[14].mxu1 %vm78_vm0, %v17_v43  ;;  %513 = vmatmul.mubr.msk.f32.gmra.mrb[14].mxu0 %vm78_vm0, %v17_v43 }
  0x29   :  { %304 = vmatprep.mubr.f32.mxu1 %v547_v3  ;;  %417 = vmatprep.mubr.f32.mxu0 %v547_v3 }
  0x2c   :  { %506 = vmatmul.mubr.msk.f32.gmra.mrb[16].mxu1 %vm78_vm0, %v18_v26  ;;  %514 = vmatmul.mubr.msk.f32.gmra.mrb[16].mxu0 %vm78_vm0, %v18_v26  ;;  %v755_v26 = vrot.slane %v46_v48, %v62_v14 }
  0x2d   :  { %310 = vmatprep.mubr.f32.mxu1 %v547_v3  ;;  %423 = vmatprep.mubr.f32.mxu0 %v547_v3 }
  0x30   :  { %507 = vmatmul.mubr.msk.f32.gmra.mrb[18].mxu1 %vm78_vm0, %v19_v38  ;;  %515 = vmatmul.mubr.msk.f32.gmra.mrb[18].mxu0 %vm78_vm0, %v19_v38 }
  0x31   :  { %316 = vmatprep.mubr.f32.mxu1 %v547_v3  ;;  %429 = vmatprep.mubr.f32.mxu0 %v547_v3 }
  0x34   :  { %508 = vmatmul.mubr.msk.f32.gmra.mrb[20].mxu1 %vm78_vm0, %v20_v42  ;;  %516 = vmatmul.mubr.msk.f32.gmra.mrb[20].mxu0 %vm78_vm0, %v20_v42 }
  0x35   :  { %322 = vmatprep.mubr.f32.mxu1 %v547_v3  ;;  %435 = vmatprep.mubr.f32.mxu0 %v547_v3 }
  0x38   :  { %509 = vmatmul.mubr.msk.f32.gmra.mrb[22].mxu1 %vm78_vm0, %v21_v44  ;;  %517 = vmatmul.mubr.msk.f32.gmra.mrb[22].mxu0 %vm78_vm0, %v21_v44 }
  0xdf   :  { %v169_v52 = vpop.f32.mrb[0].mxu0  ;;  %v193_v53 = vpop.f32.mrb[0].mxu1 }
  0xe0   :  { %v170_v54 = vadd.f32 %v169_v52, %v51_v50  ;;  %v194_v55 = vadd.f32 %v193_v53, %v51_v50  ;;  %v171_v56 = vpop.f32.mrb[1].mxu0  ;;  %v195_v57 = vpop.f32.mrb[1].mxu1 }
  0xe1   :  { %v172_v58 = vadd.f32 %v171_v56, %v55_v51  ;;  %v196_v59 = vadd.f32 %v195_v57, %v55_v51 }
  0xe2   :  { %442 = vst [vmem:[%s902_s3] sm:$0xff] %v170_v54  ;;  %466 = vst [vmem:[%s902_s3 + $0xc0] sm:$0xff] %v194_v55 }
  0xe3   :  { %443 = vst [vmem:[%s902_s3 + $0x8] sm:$0xff] %v172_v58  ;;  %467 = vst [vmem:[%s902_s3 + $0xc8] sm:$0xff] %v196_v59  ;;  %v175_v60 = vpop.f32.mrb[2].mxu0  ;;  %v199_v61 = vpop.f32.mrb[2].mxu1 }
  0xe4   :  { %v176_v62 = vadd.f32 %v175_v60, %v51_v50  ;;  %v200_v63 = vadd.f32 %v199_v61, %v51_v50  ;;  %v177_v0 = vpop.f32.mrb[3].mxu0  ;;  %v201_v1 = vpop.f32.mrb[3].mxu1 }
  0xe5   :  { %v178_v2 = vadd.f32 %v177_v0, %v55_v51  ;;  %v202_v3 = vadd.f32 %v201_v1, %v55_v51 }
  0xe6   :  { %448 = vst [vmem:[%s902_s3 + $0x30] sm:$0xff] %v176_v62  ;;  %472 = vst [vmem:[%s902_s3 + $0xf0] sm:$0xff] %v200_v63 }
  0xe7   :  { %449 = vst [vmem:[%s902_s3 + $0x38] sm:$0xff] %v178_v2  ;;  %473 = vst [vmem:[%s902_s3 + $0xf8] sm:$0xff] %v202_v3  ;;  %v181_v4 = vpop.f32.mrb[4].mxu0  ;;  %v205_v5 = vpop.f32.mrb[4].mxu1 }
  0xe8   :  { %v182_v6 = vadd.f32 %v181_v4, %v51_v50  ;;  %v206_v7 = vadd.f32 %v205_v5, %v51_v50  ;;  %v183_v8 = vpop.f32.mrb[5].mxu0  ;;  %v207_v9 = vpop.f32.mrb[5].mxu1 }
  0xe9   :  { %v184_v12 = vadd.f32 %v183_v8, %v55_v51  ;;  %v208_v13 = vadd.f32 %v207_v9, %v55_v51 }
  0xea   :  { %454 = vst [vmem:[%s902_s3 + $0x60] sm:$0xff] %v182_v6  ;;  %478 = vst [vmem:[%s902_s3 + $0x120] sm:$0xff] %v206_v7 }
  0xeb   :  { %455 = vst [vmem:[%s902_s3 + $0x68] sm:$0xff] %v184_v12  ;;  %479 = vst [vmem:[%s902_s3 + $0x128] sm:$0xff] %v208_v13  ;;  %v187_v16 = vpop.f32.mrb[6].mxu0  ;;  %v211_v17 = vpop.f32.mrb[6].mxu1 }
  0xec   :  { %v188_v18 = vadd.f32 %v187_v16, %v51_v50  ;;  %v212_v19 = vadd.f32 %v211_v17, %v51_v50  ;;  %v189_v20 = vpop.f32.mrb[7].mxu0  ;;  %v213_v21 = vpop.f32.mrb[7].mxu1 }
  0xed   :  { %v190_v24 = vadd.f32 %v189_v20, %v55_v51  ;;  %v214_v25 = vadd.f32 %v213_v21, %v55_v51 }
  0xee   :  { %460 = vst [vmem:[%s902_s3 + $0x90] sm:$0xff] %v188_v18  ;;  %484 = vst [vmem:[%s902_s3 + $0x150] sm:$0xff] %v212_v19 }
  0xef   :  { %461 = vst [vmem:[%s902_s3 + $0x98] sm:$0xff] %v190_v24  ;;  %485 = vst [vmem:[%s902_s3 + $0x158] sm:$0xff] %v214_v25  ;;  %v282_v28 = vpop.f32.mrb[8].mxu1  ;;  %v395_v29 = vpop.f32.mrb[8].mxu0 }
  0xf0   :  { %v283_v30 = vadd.f32 %v282_v28, %v751_v22  ;;  %v396_v31 = vadd.f32 %v395_v29, %v753_v23  ;;  %v284_v32 = vpop.f32.mrb[9].mxu1  ;;  %v397_v33 = vpop.f32.mrb[9].mxu0 }
  0xf1   :  { %v285_v34 = vadd.f32 %v284_v32, %v755_v26  ;;  %v398_v35 = vadd.f32 %v397_v33, %v757_v27 }
  0xf2   :  { %444 = vst [vmem:[%s902_s3 + $0x10] sm:$0xff] %v283_v30  ;;  %446 = vst [vmem:[%s902_s3 + $0x20] sm:$0xff] %v396_v31 }
  0xf3   :  { %445 = vst [vmem:[%s902_s3 + $0x18] sm:$0xff] %v285_v34  ;;  %447 = vst [vmem:[%s902_s3 + $0x28] sm:$0xff] %v398_v35  ;;  %v288_v36 = vpop.f32.mrb[10].mxu1  ;;  %v401_v37 = vpop.f32.mrb[10].mxu0 }
  0xf4   :  { %v289_v38 = vadd.f32 %v288_v36, %v751_v22  ;;  %v402_v39 = vadd.f32 %v401_v37, %v753_v23  ;;  %v290_v40 = vpop.f32.mrb[11].mxu1  ;;  %v403_v41 = vpop.f32.mrb[11].mxu0 }
  0xf5   :  { %v291_v42 = vadd.f32 %v290_v40, %v755_v26  ;;  %v404_v43 = vadd.f32 %v403_v41, %v757_v27 }
  0xf6   :  { %450 = vst [vmem:[%s902_s3 + $0x40] sm:$0xff] %v289_v38  ;;  %452 = vst [vmem:[%s902_s3 + $0x50] sm:$0xff] %v402_v39 }
  0xf7   :  { %451 = vst [vmem:[%s902_s3 + $0x48] sm:$0xff] %v291_v42  ;;  %453 = vst [vmem:[%s902_s3 + $0x58] sm:$0xff] %v404_v43  ;;  %v294_v44 = vpop.f32.mrb[12].mxu1  ;;  %v407_v45 = vpop.f32.mrb[12].mxu0 }
  0xf8   :  { %v295_v46 = vadd.f32 %v294_v44, %v751_v22  ;;  %v408_v47 = vadd.f32 %v407_v45, %v753_v23  ;;  %v296_v48 = vpop.f32.mrb[13].mxu1  ;;  %v409_v49 = vpop.f32.mrb[13].mxu0 }
  0xf9   :  { %v297_v50 = vadd.f32 %v296_v48, %v755_v26  ;;  %v410_v51 = vadd.f32 %v409_v49, %v757_v27 }
  0xfa   :  { %456 = vst [vmem:[%s902_s3 + $0x70] sm:$0xff] %v295_v46  ;;  %458 = vst [vmem:[%s902_s3 + $0x80] sm:$0xff] %v408_v47 }
  0xfb   :  { %457 = vst [vmem:[%s902_s3 + $0x78] sm:$0xff] %v297_v50  ;;  %459 = vst [vmem:[%s902_s3 + $0x88] sm:$0xff] %v410_v51  ;;  %v300_v52 = vpop.f32.mrb[14].mxu1  ;;  %v413_v53 = vpop.f32.mrb[14].mxu0 }
  0xfc   :  { %v301_v54 = vadd.f32 %v300_v52, %v751_v22  ;;  %v414_v55 = vadd.f32 %v413_v53, %v753_v23  ;;  %v302_v56 = vpop.f32.mrb[15].mxu1  ;;  %v415_v57 = vpop.f32.mrb[15].mxu0 }
  0xfd   :  { %v303_v58 = vadd.f32 %v302_v56, %v755_v26  ;;  %v416_v59 = vadd.f32 %v415_v57, %v757_v27 }
  0xfe   :  { %462 = vst [vmem:[%s902_s3 + $0xa0] sm:$0xff] %v301_v54  ;;  %464 = vst [vmem:[%s902_s3 + $0xb0] sm:$0xff] %v414_v55 }
  0xff   :  { %463 = vst [vmem:[%s902_s3 + $0xa8] sm:$0xff] %v303_v58  ;;  %465 = vst [vmem:[%s902_s3 + $0xb8] sm:$0xff] %v416_v59  ;;  %v306_v60 = vpop.f32.mrb[16].mxu1  ;;  %v419_v61 = vpop.f32.mrb[16].mxu0 }
 0x100   :  { %v307_v62 = vadd.f32 %v306_v60, %v751_v22  ;;  %v420_v63 = vadd.f32 %v419_v61, %v753_v23  ;;  %v308_v0 = vpop.f32.mrb[17].mxu1  ;;  %v421_v1 = vpop.f32.mrb[17].mxu0 }
 0x101   :  { %v309_v2 = vadd.f32 %v308_v0, %v755_v26  ;;  %v422_v3 = vadd.f32 %v421_v1, %v757_v27 }
 0x102   :  { %468 = vst [vmem:[%s902_s3 + $0xd0] sm:$0xff] %v307_v62  ;;  %470 = vst [vmem:[%s902_s3 + $0xe0] sm:$0xff] %v420_v63 }
 0x103   :  { %469 = vst [vmem:[%s902_s3 + $0xd8] sm:$0xff] %v309_v2  ;;  %471 = vst [vmem:[%s902_s3 + $0xe8] sm:$0xff] %v422_v3  ;;  %v312_v4 = vpop.f32.mrb[18].mxu1  ;;  %v425_v5 = vpop.f32.mrb[18].mxu0 }
 0x104   :  { %v313_v6 = vadd.f32 %v312_v4, %v751_v22  ;;  %v426_v7 = vadd.f32 %v425_v5, %v753_v23  ;;  %v314_v8 = vpop.f32.mrb[19].mxu1  ;;  %v427_v9 = vpop.f32.mrb[19].mxu0 }
 0x105   :  { %v315_v10 = vadd.f32 %v314_v8, %v755_v26  ;;  %v428_v11 = vadd.f32 %v427_v9, %v757_v27 }
 0x106   :  { %474 = vst [vmem:[%s902_s3 + $0x100] sm:$0xff] %v313_v6  ;;  %476 = vst [vmem:[%s902_s3 + $0x110] sm:$0xff] %v426_v7 }
 0x107   :  { %475 = vst [vmem:[%s902_s3 + $0x108] sm:$0xff] %v315_v10  ;;  %477 = vst [vmem:[%s902_s3 + $0x118] sm:$0xff] %v428_v11  ;;  %v318_v12 = vpop.f32.mrb[20].mxu1  ;;  %v431_v13 = vpop.f32.mrb[20].mxu0 }
 0x108   :  { %v319_v14 = vadd.f32 %v318_v12, %v751_v22  ;;  %v432_v15 = vadd.f32 %v431_v13, %v753_v23  ;;  %v320_v16 = vpop.f32.mrb[21].mxu1  ;;  %v433_v17 = vpop.f32.mrb[21].mxu0 }
 0x109   :  { %v321_v18 = vadd.f32 %v320_v16, %v755_v26  ;;  %v434_v19 = vadd.f32 %v433_v17, %v757_v27 }
 0x10a   :  { %480 = vst [vmem:[%s902_s3 + $0x130] sm:$0xff] %v319_v14  ;;  %482 = vst [vmem:[%s902_s3 + $0x140] sm:$0xff] %v432_v15 }
 0x10b   :  { %481 = vst [vmem:[%s902_s3 + $0x138] sm:$0xff] %v321_v18  ;;  %483 = vst [vmem:[%s902_s3 + $0x148] sm:$0xff] %v434_v19  ;;  %v324_v20 = vpop.f32.mrb[22].mxu1  ;;  %v437_v21 = vpop.f32.mrb[22].mxu0 }
 0x10c   :  { %v325_v24 = vadd.f32 %v324_v20, %v751_v22  ;;  %v438_v25 = vadd.f32 %v437_v21, %v753_v23  ;;  %v326_v28 = vpop.f32.mrb[23].mxu1  ;;  %v439_v29 = vpop.f32.mrb[23].mxu0 }
 0x10d   :  { %v327_v30 = vadd.f32 %v326_v28, %v755_v26  ;;  %v440_v31 = vadd.f32 %v439_v29, %v757_v27 }
 0x10e   :  { %486 = vst [vmem:[%s902_s3 + $0x160] sm:$0xff] %v325_v24  ;;  %488 = vst [vmem:[%s902_s3 + $0x170] sm:$0xff] %v438_v25 }
 0x10f   :  { %487 = vst [vmem:[%s902_s3 + $0x168] sm:$0xff] %v327_v30  ;;  %489 = vst [vmem:[%s902_s3 + $0x178] sm:$0xff] %v440_v31 }

// kernel: forward.7
= control target key start
LH: loop header
LB: loop body
LE: loop exit
PB: predicated region body
PF: predicated region fallthrough
CT: control target
= control target key end

     0   :  { %s1796_s1 = inlined_call_operand.vmem [shape: f32[256,768], index: 1, kind: input, shape index: {}]   ;;  %s1797_s0 = inlined_call_operand.vmem [shape: f32[64,256], index: 0, kind: input, shape index: {}]   ;;  %s1798_s2 = inlined_call_operand.vmem [shape: f32[1,768], index: 2, kind: input, shape index: {}]   ;;  %s1799_s3 = inlined_call_operand.vmem [shape: f32[64,768], index: 3, kind: output, shape index: {}]  }
   0x1   :  { %v31_v0 = vld [vmem:[%s1796_s1 + $0x8] sm:$0xff]  ;;  %v37_v1 = vld [vmem:[%s1796_s1 + $0x38] sm:$0xff]  ;;  %v30_v5 = vld [vmem:[%s1796_s1] sm:$0xff] }
   0x2   :  { %v33_v2 = vld [vmem:[%s1796_s1 + $0x18] sm:$0xff]  ;;  %v645_v3 = vpack.c.bf16 %v37_v1, %v31_v0  ;;  %v39_v4 = vld [vmem:[%s1796_s1 + $0x48] sm:$0xff]  ;;  %v36_v6 = vld [vmem:[%s1796_s1 + $0x30] sm:$0xff] }
   0x3   :  { %v709_v7 = vpack.c.bf16 %v39_v4, %v33_v2  ;;  %v647_v8 = vpack.c.bf16 %v36_v6, %v30_v5  ;;  %v32_v9 = vld [vmem:[%s1796_s1 + $0x10] sm:$0xff]  ;;  %v38_v10 = vld [vmem:[%s1796_s1 + $0x40] sm:$0xff]  ;;  %v43_v11 = vld [vmem:[%s1796_s1 + $0x68] sm:$0xff] }
   0x4   :  { %646 = vmatprep.subr.bf16.mxu0 %v645_v3  ;;  %v711_v12 = vpack.c.bf16 %v38_v10, %v32_v9  ;;  %v49_v13 = vld [vmem:[%s1796_s1 + $0x98] sm:$0xff]  ;;  %v51_v15 = vld [vmem:[%s1796_s1 + $0xa8] sm:$0xff]  ;;  %v42_v18 = vld [vmem:[%s1796_s1 + $0x60] sm:$0xff] }
   0x5   :  { %v45_v14 = vld [vmem:[%s1796_s1 + $0x78] sm:$0xff]  ;;  %710 = vmatprep.subr.bf16.mxu1 %v709_v7  ;;  %648 = vmatpush1.bf16.msra.mxu0 %v647_v8  ;;  %v649_v16 = vpack.c.bf16 %v49_v13, %v43_v11  ;;  %v48_v19 = vld [vmem:[%s1796_s1 + $0x90] sm:$0xff]  ;;  %v50_v22 = vld [vmem:[%s1796_s1 + $0xa0] sm:$0xff] }
   0x6   :  { %v713_v17 = vpack.c.bf16 %v51_v15, %v45_v14  ;;  %v44_v20 = vld [vmem:[%s1796_s1 + $0x70] sm:$0xff]  ;;  %712 = vmatpush1.bf16.msra.mxu1 %v711_v12  ;;  %v651_v21 = vpack.c.bf16 %v48_v19, %v42_v18  ;;  %v55_v23 = vld [vmem:[%s1796_s1 + $0xc8] sm:$0xff]  ;;  %v61_v24 = vld [vmem:[%s1796_s1 + $0xf8] sm:$0xff] }
   0x7   :  { %650 = vmatprep.subr.bf16.mxu0 %v649_v16  ;;  %v715_v25 = vpack.c.bf16 %v50_v22, %v44_v20  ;;  %v653_v26 = vpack.c.bf16 %v61_v24, %v55_v23  ;;  %v57_v27 = vld [vmem:[%s1796_s1 + $0xd8] sm:$0xff]  ;;  %v63_v28 = vld [vmem:[%s1796_s1 + $0x108] sm:$0xff]  ;;  %v54_v29 = vld [vmem:[%s1796_s1 + $0xc0] sm:$0xff] }
   0x8   :  { %714 = vmatprep.subr.bf16.mxu1 %v713_v17  ;;  %v717_v30 = vpack.c.bf16 %v63_v28, %v57_v27  ;;  %v60_v31 = vld [vmem:[%s1796_s1 + $0xf0] sm:$0xff]  ;;  %v62_v33 = vld [vmem:[%s1796_s1 + $0x100] sm:$0xff]  ;;  %v67_v35 = vld [vmem:[%s1796_s1 + $0x128] sm:$0xff] }
   0x9   :  { %v56_v32 = vld [vmem:[%s1796_s1 + $0xd0] sm:$0xff]  ;;  %652 = vmatpush1.bf16.msra.mxu0 %v651_v21  ;;  %v655_v34 = vpack.c.bf16 %v60_v31, %v54_v29  ;;  %v73_v36 = vld [vmem:[%s1796_s1 + $0x158] sm:$0xff]  ;;  %v75_v40 = vld [vmem:[%s1796_s1 + $0x168] sm:$0xff] }
   0xa   :  { %v69_v37 = vld [vmem:[%s1796_s1 + $0x138] sm:$0xff]  ;;  %716 = vmatpush1.bf16.msra.mxu1 %v715_v25  ;;  %654 = vmatprep.subr.bf16.mxu0 %v653_v26  ;;  %v719_v38 = vpack.c.bf16 %v62_v33, %v56_v32  ;;  %v657_v39 = vpack.c.bf16 %v73_v36, %v67_v35  ;;  %v66_v41 = vld [vmem:[%s1796_s1 + $0x120] sm:$0xff]  ;;  %v72_v42 = vld [vmem:[%s1796_s1 + $0x150] sm:$0xff] }
   0xb   :  { %718 = vmatprep.subr.bf16.mxu1 %v717_v30  ;;  %v721_v43 = vpack.c.bf16 %v75_v40, %v69_v37  ;;  %v68_v44 = vld [vmem:[%s1796_s1 + $0x130] sm:$0xff]  ;;  %v74_v45 = vld [vmem:[%s1796_s1 + $0x160] sm:$0xff]  ;;  %v79_v46 = vld [vmem:[%s1796_s1 + $0x188] sm:$0xff]  ;;  %v659_v50 = vpack.c.bf16 %v72_v42, %v66_v41 }
   0xc   :  { %v85_v47 = vld [vmem:[%s1796_s1 + $0x1b8] sm:$0xff]  ;;  %v87_v49 = vld [vmem:[%s1796_s1 + $0x1c8] sm:$0xff]  ;;  %v723_v51 = vpack.c.bf16 %v74_v45, %v68_v44  ;;  %v78_v53 = vld [vmem:[%s1796_s1 + $0x180] sm:$0xff] }
   0xd   :  { %v81_v48 = vld [vmem:[%s1796_s1 + $0x198] sm:$0xff]  ;;  %656 = vmatpush1.bf16.msra.mxu0 %v655_v34  ;;  %v661_v52 = vpack.c.bf16 %v85_v47, %v79_v46  ;;  %v84_v54 = vld [vmem:[%s1796_s1 + $0x1b0] sm:$0xff]  ;;  %v86_v57 = vld [vmem:[%s1796_s1 + $0x1c0] sm:$0xff] }
   0xe   :  { %720 = vmatpush1.bf16.msra.mxu1 %v719_v38  ;;  %658 = vmatprep.subr.bf16.mxu0 %v657_v39  ;;  %v80_v55 = vld [vmem:[%s1796_s1 + $0x190] sm:$0xff]  ;;  %v725_v56 = vpack.c.bf16 %v87_v49, %v81_v48  ;;  %v91_v58 = vld [vmem:[%s1796_s1 + $0x1e8] sm:$0xff]  ;;  %v97_v59 = vld [vmem:[%s1796_s1 + $0x218] sm:$0xff]  ;;  %v663_v62 = vpack.c.bf16 %v84_v54, %v78_v53 }
   0xf   :  { %722 = vmatprep.subr.bf16.mxu1 %v721_v43  ;;  %v93_v60 = vld [vmem:[%s1796_s1 + $0x1f8] sm:$0xff]  ;;  %v99_v61 = vld [vmem:[%s1796_s1 + $0x228] sm:$0xff]  ;;  %v727_v63 = vpack.c.bf16 %v86_v57, %v80_v55  ;;  %v665_v0 = vpack.c.bf16 %v97_v59, %v91_v58  ;;  %v90_v1 = vld [vmem:[%s1796_s1 + $0x1e0] sm:$0xff] }
  0x10   :  { %v96_v2 = vld [vmem:[%s1796_s1 + $0x210] sm:$0xff]  ;;  %v729_v4 = vpack.c.bf16 %v99_v61, %v93_v60  ;;  %v98_v5 = vld [vmem:[%s1796_s1 + $0x220] sm:$0xff]  ;;  %v103_v6 = vld [vmem:[%s1796_s1 + $0x248] sm:$0xff] }
  0x11   :  { %660 = vmatpush1.bf16.msra.mxu0 %v659_v50  ;;  %v92_v3 = vld [vmem:[%s1796_s1 + $0x1f0] sm:$0xff]  ;;  %v109_v7 = vld [vmem:[%s1796_s1 + $0x278] sm:$0xff]  ;;  %v111_v9 = vld [vmem:[%s1796_s1 + $0x288] sm:$0xff]  ;;  %v667_v10 = vpack.c.bf16 %v96_v2, %v90_v1 }
  0x12   :  { %724 = vmatpush1.bf16.msra.mxu1 %v723_v51  ;;  %662 = vmatprep.subr.bf16.mxu0 %v661_v52  ;;  %v105_v8 = vld [vmem:[%s1796_s1 + $0x258] sm:$0xff]  ;;  %v731_v11 = vpack.c.bf16 %v98_v5, %v92_v3  ;;  %v669_v12 = vpack.c.bf16 %v109_v7, %v103_v6  ;;  %v102_v13 = vld [vmem:[%s1796_s1 + $0x240] sm:$0xff]  ;;  %v108_v14 = vld [vmem:[%s1796_s1 + $0x270] sm:$0xff] }
  0x13   :  { %726 = vmatprep.subr.bf16.mxu1 %v725_v56  ;;  %v104_v15 = vld [vmem:[%s1796_s1 + $0x250] sm:$0xff]  ;;  %v733_v16 = vpack.c.bf16 %v111_v9, %v105_v8  ;;  %v110_v17 = vld [vmem:[%s1796_s1 + $0x280] sm:$0xff]  ;;  %v115_v18 = vld [vmem:[%s1796_s1 + $0x2a8] sm:$0xff]  ;;  %v671_v22 = vpack.c.bf16 %v108_v14, %v102_v13 }
  0x14   :  { %v121_v19 = vld [vmem:[%s1796_s1 + $0x2d8] sm:$0xff]  ;;  %v123_v21 = vld [vmem:[%s1796_s1 + $0x2e8] sm:$0xff]  ;;  %v735_v23 = vpack.c.bf16 %v110_v17, %v104_v15  ;;  %v114_v25 = vld [vmem:[%s1796_s1 + $0x2a0] sm:$0xff] }
  0x15   :  { %664 = vmatpush1.bf16.msra.mxu0 %v663_v62  ;;  %v117_v20 = vld [vmem:[%s1796_s1 + $0x2b8] sm:$0xff]  ;;  %v673_v24 = vpack.c.bf16 %v121_v19, %v115_v18  ;;  %v120_v26 = vld [vmem:[%s1796_s1 + $0x2d0] sm:$0xff]  ;;  %v122_v29 = vld [vmem:[%s1796_s1 + $0x2e0] sm:$0xff] }
  0x16   :  { %728 = vmatpush1.bf16.msra.mxu1 %v727_v63  ;;  %666 = vmatprep.subr.bf16.mxu0 %v665_v0  ;;  %v116_v27 = vld [vmem:[%s1796_s1 + $0x2b0] sm:$0xff]  ;;  %v737_v28 = vpack.c.bf16 %v123_v21, %v117_v20  ;;  %v127_v30 = vld [vmem:[%s1796_s1 + $0x308] sm:$0xff]  ;;  %v133_v31 = vld [vmem:[%s1796_s1 + $0x338] sm:$0xff]  ;;  %v675_v34 = vpack.c.bf16 %v120_v26, %v114_v25 }
  0x17   :  { %730 = vmatprep.subr.bf16.mxu1 %v729_v4  ;;  %v129_v32 = vld [vmem:[%s1796_s1 + $0x318] sm:$0xff]  ;;  %v135_v33 = vld [vmem:[%s1796_s1 + $0x348] sm:$0xff]  ;;  %v739_v35 = vpack.c.bf16 %v122_v29, %v116_v27  ;;  %v677_v36 = vpack.c.bf16 %v133_v31, %v127_v30  ;;  %v126_v37 = vld [vmem:[%s1796_s1 + $0x300] sm:$0xff] }
  0x18   :  { %v132_v38 = vld [vmem:[%s1796_s1 + $0x330] sm:$0xff]  ;;  %v741_v40 = vpack.c.bf16 %v135_v33, %v129_v32  ;;  %v134_v41 = vld [vmem:[%s1796_s1 + $0x340] sm:$0xff]  ;;  %v139_v42 = vld [vmem:[%s1796_s1 + $0x368] sm:$0xff] }
  0x19   :  { %668 = vmatpush1.bf16.msra.mxu0 %v667_v10  ;;  %v128_v39 = vld [vmem:[%s1796_s1 + $0x310] sm:$0xff]  ;;  %v145_v43 = vld [vmem:[%s1796_s1 + $0x398] sm:$0xff]  ;;  %v147_v45 = vld [vmem:[%s1796_s1 + $0x3a8] sm:$0xff]  ;;  %v679_v46 = vpack.c.bf16 %v132_v38, %v126_v37 }
  0x1a   :  { %732 = vmatpush1.bf16.msra.mxu1 %v731_v11  ;;  %670 = vmatprep.subr.bf16.mxu0 %v669_v12  ;;  %v141_v44 = vld [vmem:[%s1796_s1 + $0x378] sm:$0xff]  ;;  %v743_v47 = vpack.c.bf16 %v134_v41, %v128_v39  ;;  %v681_v48 = vpack.c.bf16 %v145_v43, %v139_v42  ;;  %v138_v49 = vld [vmem:[%s1796_s1 + $0x360] sm:$0xff]  ;;  %v144_v50 = vld [vmem:[%s1796_s1 + $0x390] sm:$0xff] }
  0x1b   :  { %734 = vmatprep.subr.bf16.mxu1 %v733_v16  ;;  %v140_v51 = vld [vmem:[%s1796_s1 + $0x370] sm:$0xff]  ;;  %v745_v52 = vpack.c.bf16 %v147_v45, %v141_v44  ;;  %v146_v53 = vld [vmem:[%s1796_s1 + $0x3a0] sm:$0xff]  ;;  %v151_v54 = vld [vmem:[%s1796_s1 + $0x3c8] sm:$0xff]  ;;  %v683_v58 = vpack.c.bf16 %v144_v50, %v138_v49 }
  0x1c   :  { %v157_v55 = vld [vmem:[%s1796_s1 + $0x3f8] sm:$0xff]  ;;  %v159_v57 = vld [vmem:[%s1796_s1 + $0x408] sm:$0xff]  ;;  %v747_v59 = vpack.c.bf16 %v146_v53, %v140_v51  ;;  %v150_v61 = vld [vmem:[%s1796_s1 + $0x3c0] sm:$0xff] }
  0x1d   :  { %672 = vmatpush1.bf16.msra.mxu0 %v671_v22  ;;  %v153_v56 = vld [vmem:[%s1796_s1 + $0x3d8] sm:$0xff]  ;;  %v685_v60 = vpack.c.bf16 %v157_v55, %v151_v54  ;;  %v156_v62 = vld [vmem:[%s1796_s1 + $0x3f0] sm:$0xff]  ;;  %v158_v1 = vld [vmem:[%s1796_s1 + $0x400] sm:$0xff] }
  0x1e   :  { %736 = vmatpush1.bf16.msra.mxu1 %v735_v23  ;;  %674 = vmatprep.subr.bf16.mxu0 %v673_v24  ;;  %v152_v63 = vld [vmem:[%s1796_s1 + $0x3d0] sm:$0xff]  ;;  %v749_v0 = vpack.c.bf16 %v159_v57, %v153_v56  ;;  %v163_v2 = vld [vmem:[%s1796_s1 + $0x428] sm:$0xff]  ;;  %v169_v3 = vld [vmem:[%s1796_s1 + $0x458] sm:$0xff]  ;;  %v687_v6 = vpack.c.bf16 %v156_v62, %v150_v61 }
  0x1f   :  { %738 = vmatprep.subr.bf16.mxu1 %v737_v28  ;;  %v165_v4 = vld [vmem:[%s1796_s1 + $0x438] sm:$0xff]  ;;  %v171_v5 = vld [vmem:[%s1796_s1 + $0x468] sm:$0xff]  ;;  %v162_v7 = vld [vmem:[%s1796_s1 + $0x420] sm:$0xff]  ;;  %v751_v8 = vpack.c.bf16 %v158_v1, %v152_v63  ;;  %v689_v9 = vpack.c.bf16 %v169_v3, %v163_v2 }
  0x20   :  { %v168_v10 = vld [vmem:[%s1796_s1 + $0x450] sm:$0xff]  ;;  %v170_v12 = vld [vmem:[%s1796_s1 + $0x460] sm:$0xff]  ;;  %v753_v13 = vpack.c.bf16 %v171_v5, %v165_v4  ;;  %v175_v14 = vld [vmem:[%s1796_s1 + $0x488] sm:$0xff] }
  0x21   :  { %676 = vmatpush1.bf16.msra.mxu0 %v675_v34  ;;  %v164_v11 = vld [vmem:[%s1796_s1 + $0x430] sm:$0xff]  ;;  %v181_v15 = vld [vmem:[%s1796_s1 + $0x4b8] sm:$0xff]  ;;  %v1186_v16 = vld [vmem:[%s1797_s0 + $0x8] sm:$0xff]  ;;  %v691_v19 = vpack.c.bf16 %v168_v10, %v162_v7 }
  0x22   :  { %740 = vmatpush1.bf16.msra.mxu1 %v739_v35  ;;  %678 = vmatprep.subr.bf16.mxu0 %v677_v36  ;;  %v177_v17 = vld [vmem:[%s1796_s1 + $0x498] sm:$0xff]  ;;  %v183_v18 = vld [vmem:[%s1796_s1 + $0x4c8] sm:$0xff]  ;;  %v755_v20 = vpack.c.bf16 %v170_v12, %v164_v11  ;;  %v693_v21 = vpack.c.bf16 %v181_v15, %v175_v14  ;;  %v174_v22 = vld [vmem:[%s1796_s1 + $0x480] sm:$0xff] }
  0x23   :  { %742 = vmatprep.subr.bf16.mxu1 %v741_v40  ;;  %318 = vmatprep.mubr.f32.mxu0 %v1186_v16  ;;  %v180_v23 = vld [vmem:[%s1796_s1 + $0x4b0] sm:$0xff]  ;;  %v757_v25 = vpack.c.bf16 %v183_v18, %v177_v17  ;;  %v182_v26 = vld [vmem:[%s1796_s1 + $0x4c0] sm:$0xff]  ;;  %v187_v27 = vld [vmem:[%s1796_s1 + $0x4e8] sm:$0xff] }
  0x24   :  { %431 = vmatprep.mubr.f32.mxu1 %v1186_v16  ;;  %v176_v24 = vld [vmem:[%s1796_s1 + $0x490] sm:$0xff]  ;;  %v193_v28 = vld [vmem:[%s1796_s1 + $0x518] sm:$0xff]  ;;  %v195_v30 = vld [vmem:[%s1796_s1 + $0x528] sm:$0xff]  ;;  %v695_v31 = vpack.c.bf16 %v180_v23, %v174_v22 }
  0x25   :  { %680 = vmatpush1.bf16.msra.mxu0 %v679_v46  ;;  %v189_v29 = vld [vmem:[%s1796_s1 + $0x4f8] sm:$0xff]  ;;  %v759_v32 = vpack.c.bf16 %v182_v26, %v176_v24  ;;  %v697_v33 = vpack.c.bf16 %v193_v28, %v187_v27  ;;  %v186_v34 = vld [vmem:[%s1796_s1 + $0x4e0] sm:$0xff]  ;;  %v192_v35 = vld [vmem:[%s1796_s1 + $0x510] sm:$0xff] }
  0x26   :  { %744 = vmatpush1.bf16.msra.mxu1 %v743_v47  ;;  %682 = vmatprep.subr.bf16.mxu0 %v681_v48  ;;  %v188_v36 = vld [vmem:[%s1796_s1 + $0x4f0] sm:$0xff]  ;;  %v761_v37 = vpack.c.bf16 %v195_v30, %v189_v29  ;;  %v194_v38 = vld [vmem:[%s1796_s1 + $0x520] sm:$0xff]  ;;  %v199_v39 = vld [vmem:[%s1796_s1 + $0x548] sm:$0xff]  ;;  %v699_v43 = vpack.c.bf16 %v192_v35, %v186_v34 }
  0x27   :  { %746 = vmatprep.subr.bf16.mxu1 %v745_v52  ;;  %v205_v40 = vld [vmem:[%s1796_s1 + $0x578] sm:$0xff]  ;;  %v207_v42 = vld [vmem:[%s1796_s1 + $0x588] sm:$0xff]  ;;  %v763_v44 = vpack.c.bf16 %v194_v38, %v188_v36  ;;  %v198_v46 = vld [vmem:[%s1796_s1 + $0x540] sm:$0xff] }
  0x28   :  { %v201_v41 = vld [vmem:[%s1796_s1 + $0x558] sm:$0xff]  ;;  %v701_v45 = vpack.c.bf16 %v205_v40, %v199_v39  ;;  %v204_v47 = vld [vmem:[%s1796_s1 + $0x570] sm:$0xff]  ;;  %v206_v50 = vld [vmem:[%s1796_s1 + $0x580] sm:$0xff] }
  0x29   :  { %684 = vmatpush1.bf16.msra.mxu0 %v683_v58  ;;  %v200_v48 = vld [vmem:[%s1796_s1 + $0x550] sm:$0xff]  ;;  %v765_v49 = vpack.c.bf16 %v207_v42, %v201_v41  ;;  %v211_v51 = vld [vmem:[%s1796_s1 + $0x5a8] sm:$0xff]  ;;  %v217_v52 = vld [vmem:[%s1796_s1 + $0x5d8] sm:$0xff]  ;;  %v703_v55 = vpack.c.bf16 %v204_v47, %v198_v46 }
  0x2a   :  { %748 = vmatpush1.bf16.msra.mxu1 %v747_v59  ;;  %686 = vmatprep.subr.bf16.mxu0 %v685_v60  ;;  %v213_v53 = vld [vmem:[%s1796_s1 + $0x5b8] sm:$0xff]  ;;  %v219_v54 = vld [vmem:[%s1796_s1 + $0x5e8] sm:$0xff]  ;;  %v767_v56 = vpack.c.bf16 %v206_v50, %v200_v48  ;;  %v705_v57 = vpack.c.bf16 %v217_v52, %v211_v51  ;;  %v210_v58 = vld [vmem:[%s1796_s1 + $0x5a0] sm:$0xff] }
  0x2b   :  { %750 = vmatprep.subr.bf16.mxu1 %v749_v0  ;;  %v216_v59 = vld [vmem:[%s1796_s1 + $0x5d0] sm:$0xff]  ;;  %v769_v61 = vpack.c.bf16 %v219_v54, %v213_v53  ;;  %v218_v62 = vld [vmem:[%s1796_s1 + $0x5e0] sm:$0xff]  ;;  %v35_v63 = vld [vmem:[%s1796_s1 + $0x28] sm:$0xff] }
  0x2c   :  { %v212_v60 = vld [vmem:[%s1796_s1 + $0x5b0] sm:$0xff]  ;;  %v41_v0 = vld [vmem:[%s1796_s1 + $0x58] sm:$0xff]  ;;  %v707_v1 = vpack.c.bf16 %v216_v59, %v210_v58  ;;  %v34_v4 = vld [vmem:[%s1796_s1 + $0x20] sm:$0xff] }
  0x2d   :  { %688 = vmatpush1.bf16.msra.mxu0 %v687_v6  ;;  %v771_v2 = vpack.c.bf16 %v218_v62, %v212_v60  ;;  %v773_v3 = vpack.c.bf16 %v41_v0, %v35_v63  ;;  %v40_v5 = vld [vmem:[%s1796_s1 + $0x50] sm:$0xff]  ;;  %v47_v6 = vld [vmem:[%s1796_s1 + $0x88] sm:$0xff]  ;;  %v53_v7 = vld [vmem:[%s1796_s1 + $0xb8] sm:$0xff] }
  0x2e   :  { %752 = vmatpush1.bf16.msra.mxu1 %v751_v8  ;;  %690 = vmatprep.subr.bf16.mxu0 %v689_v9  ;;  %v1301_v8 = vld [vmem:[%s1797_s0] sm:$0xff]  ;;  %v775_v9 = vpack.c.bf16 %v40_v5, %v34_v4  ;;  %v777_v10 = vpack.c.bf16 %v53_v7, %v47_v6  ;;  %v52_v12 = vld [vmem:[%s1796_s1 + $0xb0] sm:$0xff]  ;;  %v65_v14 = vld [vmem:[%s1796_s1 + $0x118] sm:$0xff] }
  0x2f   :  { %754 = vmatprep.subr.bf16.mxu1 %v753_v13  ;;  %v46_v11 = vld [vmem:[%s1796_s1 + $0x80] sm:$0xff]  ;;  %v59_v13 = vld [vmem:[%s1796_s1 + $0xe8] sm:$0xff]  ;;  %v1319_v15 = vld [vmem:[%s1797_s0 + $0x18] sm:$0xff] }
  0x30   :  { %v779_v17 = vpack.c.bf16 %v52_v12, %v46_v11  ;;  %v1325_v18 = vld [vmem:[%s1797_s0 + $0x10] sm:$0xff]  ;;  %v71_v22 = vld [vmem:[%s1796_s1 + $0x148] sm:$0xff]  ;;  %v77_v23 = vld [vmem:[%s1796_s1 + $0x178] sm:$0xff] }
  0x31   :  { %692 = vmatpush1.bf16.msra.mxu0 %v691_v19  ;;  %v781_v19 = vpack.c.bf16 %v65_v14, %v59_v13  ;;  %v1345_v24 = vld [vmem:[%s1797_s0 + $0x28] sm:$0xff]  ;;  %v1351_v26 = vld [vmem:[%s1797_s0 + $0x20] sm:$0xff]  ;;  %v785_v27 = vpack.c.bf16 %v77_v23, %v71_v22  ;;  %v76_v29 = vld [vmem:[%s1796_s1 + $0x170] sm:$0xff] }
  0x32   :  { %756 = vmatpush1.bf16.msra.mxu1 %v755_v20  ;;  %694 = vmatprep.subr.bf16.mxu0 %v693_v21  ;;  %v58_v20 = vld [vmem:[%s1796_s1 + $0xe0] sm:$0xff]  ;;  %v64_v21 = vld [vmem:[%s1796_s1 + $0x110] sm:$0xff]  ;;  %v83_v30 = vld [vmem:[%s1796_s1 + $0x1a8] sm:$0xff] }
  0x33   :  { %758 = vmatprep.subr.bf16.mxu1 %v757_v25  ;;  %v783_v25 = vpack.c.bf16 %v64_v21, %v58_v20  ;;  %v70_v28 = vld [vmem:[%s1796_s1 + $0x140] sm:$0xff]  ;;  %v1377_v34 = vld [vmem:[%s1797_s0 + $0x30] sm:$0xff]  ;;  %v95_v38 = vld [vmem:[%s1796_s1 + $0x208] sm:$0xff] }
  0x34   :  { %v82_v36 = vld [vmem:[%s1796_s1 + $0x1a0] sm:$0xff]  ;;  %v101_v39 = vld [vmem:[%s1796_s1 + $0x238] sm:$0xff]  ;;  %v1397_v40 = vld [vmem:[%s1797_s0 + $0x48] sm:$0xff] }
  0x35   :  { %696 = vmatpush1.bf16.msra.mxu0 %v695_v31  ;;  %v89_v31 = vld [vmem:[%s1796_s1 + $0x1d8] sm:$0xff]  ;;  %v1403_v42 = vld [vmem:[%s1797_s0 + $0x40] sm:$0xff]  ;;  %v107_v46 = vld [vmem:[%s1796_s1 + $0x268] sm:$0xff] }
  0x36   :  { %760 = vmatpush1.bf16.msra.mxu1 %v759_v32  ;;  %698 = vmatprep.subr.bf16.mxu0 %v697_v33  ;;  %v1371_v32 = vld [vmem:[%s1797_s0 + $0x38] sm:$0xff]  ;;  %v787_v33 = vpack.c.bf16 %v76_v29, %v70_v28  ;;  %v789_v35 = vpack.c.bf16 %v89_v31, %v83_v30  ;;  %v1429_v50 = vld [vmem:[%s1797_s0 + $0x50] sm:$0xff]  ;;  %v106_v52 = vld [vmem:[%s1796_s1 + $0x260] sm:$0xff] }
  0x37   :  { %762 = vmatprep.subr.bf16.mxu1 %v761_v37  ;;  %v88_v37 = vld [vmem:[%s1796_s1 + $0x1d0] sm:$0xff]  ;;  %v113_v47 = vld [vmem:[%s1796_s1 + $0x298] sm:$0xff]  ;;  %v119_v54 = vld [vmem:[%s1796_s1 + $0x2c8] sm:$0xff] }
  0x38   :  { %v791_v41 = vpack.c.bf16 %v88_v37, %v82_v36  ;;  %v1423_v48 = vld [vmem:[%s1797_s0 + $0x58] sm:$0xff]  ;;  %v797_v51 = vpack.c.bf16 %v113_v47, %v107_v46  ;;  %v112_v53 = vld [vmem:[%s1796_s1 + $0x290] sm:$0xff]  ;;  %v1455_v58 = vld [vmem:[%s1797_s0 + $0x60] sm:$0xff] }
  0x39   :  { %700 = vmatpush1.bf16.msra.mxu0 %v699_v43  ;;  %v793_v43 = vpack.c.bf16 %v101_v39, %v95_v38  ;;  %v118_v60 = vld [vmem:[%s1796_s1 + $0x2c0] sm:$0xff]  ;;  %v131_v62 = vld [vmem:[%s1796_s1 + $0x328] sm:$0xff]  ;;  %v137_v63 = vld [vmem:[%s1796_s1 + $0x358] sm:$0xff] }
  0x3a   :  { %764 = vmatpush1.bf16.msra.mxu1 %v763_v44  ;;  %702 = vmatprep.subr.bf16.mxu0 %v701_v45  ;;  %v94_v44 = vld [vmem:[%s1796_s1 + $0x200] sm:$0xff]  ;;  %v100_v45 = vld [vmem:[%s1796_s1 + $0x230] sm:$0xff]  ;;  %v1475_v0 = vld [vmem:[%s1797_s0 + $0x78] sm:$0xff] }
  0x3b   :  { %766 = vmatprep.subr.bf16.mxu1 %v765_v49  ;;  %v795_v49 = vpack.c.bf16 %v100_v45, %v94_v44  ;;  %v130_v4 = vld [vmem:[%s1796_s1 + $0x320] sm:$0xff]  ;;  %v136_v5 = vld [vmem:[%s1796_s1 + $0x350] sm:$0xff]  ;;  %v143_v6 = vld [vmem:[%s1796_s1 + $0x388] sm:$0xff] }
  0x3c   :  { %v149_v7 = vld [vmem:[%s1796_s1 + $0x3b8] sm:$0xff]  ;;  %v142_v11 = vld [vmem:[%s1796_s1 + $0x380] sm:$0xff]  ;;  %v148_v12 = vld [vmem:[%s1796_s1 + $0x3b0] sm:$0xff] }
  0x3d   :  { %704 = vmatpush1.bf16.msra.mxu0 %v703_v55  ;;  %v125_v55 = vld [vmem:[%s1796_s1 + $0x2f8] sm:$0xff]  ;;  %v155_v13 = vld [vmem:[%s1796_s1 + $0x3e8] sm:$0xff]  ;;  %v154_v20 = vld [vmem:[%s1796_s1 + $0x3e0] sm:$0xff] }
  0x3e   :  { %768 = vmatpush1.bf16.msra.mxu1 %v767_v56  ;;  %706 = vmatprep.subr.bf16.mxu0 %v705_v57  ;;  %v1449_v56 = vld [vmem:[%s1797_s0 + $0x68] sm:$0xff]  ;;  %v799_v57 = vpack.c.bf16 %v112_v53, %v106_v52  ;;  %v801_v59 = vpack.c.bf16 %v125_v55, %v119_v54  ;;  %v161_v14 = vld [vmem:[%s1796_s1 + $0x418] sm:$0xff]  ;;  %v160_v21 = vld [vmem:[%s1796_s1 + $0x410] sm:$0xff] }
  0x3f   :  { %770 = vmatprep.subr.bf16.mxu1 %v769_v61  ;;  %v124_v61 = vld [vmem:[%s1796_s1 + $0x2f0] sm:$0xff]  ;;  %v173_v22 = vld [vmem:[%s1796_s1 + $0x478] sm:$0xff]  ;;  %v815_v23 = vpack.c.bf16 %v160_v21, %v154_v20  ;;  %v179_v29 = vld [vmem:[%s1796_s1 + $0x4a8] sm:$0xff] }
  0x40   :  { %v172_v28 = vld [vmem:[%s1796_s1 + $0x470] sm:$0xff]  ;;  %v185_v30 = vld [vmem:[%s1796_s1 + $0x4d8] sm:$0xff]  ;;  %v191_v37 = vld [vmem:[%s1796_s1 + $0x508] sm:$0xff] }
  0x41   :  { %708 = vmatpush1.bf16.msra.mxu0 %v707_v1  ;;  %v803_v1 = vpack.c.bf16 %v124_v61, %v118_v60  ;;  %v184_v36 = vld [vmem:[%s1796_s1 + $0x4d0] sm:$0xff]  ;;  %v197_v38 = vld [vmem:[%s1796_s1 + $0x538] sm:$0xff]  ;;  %v203_v44 = vld [vmem:[%s1796_s1 + $0x568] sm:$0xff] }
  0x42   :  { %772 = vmatpush1.bf16.msra.mxu1 %v771_v2  ;;  %774 = vmatprep.subr.bf16.mxu0 %v773_v3  ;;  %v1481_v2 = vld [vmem:[%s1797_s0 + $0x70] sm:$0xff]  ;;  %v209_v45 = vld [vmem:[%s1796_s1 + $0x598] sm:$0xff]  ;;  %v215_v52 = vld [vmem:[%s1796_s1 + $0x5c8] sm:$0xff] }
  0x43   :  { %837 = vmatprep.subr.bf16.mxu1 %v773_v3  ;;  %v805_v3 = vpack.c.bf16 %v137_v63, %v131_v62  ;;  %v829_v47 = vpack.c.bf16 %v209_v45, %v203_v44  ;;  %v221_v53 = vld [vmem:[%s1796_s1 + $0x5f8] sm:$0xff] }
  0x44   :  { %319 = vmatmul.mubr.f32.vlgmr.msra.gmra.mrb[0].mxu0 %v1301_v8  ;;  %v833_v55 = vpack.c.bf16 %v221_v53, %v215_v52 }
  0x45   :  { %432 = vmatmul.mubr.f32.vlgmr.msra.gmra.mrb[0].mxu1 %v1301_v8  ;;  %776 = vmatpush1.bf16.msra.mxu0 %v775_v9 }
  0x46   :  { %853 = vmatpush1.bf16.msra.mxu1 %v775_v9  ;;  %778 = vmatprep.subr.bf16.mxu0 %v777_v10  ;;  %v807_v9 = vpack.c.bf16 %v136_v5, %v130_v4 }
  0x47   :  { %838 = vmatprep.subr.bf16.mxu1 %v777_v10  ;;  %324 = vmatprep.mubr.f32.mxu0 %v1319_v15  ;;  %v809_v10 = vpack.c.bf16 %v149_v7, %v143_v6 }
  0x48   :  { %437 = vmatprep.mubr.f32.mxu1 %v1319_v15  ;;  %325 = vmatmul.mubr.f32.gmra.mrb[2].mxu0 %v1325_v18 }
  0x49   :  { %780 = vmatpush1.bf16.msra.mxu0 %v779_v17  ;;  %438 = vmatmul.mubr.f32.gmra.mrb[2].mxu1 %v1325_v18 }
  0x4a   :  { %854 = vmatpush1.bf16.msra.mxu1 %v779_v17  ;;  %782 = vmatprep.subr.bf16.mxu0 %v781_v19  ;;  %v811_v17 = vpack.c.bf16 %v148_v12, %v142_v11 }
  0x4b   :  { %839 = vmatprep.subr.bf16.mxu1 %v781_v19  ;;  %330 = vmatprep.mubr.f32.mxu0 %v1345_v24  ;;  %v813_v19 = vpack.c.bf16 %v161_v14, %v155_v13 }
  0x4c   :  { %443 = vmatprep.mubr.f32.mxu1 %v1345_v24  ;;  %331 = vmatmul.mubr.f32.gmra.mrb[4].mxu0 %v1351_v26 }
  0x4d   :  { %784 = vmatpush1.bf16.msra.mxu0 %v783_v25  ;;  %444 = vmatmul.mubr.f32.gmra.mrb[4].mxu1 %v1351_v26 }
  0x4e   :  { %855 = vmatpush1.bf16.msra.mxu1 %v783_v25  ;;  %786 = vmatprep.subr.bf16.mxu0 %v785_v27 }
  0x4f   :  { %840 = vmatprep.subr.bf16.mxu1 %v785_v27  ;;  %336 = vmatprep.mubr.f32.mxu0 %v1371_v32  ;;  %v166_v27 = vld [vmem:[%s1796_s1 + $0x440] sm:$0xff] }
  0x50   :  { %449 = vmatprep.mubr.f32.mxu1 %v1371_v32  ;;  %337 = vmatmul.mubr.f32.gmra.mrb[6].mxu0 %v1377_v34  ;;  %v819_v31 = vpack.c.bf16 %v172_v28, %v166_v27 }
  0x51   :  { %788 = vmatpush1.bf16.msra.mxu0 %v787_v33  ;;  %450 = vmatmul.mubr.f32.gmra.mrb[6].mxu1 %v1377_v34 }
  0x52   :  { %856 = vmatpush1.bf16.msra.mxu1 %v787_v33  ;;  %790 = vmatprep.subr.bf16.mxu0 %v789_v35  ;;  %v821_v33 = vpack.c.bf16 %v185_v30, %v179_v29 }
  0x53   :  { %841 = vmatprep.subr.bf16.mxu1 %v789_v35  ;;  %342 = vmatprep.mubr.f32.mxu0 %v1397_v40  ;;  %v178_v35 = vld [vmem:[%s1796_s1 + $0x4a0] sm:$0xff] }
  0x54   :  { %455 = vmatprep.mubr.f32.mxu1 %v1397_v40  ;;  %343 = vmatmul.mubr.f32.gmra.mrb[8].mxu0 %v1403_v42  ;;  %v823_v39 = vpack.c.bf16 %v184_v36, %v178_v35 }
  0x55   :  { %792 = vmatpush1.bf16.msra.mxu0 %v791_v41  ;;  %456 = vmatmul.mubr.f32.gmra.mrb[8].mxu1 %v1403_v42 }
  0x56   :  { %857 = vmatpush1.bf16.msra.mxu1 %v791_v41  ;;  %794 = vmatprep.subr.bf16.mxu0 %v793_v43  ;;  %v190_v41 = vld [vmem:[%s1796_s1 + $0x500] sm:$0xff] }
  0x57   :  { %842 = vmatprep.subr.bf16.mxu1 %v793_v43  ;;  %348 = vmatprep.mubr.f32.mxu0 %v1423_v48  ;;  %v196_v43 = vld [vmem:[%s1796_s1 + $0x530] sm:$0xff] }
  0x58   :  { %461 = vmatprep.mubr.f32.mxu1 %v1423_v48  ;;  %349 = vmatmul.mubr.f32.gmra.mrb[10].mxu0 %v1429_v50  ;;  %v827_v46 = vpack.c.bf16 %v196_v43, %v190_v41 }
  0x59   :  { %796 = vmatpush1.bf16.msra.mxu0 %v795_v49  ;;  %462 = vmatmul.mubr.f32.gmra.mrb[10].mxu1 %v1429_v50 }
  0x5a   :  { %858 = vmatpush1.bf16.msra.mxu1 %v795_v49  ;;  %798 = vmatprep.subr.bf16.mxu0 %v797_v51  ;;  %v202_v49 = vld [vmem:[%s1796_s1 + $0x560] sm:$0xff] }
  0x5b   :  { %843 = vmatprep.subr.bf16.mxu1 %v797_v51  ;;  %354 = vmatprep.mubr.f32.mxu0 %v1449_v56  ;;  %v208_v51 = vld [vmem:[%s1796_s1 + $0x590] sm:$0xff] }
  0x5c   :  { %467 = vmatprep.mubr.f32.mxu1 %v1449_v56  ;;  %355 = vmatmul.mubr.f32.gmra.mrb[12].mxu0 %v1455_v58  ;;  %v831_v54 = vpack.c.bf16 %v208_v51, %v202_v49 }
  0x5d   :  { %800 = vmatpush1.bf16.msra.mxu0 %v799_v57  ;;  %468 = vmatmul.mubr.f32.gmra.mrb[12].mxu1 %v1455_v58 }
  0x5e   :  { %859 = vmatpush1.bf16.msra.mxu1 %v799_v57  ;;  %802 = vmatprep.subr.bf16.mxu0 %v801_v59  ;;  %v214_v57 = vld [vmem:[%s1796_s1 + $0x5c0] sm:$0xff] }
  0x5f   :  { %844 = vmatprep.subr.bf16.mxu1 %v801_v59  ;;  %360 = vmatprep.mubr.f32.mxu0 %v1475_v0  ;;  %v220_v59 = vld [vmem:[%s1796_s1 + $0x5f0] sm:$0xff] }
  0x60   :  { %473 = vmatprep.mubr.f32.mxu1 %v1475_v0  ;;  %361 = vmatmul.mubr.f32.gmra.mrb[14].mxu0 %v1481_v2  ;;  %v835_v60 = vpack.c.bf16 %v220_v59, %v214_v57 }
  0x61   :  { %804 = vmatpush1.bf16.msra.mxu0 %v803_v1  ;;  %474 = vmatmul.mubr.f32.gmra.mrb[14].mxu1 %v1481_v2 }
  0x62   :  { %860 = vmatpush1.bf16.msra.mxu1 %v803_v1  ;;  %806 = vmatprep.subr.bf16.mxu0 %v805_v3 }
  0x63   :  { %845 = vmatprep.subr.bf16.mxu1 %v805_v3  ;;  %544 = vmatprep.mubr.f32.mxu0 %v1186_v16  ;;  %v167_v16 = vld [vmem:[%s1796_s1 + $0x448] sm:$0xff] }
  0x64   :  { %568 = vmatprep.mubr.f32.mxu1 %v1397_v40  ;;  %v817_v25 = vpack.c.bf16 %v173_v22, %v167_v16  ;;  %v825_v40 = vpack.c.bf16 %v197_v38, %v191_v37 }
  0x65   :  { %808 = vmatpush1.bf16.msra.mxu0 %v807_v9 }
  0x66   :  { %861 = vmatpush1.bf16.msra.mxu1 %v807_v9  ;;  %810 = vmatprep.subr.bf16.mxu0 %v809_v10 }
  0x67   :  { %846 = vmatprep.subr.bf16.mxu1 %v809_v10 }
  0x69   :  { %812 = vmatpush1.bf16.msra.mxu0 %v811_v17 }
  0x6a   :  { %862 = vmatpush1.bf16.msra.mxu1 %v811_v17  ;;  %814 = vmatprep.subr.bf16.mxu0 %v813_v19 }
  0x6b   :  { %847 = vmatprep.subr.bf16.mxu1 %v813_v19 }
  0x6d   :  { %816 = vmatpush1.bf16.msra.mxu0 %v815_v23 }
  0x6e   :  { %863 = vmatpush1.bf16.msra.mxu1 %v815_v23  ;;  %818 = vmatprep.subr.bf16.mxu0 %v817_v25 }
  0x6f   :  { %848 = vmatprep.subr.bf16.mxu1 %v817_v25 }
  0x71   :  { %820 = vmatpush1.bf16.msra.mxu0 %v819_v31 }
  0x72   :  { %864 = vmatpush1.bf16.msra.mxu1 %v819_v31  ;;  %822 = vmatprep.subr.bf16.mxu0 %v821_v33 }
  0x73   :  { %849 = vmatprep.subr.bf16.mxu1 %v821_v33 }
  0x75   :  { %824 = vmatpush1.bf16.msra.mxu0 %v823_v39 }
  0x76   :  { %865 = vmatpush1.bf16.msra.mxu1 %v823_v39  ;;  %826 = vmatprep.subr.bf16.mxu0 %v825_v40 }
  0x77   :  { %850 = vmatprep.subr.bf16.mxu1 %v825_v40 }
  0x79   :  { %828 = vmatpush1.bf16.msra.mxu0 %v827_v46 }
  0x7a   :  { %866 = vmatpush1.bf16.msra.mxu1 %v827_v46  ;;  %830 = vmatprep.subr.bf16.mxu0 %v829_v47 }
  0x7b   :  { %851 = vmatprep.subr.bf16.mxu1 %v829_v47 }
  0x7d   :  { %832 = vmatpush1.bf16.msra.mxu0 %v831_v54 }
  0x7e   :  { %867 = vmatpush1.bf16.msra.mxu1 %v831_v54  ;;  %834 = vmatprep.subr.bf16.mxu0 %v833_v55 }
  0x7f   :  { %852 = vmatprep.subr.bf16.mxu1 %v833_v55 }
  0x81   :  { %836 = vmatpush1.bf16.msra.mxu0 %v835_v60 }
  0x82   :  { %868 = vmatpush1.bf16.msra.mxu1 %v835_v60 }
  0x84   :  { %545 = vmatmul.mubr.f32.vlgmr.msra.gmra.mrb[16].mxu0 %v1301_v8  ;;  %v224_v8 = vlaneseq }
  0x85   :  { %569 = vmatmul.mubr.f32.vlgmr.msra.gmra.mrb[16].mxu1 %v1403_v42  ;;  %550 = vmatprep.mubr.f32.mxu0 %v1319_v15 }
  0x86   :  { %574 = vmatprep.mubr.f32.mxu1 %v1423_v48  ;;  %v1593_v15 = vshrl.u32 %v224_v8, 7 }
  0x88   :  { %551 = vmatmul.mubr.f32.gmra.mrb[18].mxu0 %v1325_v18  ;;  %v226_v18 = vsub.s32 0, %v1593_v15  ;;  %v238_v42 = vsub.s32 3, %v1593_v15 }
  0x89   :  { %575 = vmatmul.mubr.f32.gmra.mrb[18].mxu1 %v1429_v50  ;;  %556 = vmatprep.mubr.f32.mxu0 %v1345_v24  ;;  %v1599_v24 = vld [vmem:[%s1798_s2] sm:$0x3f] }
  0x8a   :  { %580 = vmatprep.mubr.f32.mxu1 %v1449_v56  ;;  %v1614_v56 = vrot.slane %v1599_v24, %v238_v42 }
  0x8c   :  { %557 = vmatmul.mubr.f32.gmra.mrb[20].mxu0 %v1351_v26  ;;  %v234_v26 = vsub.s32 2, %v1593_v15 }
  0x8d   :  { %581 = vmatmul.mubr.f32.gmra.mrb[20].mxu1 %v1455_v58  ;;  %562 = vmatprep.mubr.f32.mxu0 %v1371_v32  ;;  %v230_v32 = vsub.s32 1, %v1593_v15 }
  0x8e   :  { %586 = vmatprep.mubr.f32.mxu1 %v1475_v0  ;;  %v1608_v48 = vrot.slane %v1599_v24, %v234_v26 }
  0x8f   :  { %v1611_v50 = vrot.slane %v1599_v24, %v230_v32 }
  0x90   :  { %563 = vmatmul.mubr.f32.gmra.mrb[22].mxu0 %v1377_v34  ;;  %v1605_v34 = vrot.slane %v1599_v24, %v226_v18 }
  0x91   :  { %587 = vmatmul.mubr.f32.gmra.mrb[22].mxu1 %v1481_v2 }
 0x117   :  { %v320_v58 = vpop.f32.mrb[0].mxu0 }
 0x118   :  { %v321_v61 = vadd.f32 %v320_v58, %v1605_v34  ;;  %v433_v62 = vpop.f32.mrb[0].mxu1  ;;  %v322_v63 = vpop.f32.mrb[1].mxu0 }
 0x119   :  { %v434_v0 = vadd.f32 %v433_v62, %v1608_v48  ;;  %v323_v1 = vadd.f32 %v322_v63, %v1611_v50  ;;  %v435_v2 = vpop.f32.mrb[1].mxu1 }
 0x11a   :  { %593 = vst [vmem:[%s1799_s3] sm:$0xff] %v321_v61  ;;  %v436_v3 = vadd.f32 %v435_v2, %v1614_v56 }
 0x11b   :  { %595 = vst [vmem:[%s1799_s3 + $0x10] sm:$0xff] %v434_v0  ;;  %594 = vst [vmem:[%s1799_s3 + $0x8] sm:$0xff] %v323_v1  ;;  %v326_v4 = vpop.f32.mrb[2].mxu0 }
 0x11c   :  { %596 = vst [vmem:[%s1799_s3 + $0x18] sm:$0xff] %v436_v3  ;;  %v327_v5 = vadd.f32 %v326_v4, %v1605_v34  ;;  %v439_v6 = vpop.f32.mrb[2].mxu1  ;;  %v328_v7 = vpop.f32.mrb[3].mxu0 }
 0x11d   :  { %v440_v9 = vadd.f32 %v439_v6, %v1608_v48  ;;  %v329_v10 = vadd.f32 %v328_v7, %v1611_v50  ;;  %v441_v11 = vpop.f32.mrb[3].mxu1 }
 0x11e   :  { %599 = vst [vmem:[%s1799_s3 + $0x30] sm:$0xff] %v327_v5  ;;  %v442_v12 = vadd.f32 %v441_v11, %v1614_v56 }
 0x11f   :  { %601 = vst [vmem:[%s1799_s3 + $0x40] sm:$0xff] %v440_v9  ;;  %600 = vst [vmem:[%s1799_s3 + $0x38] sm:$0xff] %v329_v10  ;;  %v332_v13 = vpop.f32.mrb[4].mxu0 }
 0x120   :  { %602 = vst [vmem:[%s1799_s3 + $0x48] sm:$0xff] %v442_v12  ;;  %v333_v14 = vadd.f32 %v332_v13, %v1605_v34  ;;  %v445_v17 = vpop.f32.mrb[4].mxu1  ;;  %v334_v19 = vpop.f32.mrb[5].mxu0 }
 0x121   :  { %v446_v20 = vadd.f32 %v445_v17, %v1608_v48  ;;  %v335_v21 = vadd.f32 %v334_v19, %v1611_v50  ;;  %v447_v16 = vpop.f32.mrb[5].mxu1 }
 0x122   :  { %605 = vst [vmem:[%s1799_s3 + $0x60] sm:$0xff] %v333_v14  ;;  %v448_v22 = vadd.f32 %v447_v16, %v1614_v56 }
 0x123   :  { %607 = vst [vmem:[%s1799_s3 + $0x70] sm:$0xff] %v446_v20  ;;  %606 = vst [vmem:[%s1799_s3 + $0x68] sm:$0xff] %v335_v21  ;;  %v338_v23 = vpop.f32.mrb[6].mxu0 }
 0x124   :  { %608 = vst [vmem:[%s1799_s3 + $0x78] sm:$0xff] %v448_v22  ;;  %v339_v25 = vadd.f32 %v338_v23, %v1605_v34  ;;  %v451_v27 = vpop.f32.mrb[6].mxu1  ;;  %v340_v28 = vpop.f32.mrb[7].mxu0 }
 0x125   :  { %v452_v29 = vadd.f32 %v451_v27, %v1608_v48  ;;  %v341_v30 = vadd.f32 %v340_v28, %v1611_v50  ;;  %v453_v31 = vpop.f32.mrb[7].mxu1 }
 0x126   :  { %611 = vst [vmem:[%s1799_s3 + $0x90] sm:$0xff] %v339_v25  ;;  %v454_v33 = vadd.f32 %v453_v31, %v1614_v56 }
 0x127   :  { %613 = vst [vmem:[%s1799_s3 + $0xa0] sm:$0xff] %v452_v29  ;;  %612 = vst [vmem:[%s1799_s3 + $0x98] sm:$0xff] %v341_v30  ;;  %v344_v35 = vpop.f32.mrb[8].mxu0 }
 0x128   :  { %614 = vst [vmem:[%s1799_s3 + $0xa8] sm:$0xff] %v454_v33  ;;  %v345_v36 = vadd.f32 %v344_v35, %v1605_v34  ;;  %v457_v37 = vpop.f32.mrb[8].mxu1  ;;  %v346_v38 = vpop.f32.mrb[9].mxu0 }
 0x129   :  { %v458_v39 = vadd.f32 %v457_v37, %v1608_v48  ;;  %v347_v40 = vadd.f32 %v346_v38, %v1611_v50  ;;  %v459_v41 = vpop.f32.mrb[9].mxu1 }
 0x12a   :  { %617 = vst [vmem:[%s1799_s3 + $0xc0] sm:$0xff] %v345_v36  ;;  %v460_v43 = vadd.f32 %v459_v41, %v1614_v56 }
 0x12b   :  { %619 = vst [vmem:[%s1799_s3 + $0xd0] sm:$0xff] %v458_v39  ;;  %618 = vst [vmem:[%s1799_s3 + $0xc8] sm:$0xff] %v347_v40  ;;  %v350_v44 = vpop.f32.mrb[10].mxu0 }
 0x12c   :  { %620 = vst [vmem:[%s1799_s3 + $0xd8] sm:$0xff] %v460_v43  ;;  %v351_v45 = vadd.f32 %v350_v44, %v1605_v34  ;;  %v463_v46 = vpop.f32.mrb[10].mxu1  ;;  %v352_v47 = vpop.f32.mrb[11].mxu0 }
 0x12d   :  { %v464_v49 = vadd.f32 %v463_v46, %v1608_v48  ;;  %v353_v51 = vadd.f32 %v352_v47, %v1611_v50  ;;  %v465_v52 = vpop.f32.mrb[11].mxu1 }
 0x12e   :  { %623 = vst [vmem:[%s1799_s3 + $0xf0] sm:$0xff] %v351_v45  ;;  %v466_v53 = vadd.f32 %v465_v52, %v1614_v56 }
 0x12f   :  { %625 = vst [vmem:[%s1799_s3 + $0x100] sm:$0xff] %v464_v49  ;;  %624 = vst [vmem:[%s1799_s3 + $0xf8] sm:$0xff] %v353_v51  ;;  %v356_v54 = vpop.f32.mrb[12].mxu0 }
 0x130   :  { %626 = vst [vmem:[%s1799_s3 + $0x108] sm:$0xff] %v466_v53  ;;  %v357_v55 = vadd.f32 %v356_v54, %v1605_v34  ;;  %v469_v57 = vpop.f32.mrb[12].mxu1  ;;  %v358_v59 = vpop.f32.mrb[13].mxu0 }
 0x131   :  { %v470_v60 = vadd.f32 %v469_v57, %v1608_v48  ;;  %v359_v8 = vadd.f32 %v358_v59, %v1611_v50  ;;  %v471_v18 = vpop.f32.mrb[13].mxu1 }
 0x132   :  { %629 = vst [vmem:[%s1799_s3 + $0x120] sm:$0xff] %v357_v55  ;;  %v472_v26 = vadd.f32 %v471_v18, %v1614_v56 }
 0x133   :  { %631 = vst [vmem:[%s1799_s3 + $0x130] sm:$0xff] %v470_v60  ;;  %630 = vst [vmem:[%s1799_s3 + $0x128] sm:$0xff] %v359_v8  ;;  %v362_v32 = vpop.f32.mrb[14].mxu0 }
 0x134   :  { %632 = vst [vmem:[%s1799_s3 + $0x138] sm:$0xff] %v472_v26  ;;  %v363_v42 = vadd.f32 %v362_v32, %v1605_v34  ;;  %v475_v58 = vpop.f32.mrb[14].mxu1  ;;  %v364_v61 = vpop.f32.mrb[15].mxu0  ;;  %v242_v34 = vsub.s32 4, %v1593_v15 }
 0x135   :  { %v476_v62 = vadd.f32 %v475_v58, %v1608_v48  ;;  %v365_v63 = vadd.f32 %v364_v61, %v1611_v50  ;;  %v477_v0 = vpop.f32.mrb[15].mxu1  ;;  %v246_v48 = vsub.s32 5, %v1593_v15 }
 0x136   :  { %635 = vst [vmem:[%s1799_s3 + $0x150] sm:$0xff] %v363_v42  ;;  %v478_v1 = vadd.f32 %v477_v0, %v1614_v56  ;;  %v243_v50 = vrot.slane %v1599_v24, %v242_v34 }
 0x137   :  { %637 = vst [vmem:[%s1799_s3 + $0x160] sm:$0xff] %v476_v62  ;;  %636 = vst [vmem:[%s1799_s3 + $0x158] sm:$0xff] %v365_v63  ;;  %v247_v56 = vrot.slane %v1599_v24, %v246_v48 }
 0x138   :  { %638 = vst [vmem:[%s1799_s3 + $0x168] sm:$0xff] %v478_v1 }
 0x157   :  { %v546_v2 = vpop.f32.mrb[16].mxu0 }
 0x158   :  { %v547_v3 = vadd.f32 %v546_v2, %v243_v50  ;;  %v570_v4 = vpop.f32.mrb[16].mxu1  ;;  %v548_v5 = vpop.f32.mrb[17].mxu0 }
 0x159   :  { %v571_v6 = vadd.f32 %v570_v4, %v243_v50  ;;  %v549_v7 = vadd.f32 %v548_v5, %v247_v56  ;;  %v572_v9 = vpop.f32.mrb[17].mxu1 }
 0x15a   :  { %597 = vst [vmem:[%s1799_s3 + $0x20] sm:$0xff] %v547_v3  ;;  %v573_v10 = vadd.f32 %v572_v9, %v247_v56 }
 0x15b   :  { %621 = vst [vmem:[%s1799_s3 + $0xe0] sm:$0xff] %v571_v6  ;;  %598 = vst [vmem:[%s1799_s3 + $0x28] sm:$0xff] %v549_v7  ;;  %v552_v15 = vpop.f32.mrb[18].mxu0 }
 0x15c   :  { %622 = vst [vmem:[%s1799_s3 + $0xe8] sm:$0xff] %v573_v10  ;;  %v553_v24 = vadd.f32 %v552_v15, %v243_v50  ;;  %v576_v11 = vpop.f32.mrb[18].mxu1  ;;  %v554_v12 = vpop.f32.mrb[19].mxu0 }
 0x15d   :  { %v577_v13 = vadd.f32 %v576_v11, %v243_v50  ;;  %v555_v14 = vadd.f32 %v554_v12, %v247_v56  ;;  %v578_v17 = vpop.f32.mrb[19].mxu1 }
 0x15e   :  { %603 = vst [vmem:[%s1799_s3 + $0x50] sm:$0xff] %v553_v24  ;;  %v579_v19 = vadd.f32 %v578_v17, %v247_v56 }
 0x15f   :  { %627 = vst [vmem:[%s1799_s3 + $0x110] sm:$0xff] %v577_v13  ;;  %604 = vst [vmem:[%s1799_s3 + $0x58] sm:$0xff] %v555_v14  ;;  %v558_v20 = vpop.f32.mrb[20].mxu0 }
 0x160   :  { %628 = vst [vmem:[%s1799_s3 + $0x118] sm:$0xff] %v579_v19  ;;  %v559_v21 = vadd.f32 %v558_v20, %v243_v50  ;;  %v582_v16 = vpop.f32.mrb[20].mxu1  ;;  %v560_v22 = vpop.f32.mrb[21].mxu0 }
 0x161   :  { %v583_v23 = vadd.f32 %v582_v16, %v243_v50  ;;  %v561_v25 = vadd.f32 %v560_v22, %v247_v56  ;;  %v584_v27 = vpop.f32.mrb[21].mxu1 }
 0x162   :  { %609 = vst [vmem:[%s1799_s3 + $0x80] sm:$0xff] %v559_v21  ;;  %v585_v28 = vadd.f32 %v584_v27, %v247_v56 }
 0x163   :  { %633 = vst [vmem:[%s1799_s3 + $0x140] sm:$0xff] %v583_v23  ;;  %610 = vst [vmem:[%s1799_s3 + $0x88] sm:$0xff] %v561_v25  ;;  %v564_v29 = vpop.f32.mrb[22].mxu0 }
 0x164   :  { %634 = vst [vmem:[%s1799_s3 + $0x148] sm:$0xff] %v585_v28  ;;  %v565_v30 = vadd.f32 %v564_v29, %v243_v50  ;;  %v588_v31 = vpop.f32.mrb[22].mxu1  ;;  %v566_v33 = vpop.f32.mrb[23].mxu0 }
 0x165   :  { %v589_v35 = vadd.f32 %v588_v31, %v243_v50  ;;  %v567_v36 = vadd.f32 %v566_v33, %v247_v56  ;;  %v590_v37 = vpop.f32.mrb[23].mxu1 }
 0x166   :  { %615 = vst [vmem:[%s1799_s3 + $0xb0] sm:$0xff] %v565_v30  ;;  %v591_v38 = vadd.f32 %v590_v37, %v247_v56 }
 0x167   :  { %639 = vst [vmem:[%s1799_s3 + $0x170] sm:$0xff] %v589_v35  ;;  %616 = vst [vmem:[%s1799_s3 + $0xb8] sm:$0xff] %v567_v36 }
 0x168   :  { %640 = vst [vmem:[%s1799_s3 + $0x178] sm:$0xff] %v591_v38 }

// kernel: forward.8
= control target key start
LH: loop header
LB: loop body
LE: loop exit
PB: predicated region body
PF: predicated region fallthrough
CT: control target
= control target key end

     0   :  { %s2951_s15 = smov 0   ;;  %s2953_s16 = smov 0   ;;  %s3574_s0 = inlined_call_operand.vmem [shape: s32[8,1], index: 0, kind: input, shape index: {}]   ;;  %s3575_s1 = inlined_call_operand.vmem [shape: f32[8,8,768], index: 1, kind: input, shape index: {}]   ;;  %s3576_s2 = inlined_call_operand.vmem [shape: f32[2,128,384], index: 2, kind: input, shape index: {}]   ;;  %s3577_s3 = inlined_call_operand.vmem [shape: f32[2,1,128], index: 3, kind: input, shape index: {}]   ;;  %s3578_s4 = inlined_call_operand.vmem [shape: f32[8,256], index: 4, kind: output, shape index: {}]  }
   0x1   :  { %s2955_s17 = smov 0  }
   0x2 LB: > { %s2967_s18 = sadd.s32 4294967295, %s2920_s17   ;;  %s2970_s19 = sadd.s32 1, %s2920_s17   ;;  %s2920_s17 = sphi %s2955_s17, %s3581_s17   ;;  %s2916_s16 = sphi %s2953_s16, %s3580_s16   ;;  %s2912_s15 = sphi %s2951_s15, %s3579_s15  }
   0x3   : > { %s39_s20 = ssub.s32 %s2920_s17, %s2970_s19  ;;  %s42_s21 = sadd.s32 1, %s2916_s16 }
   0x4   : > { %p40_p0 = scmp.eq.s32.totalorder %s39_s20, 0  ;;  %p49_p1 = scmp.ne.s32.totalorder %s2916_s16, %s2912_s15 }
   0x5   : > { %p50_p2 = scmp.eq.s32.totalorder %s2920_s17, 0  ;;  %p1878_p4 = scmp.ge.s32.totalorder %s2920_s17, 2 }
   0x6   : > { %s2979_s22 = scalar_select %p40_p0, %s2916_s16, %s42_s21  }
   0x7   : > { %p51_p3 = por %p50_p2, %p49_p1  ;;  %156 = sbr.rel (%p1878_p4) target bundleno = 31 (0x1f), region = 20 }
   0xe   : > { %159 = sbr.rel (!%p51_p3) target bundleno = 31 (0x1f), region = 24  ;;  %s161_s23 = sand.u32 (%p51_p3), 1, %s2916_s16  }
   0xf   : > { %s1912_s24 = smul.u32 (%p51_p3), 24, %s2920_s17 }
  0x10   : > { %s2785_s25 = smul.u32 (%p51_p3), 192, %s161_s23 }
  0x11   : > { %s2987_s28 = scalar_lea.vmem (%p51_p3), %s3575_s1, %s1912_s24 }
  0x12   : > { %v179_v0 = vld [vmem:[%s2987_s28] sm:$0xff] (%p51_p3)  ;;  %v181_v1 = vld [vmem:[%s2987_s28 + $0x8] sm:$0xff] (%p51_p3)  ;;  %v183_v2 = vld [vmem:[%s2987_s28 + $0x10] sm:$0xff] (%p51_p3)  ;;  %s2992_s29 = scalar_lea.vmem (%p51_p3), [#allocation2], %s2785_s25 }
  0x13   : > { %180 = vst [vmem:[%s2992_s29] sm:$0xff] (%p51_p3), %v179_v0  ;;  %182 = vst [vmem:[%s2992_s29 + $0x8] sm:$0xff] (%p51_p3), %v181_v1  ;;  %v185_v3 = vld [vmem:[%s2987_s28 + $0x30] sm:$0xff] (%p51_p3)  ;;  %v187_v4 = vld [vmem:[%s2987_s28 + $0x38] sm:$0xff] (%p51_p3) }
  0x14   : > { %184 = vst [vmem:[%s2992_s29 + $0x10] sm:$0xff] (%p51_p3), %v183_v2  ;;  %v189_v5 = vld [vmem:[%s2987_s28 + $0x40] sm:$0xff] (%p51_p3)  ;;  %186 = vst [vmem:[%s2992_s29 + $0x18] sm:$0xff] (%p51_p3), %v185_v3  ;;  %v193_v7 = vld [vmem:[%s2987_s28 + $0x68] sm:$0xff] (%p51_p3) }
  0x15   : > { %188 = vst [vmem:[%s2992_s29 + $0x20] sm:$0xff] %v187_v4  ;;  %190 = vst [vmem:[%s2992_s29 + $0x28] sm:$0xff] %v189_v5  ;;  %v191_v6 = vld [vmem:[%s2987_s28 + $0x60] sm:$0xff]  ;;  %v195_v8 = vld [vmem:[%s2987_s28 + $0x70] sm:$0xff] }
  0x16   : > { %192 = vst [vmem:[%s2992_s29 + $0x30] sm:$0xff] %v191_v6  ;;  %194 = vst [vmem:[%s2992_s29 + $0x38] sm:$0xff] %v193_v7  ;;  %v197_v9 = vld [vmem:[%s2987_s28 + $0x90] sm:$0xff]  ;;  %v199_v10 = vld [vmem:[%s2987_s28 + $0x98] sm:$0xff] }
  0x17   : > { %196 = vst [vmem:[%s2992_s29 + $0x40] sm:$0xff] %v195_v8  ;;  %v201_v11 = vld [vmem:[%s2987_s28 + $0xa0] sm:$0xff]  ;;  %198 = vst [vmem:[%s2992_s29 + $0x48] sm:$0xff] %v197_v9  ;;  %v205_v13 = vld [vmem:[%s2987_s28 + $0xc8] sm:$0xff] }
  0x18   : > { %200 = vst [vmem:[%s2992_s29 + $0x50] sm:$0xff] %v199_v10  ;;  %202 = vst [vmem:[%s2992_s29 + $0x58] sm:$0xff] %v201_v11  ;;  %v203_v12 = vld [vmem:[%s2987_s28 + $0xc0] sm:$0xff]  ;;  %v207_v14 = vld [vmem:[%s2987_s28 + $0xd0] sm:$0xff] }
  0x19   : > { %204 = vst [vmem:[%s2992_s29 + $0x60] sm:$0xff] %v203_v12  ;;  %206 = vst [vmem:[%s2992_s29 + $0x68] sm:$0xff] %v205_v13  ;;  %v209_v15 = vld [vmem:[%s2987_s28 + $0xf0] sm:$0xff]  ;;  %v211_v16 = vld [vmem:[%s2987_s28 + $0xf8] sm:$0xff] }
  0x1a   : > { %208 = vst [vmem:[%s2992_s29 + $0x70] sm:$0xff] %v207_v14  ;;  %v213_v17 = vld [vmem:[%s2987_s28 + $0x100] sm:$0xff]  ;;  %210 = vst [vmem:[%s2992_s29 + $0x78] sm:$0xff] %v209_v15  ;;  %v217_v19 = vld [vmem:[%s2987_s28 + $0x128] sm:$0xff] }
  0x1b   : > { %212 = vst [vmem:[%s2992_s29 + $0x80] sm:$0xff] %v211_v16  ;;  %214 = vst [vmem:[%s2992_s29 + $0x88] sm:$0xff] %v213_v17  ;;  %v215_v18 = vld [vmem:[%s2987_s28 + $0x120] sm:$0xff]  ;;  %v219_v20 = vld [vmem:[%s2987_s28 + $0x130] sm:$0xff] }
  0x1c   : > { %216 = vst [vmem:[%s2992_s29 + $0x90] sm:$0xff] %v215_v18  ;;  %218 = vst [vmem:[%s2992_s29 + $0x98] sm:$0xff] %v217_v19  ;;  %v221_v21 = vld [vmem:[%s2987_s28 + $0x150] sm:$0xff]  ;;  %v223_v22 = vld [vmem:[%s2987_s28 + $0x158] sm:$0xff] }
  0x1d   : > { %220 = vst [vmem:[%s2992_s29 + $0xa0] sm:$0xff] %v219_v20  ;;  %v225_v23 = vld [vmem:[%s2987_s28 + $0x160] sm:$0xff]  ;;  %222 = vst [vmem:[%s2992_s29 + $0xa8] sm:$0xff] %v221_v21 }
  0x1e   : > { %224 = vst [vmem:[%s2992_s29 + $0xb0] sm:$0xff] %v223_v22  ;;  %226 = vst [vmem:[%s2992_s29 + $0xb8] sm:$0xff] %v225_v23 }
  0x1f PF: > { %p1880_p5 = scmp.ge.s32.totalorder %s2920_s17, 1  ;;  %p245_p6 = scmp.lt.s32.totalorder %s2920_s17, 3 }
  0x21   : > { %p246_p7 = pnand %p1880_p5, %p245_p6 }
  0x22   : > { %p285_p8 = scmp.lt.s32.totalorder (!%p246_p7), %s2967_s18, 1  ;;  %p297_p9 = scmp.eq.s32.totalorder (!%p246_p7), %s2967_s18, 1  ;;  %v2922_v24 = vmov (!%p246_p7), 0.0|0.0   ;;  %v2923_v25 = vmov (!%p246_p7), 0.0   ;;  %vm2924_vm0 = vmmov (!%p246_p7), 0   ;;  %v2925_v26 = vmov (!%p246_p7), 0  }
  0x23   : > { %249 = sbr.rel (%p246_p7) target bundleno = 2162 (0x872), region = 55  ;;  %2369 = vmatprep.subr.bf16.mxu1 (!%p246_p7), %v2922_v24  ;;  %417 = vmatprep.mubr.f32.mxu0 (!%p246_p7), %v2923_v25  ;;  %v3058_v27 = vld [vmem:[%s3574_s0] sm:$0xff] (!%p246_p7)  ;;  %s252_s17 = sand.u32 (!%p246_p7), 1, %s2912_s15  }
  0x24   : > { %2089 = vmatprep.mubr.msk.f32.mxu1 (!%p246_p7), %vm2924_vm0, %v2923_v25  ;;  %2816 = vset.pattern.permute.xlu0 (!%p246_p7), %v2925_v26  ;;  %s2786_s20 = smul.u32 (!%p246_p7), 192, %s252_s17 }
  0x25   : > { %2817 = vset.pattern.permute.xlu1 (!%p246_p7), %v2925_v26 }
  0x26   : > { %s3259_s23 = scalar_lea.vmem (!%p246_p7), [#allocation2], %s2786_s20 }
  0x2a   : > { %s3046_s30 = scalar_select %p285_p8, %s2967_s18, 1 }
  0x2b   : > { %s3053_s5 = scalar_select %p297_p9, 7, 0 }
  0x2c   : > { %s2787_s8 = smul.u32 384, %s3046_s30  ;;  %s292_s26 = scalar_lea.vmem %s3577_s3, %s3046_s30 }
  0x2d   : > { %v524_v28 = vstv %s3053_s5  ;;  %s3065_s9 = scalar_select %p297_p9, 6, 1 }
  0x2e   : > { %s3070_s12 = scalar_lea.vmem %s3576_s2, %s2787_s8  ;;  %vm525_vm1 = vcmp.lt.s32.totalorder %v524_v28, %v3058_v27  ;;  %s1913_s21 = smul.u32 24, %s3053_s5 }
  0x2f   : > { %v306_v29 = vld [vmem:[%s3070_s12 + $0x8] sm:$0xff]  ;;  %v309_v30 = vld [vmem:[%s3070_s12 + $0x20] sm:$0xff]  ;;  %v526_v32 = vsel %vm525_vm1, 1, %v2925_v26  ;;  %v702_v33 = vstv %s3065_s9  ;;  %s3080_s13 = scalar_select %p297_p9, 3, 4  ;;  %v308_v35 = vld [vmem:[%s3070_s12 + $0x18] sm:$0xff] }
  0x30   : > { %v305_v31 = vld [vmem:[%s3070_s12] sm:$0xff]  ;;  %v3082_v34 = vpack.c.bf16 %v309_v30, %v306_v29  ;;  %v312_v36 = vld [vmem:[%s3070_s12 + $0x38] sm:$0xff]  ;;  %v315_v37 = vld [vmem:[%s3070_s12 + $0x50] sm:$0xff]  ;;  %528 = vperm.xlu0 %2816, %v526_v32   ;;  %vm703_vm2 = vcmp.lt.s32.totalorder %v702_v33, %v3058_v27  ;;  %s3090_s14 = scalar_select %p297_p9, 1, 6 }
  0x31   : > { %v3092_v38 = vpack.c.bf16 %v308_v35, %v305_v31  ;;  %v3094_v39 = vpack.c.bf16 %v315_v37, %v312_v36  ;;  %v311_v40 = vld [vmem:[%s3070_s12 + $0x30] sm:$0xff]  ;;  %v314_v41 = vld [vmem:[%s3070_s12 + $0x48] sm:$0xff]  ;;  %v704_v43 = vsel %vm703_vm2, 1, %v2925_v26  ;;  %v1236_v44 = vstv %s3080_s13  ;;  %v321_v45 = vld [vmem:[%s3070_s12 + $0x80] sm:$0xff]  ;;  %s301_s24 = scalar_lea.vmem %s3259_s23, %s1913_s21 [#allocation2]  ;;  %s1914_s6 = smul.u32 24, %s3065_s9 }
  0x32   : > { %v318_v42 = vld [vmem:[%s3070_s12 + $0x68] sm:$0xff]  ;;  %2338 = vmatprep.subr.bf16.mxu0 %v3082_v34  ;;  %vm1237_vm3 = vcmp.lt.s32.totalorder %v1236_v44, %v3058_v27  ;;  %v3105_v46 = vpack.c.bf16 %v314_v41, %v311_v40  ;;  %v317_v48 = vld [vmem:[%s3070_s12 + $0x60] sm:$0xff]  ;;  %v320_v49 = vld [vmem:[%s3070_s12 + $0x78] sm:$0xff]  ;;  %v1592_v50 = vstv %s3090_s14  ;;  %s3308_s27 = scalar_select %p297_p9, 5, 2 }
  0x33   : > { %2340 = vmatpush1.bf16.msra.mxu0 %v3092_v38  ;;  %v3108_v47 = vpack.c.bf16 %v321_v45, %v318_v42  ;;  %v324_v51 = vld [vmem:[%s3070_s12 + $0x98] sm:$0xff]  ;;  %v327_v52 = vld [vmem:[%s3070_s12 + $0xb0] sm:$0xff]  ;;  %v1238_v53 = vsel %vm1237_vm3, 1, %v2925_v26  ;;  %v3117_v54 = vpack.c.bf16 %v320_v49, %v317_v48  ;;  %vm1593_vm4 = vcmp.lt.s32.totalorder %v1592_v50, %v3058_v27  ;;  %v326_v57 = vld [vmem:[%s3070_s12 + $0xa8] sm:$0xff]  ;;  %s3312_s28 = scalar_select %p297_p9, 4, 3 }
  0x34   : > { %2342 = vmatprep.subr.bf16.mxu0 %v3094_v39  ;;  %706 = vperm.xlu0 %2816, %v704_v43   ;;  %v323_v55 = vld [vmem:[%s3070_s12 + $0x90] sm:$0xff]  ;;  %v3122_v56 = vpack.c.bf16 %v327_v52, %v324_v51  ;;  %v310_v59 = vld [vmem:[%s3070_s12 + $0x28] sm:$0xff]  ;;  %v333_v61 = vld [vmem:[%s3070_s12 + $0xe0] sm:$0xff]  ;;  %v1594_v1 = vsel %vm1593_vm4, 1, %v2925_v26  ;;  %s3317_s29 = scalar_select %p297_p9, 2, 5 }
  0x35   : > { %v307_v58 = vld [vmem:[%s3070_s12 + $0x10] sm:$0xff]  ;;  %v330_v60 = vld [vmem:[%s3070_s12 + $0xc8] sm:$0xff]  ;;  %v313_v63 = vld [vmem:[%s3070_s12 + $0x40] sm:$0xff]  ;;  %v3135_v2 = vpack.c.bf16 %v326_v57, %v323_v55  ;;  %s3326_s5 = scalar_select %p297_p9, 0, 7 }
  0x36   : > { %v3129_v62 = vpack.c.bf16 %v310_v59, %v307_v58  ;;  %v316_v0 = vld [vmem:[%s3070_s12 + $0x58] sm:$0xff]  ;;  %v329_v3 = vld [vmem:[%s3070_s12 + $0xc0] sm:$0xff]  ;;  %v3142_v5 = vpack.c.bf16 %v333_v61, %v330_v60  ;;  %v319_v7 = vld [vmem:[%s3070_s12 + $0x70] sm:$0xff]  ;;  %s535_s18 = scalar_lea.vmem %s3259_s23, %s1914_s6 [#allocation2]  ;;  %s1915_s7 = smul.u32 24, %s3308_s27 }
  0x37   : > { %2344 = vmatpush1.bf16.msra.mxu0 %v3105_v46  ;;  %v3139_v4 = vpack.c.bf16 %v316_v0, %v313_v63  ;;  %v332_v6 = vld [vmem:[%s3070_s12 + $0xd8] sm:$0xff]  ;;  %v322_v8 = vld [vmem:[%s3070_s12 + $0x88] sm:$0xff]  ;;  %v339_v10 = vld [vmem:[%s3070_s12 + $0x110] sm:$0xff]  ;;  %s1916_s9 = smul.u32 24, %s3312_s28 }
  0x38   : > { %2346 = vmatprep.subr.bf16.mxu0 %v3108_v47  ;;  %1240 = vperm.xlu0 %2816, %v1238_v53   ;;  %v336_v9 = vld [vmem:[%s3070_s12 + $0xf8] sm:$0xff]  ;;  %v3151_v11 = vpack.c.bf16 %v332_v6, %v329_v3  ;;  %v335_v12 = vld [vmem:[%s3070_s12 + $0xf0] sm:$0xff]  ;;  %v3155_v13 = vpack.c.bf16 %v322_v8, %v319_v7  ;;  %v338_v15 = vld [vmem:[%s3070_s12 + $0x108] sm:$0xff]  ;;  %s713_s8 = scalar_lea.vmem %s3259_s23, %s1915_s7 [#allocation2]  ;;  %s1917_s11 = smul.u32 24, %s3080_s13 }
  0x39   : > { %2371 = vmatpush3.bf16.msra.mxu1 %v3129_v62  ;;  %v3158_v14 = vpack.c.bf16 %v339_v10, %v336_v9  ;;  %v325_v16 = vld [vmem:[%s3070_s12 + $0xa0] sm:$0xff]  ;;  %v328_v17 = vld [vmem:[%s3070_s12 + $0xb8] sm:$0xff]  ;;  %v342_v18 = vld [vmem:[%s3070_s12 + $0x128] sm:$0xff]  ;;  %v3167_v20 = vpack.c.bf16 %v338_v15, %v335_v12  ;;  %s891_s10 = scalar_lea.vmem %s3259_s23, %s1916_s9 [#allocation2]  ;;  %s1918_s13 = smul.u32 24, %s3317_s29 }
  0x3a   : > { %2372 = vmatprep.subr.bf16.mxu1 %v2922_v24  ;;  %v345_v19 = vld [vmem:[%s3070_s12 + $0x140] sm:$0xff]  ;;  %v3171_v22 = vpack.c.bf16 %v328_v17, %v325_v16  ;;  %v344_v28 = vld [vmem:[%s3070_s12 + $0x138] sm:$0xff]  ;;  %v331_v29 = vld [vmem:[%s3070_s12 + $0xd0] sm:$0xff]  ;;  %s1919_s20 = smul.u32 24, %s3090_s14 }
  0x3b   : > { %2348 = vmatpush1.bf16.msra.mxu0 %v3117_v54  ;;  %v341_v21 = vld [vmem:[%s3070_s12 + $0x120] sm:$0xff]  ;;  %v3174_v23 = vpack.c.bf16 %v345_v19, %v342_v18  ;;  %v334_v30 = vld [vmem:[%s3070_s12 + $0xe8] sm:$0xff]  ;;  %v348_v31 = vld [vmem:[%s3070_s12 + $0x158] sm:$0xff]  ;;  %s1247_s17 = scalar_lea.vmem %s3259_s23, %s1918_s13 [#allocation2]  ;;  %s1920_s14 = smul.u32 24, %s3326_s5 }
  0x3c   : > { %2350 = vmatprep.subr.bf16.mxu0 %v3122_v56  ;;  %1596 = vperm.xlu0 %2816, %v1594_v1   ;;  %v351_v32 = vld [vmem:[%s3070_s12 + $0x170] sm:$0xff]  ;;  %v3183_v33 = vpack.c.bf16 %v344_v28, %v341_v21  ;;  %v3187_v36 = vpack.c.bf16 %v334_v30, %v331_v29  ;;  %v350_v40 = vld [vmem:[%s3070_s12 + $0x168] sm:$0xff]  ;;  %v337_v41 = vld [vmem:[%s3070_s12 + $0x100] sm:$0xff]  ;;  %s1425_s21 = scalar_lea.vmem %s3259_s23, %s1919_s20 [#allocation2] }
  0x3d   : > { %2374 = vmatpush3.bf16.msra.mxu1 %v3139_v4  ;;  %v347_v35 = vld [vmem:[%s3070_s12 + $0x150] sm:$0xff]  ;;  %v3190_v37 = vpack.c.bf16 %v351_v32, %v348_v31  ;;  %v340_v42 = vld [vmem:[%s3070_s12 + $0x118] sm:$0xff]  ;;  %v346_v48 = vld [vmem:[%s3070_s12 + $0x148] sm:$0xff] }
  0x3e   : > { %2375 = vmatprep.subr.bf16.mxu1 %v2922_v24  ;;  %v3197_v43 = vpack.c.bf16 %v350_v40, %v347_v35  ;;  %v3200_v44 = vpack.c.bf16 %v340_v42, %v337_v41  ;;  %v343_v45 = vld [vmem:[%s3070_s12 + $0x130] sm:$0xff]  ;;  %v349_v50 = vld [vmem:[%s3070_s12 + $0x160] sm:$0xff]  ;;  %v352_v51 = vld [vmem:[%s3070_s12 + $0x178] sm:$0xff]  ;;  %v880_v35 = vstv %s3308_s27  ;;  %s1069_s12 = scalar_lea.vmem %s3259_s23, %s1917_s11 [#allocation2] }
  0x3f   : > { %2352 = vmatpush1.bf16.msra.mxu0 %v3135_v2  ;;  %v3208_v49 = vpack.c.bf16 %v346_v48, %v343_v45  ;;  %v3216_v52 = vpack.c.bf16 %v352_v51, %v349_v50  ;;  %v302_v53 = vld [vmem:[%s301_s24] sm:$0xff]  ;;  %v303_v55 = vld [vmem:[%s301_s24 + $0x8] sm:$0xff]  ;;  %v304_v15 = vld [vmem:[%s301_s24 + $0x10] sm:$0xff]  ;;  %vm881_vm6 = vcmp.lt.s32.totalorder %v880_v35, %v3058_v27  ;;  %v1058_v40 = vstv %s3312_s28  ;;  %s1603_s24 = scalar_lea.vmem %s3259_s23, %s1920_s14 [#allocation2]  ;;  %s1882_s23 = sshll.u32 %s3046_s30, 3 }
  0x40   : > { %2354 = vmatprep.subr.bf16.mxu0 %v3142_v5  ;;  %v3266_v8 = vld [vmem:[%s292_s26] ss:$0 sm:$0xff]  ;;  %v882_v41 = vsel %vm881_vm6, 1, %v2925_v26  ;;  %vm1059_vm7 = vcmp.lt.s32.totalorder %v1058_v40, %v3058_v27  ;;  %v1414_v42 = vstv %s3317_s29  ;;  %v1770_v48 = vstv %s3326_s5  ;;  %s296_s26 = scalar_lea.vmem %s3578_s4, %s1882_s23 }
  0x41   : > { %2377 = vmatpush3.bf16.msra.mxu1 %v3155_v13  ;;  %884 = vperm.xlu1 %2817, %v882_v41   ;;  %v1060_v45 = vsel %vm1059_vm7, 1, %v2925_v26  ;;  %vm1415_vm8 = vcmp.lt.s32.totalorder %v1414_v42, %v3058_v27  ;;  %vm1771_vm9 = vcmp.lt.s32.totalorder %v1770_v48, %v3058_v27 }
  0x42   : > { %2378 = vmatprep.subr.bf16.mxu1 %v2922_v24  ;;  %v1416_v50 = vsel %vm1415_vm8, 1, %v2925_v26  ;;  %v1772_v51 = vsel %vm1771_vm9, 1, %v2925_v26 }
  0x43   : > { %2356 = vmatpush1.bf16.msra.mxu0 %v3151_v11 }
  0x44   : > { %2358 = vmatprep.subr.bf16.mxu0 %v3158_v14 }
  0x45   : > { %2380 = vmatpush3.bf16.msra.mxu1 %v3171_v22  ;;  %1062 = vperm.xlu1 %2817, %v1060_v45  }
  0x46   : > { %2381 = vmatprep.subr.bf16.mxu1 %v2922_v24 }
  0x47   : > { %2360 = vmatpush1.bf16.msra.mxu0 %v3167_v20 }
  0x48   : > { %2362 = vmatprep.subr.bf16.mxu0 %v3174_v23 }
  0x49   : > { %2383 = vmatpush3.bf16.msra.mxu1 %v3187_v36  ;;  %1418 = vperm.xlu1 %2817, %v1416_v50  }
  0x4a   : > { %2384 = vmatprep.subr.bf16.mxu1 %v2922_v24 }
  0x4b   : > { %2364 = vmatpush1.bf16.msra.mxu0 %v3183_v33 }
  0x4c   : > { %2366 = vmatprep.subr.bf16.mxu0 %v3190_v37 }
  0x4d   : > { %2386 = vmatpush3.bf16.msra.mxu1 %v3200_v44  ;;  %1774 = vperm.xlu1 %2817, %v1772_v51  }
  0x4e   : > { %2387 = vmatprep.subr.bf16.mxu1 %v2922_v24 }
  0x4f   : > { %2368 = vmatpush1.bf16.msra.mxu0 %v3197_v43 }
  0x50   : > { %2394 = vmatprep.subr.bf16.mxu0 %v3082_v34 }
  0x51   : > { %2389 = vmatpush3.bf16.msra.mxu1 %v3208_v49 }
  0x52   : > { %418 = vmatmul.mubr.f32.vlgmr.msra.gmra.mrb[0].mxu0 %v2923_v25  ;;  %2390 = vmatprep.subr.bf16.mxu1 %v2922_v24 }
  0x53   : > { %2396 = vmatpush1.bf16.msra.mxu0 %v3092_v38  ;;  %603 = vmatprep.mubr.f32.mxu0 %v2923_v25 }
  0x54   : > { %2398 = vmatprep.subr.bf16.mxu0 %v3094_v39 }
  0x55   : > { %2392 = vmatpush3.bf16.msra.mxu1 %v3216_v52 }
  0x56   : > { %2425 = vmatprep.subr.bf16.mxu1 %v2922_v24 }
  0x57   : > { %2400 = vmatpush1.bf16.msra.mxu0 %v3105_v46 }
  0x58   : > { %2402 = vmatprep.subr.bf16.mxu0 %v3108_v47  ;;  %2090 = vmatmul.mubr.f32.vlgmr.msra.gmra.mrb[0].mxu1 %v2923_v25 }
  0x59   : > { %2427 = vmatpush3.bf16.msra.mxu1 %v3129_v62  ;;  %2124 = vmatprep.mubr.msk.f32.mxu1 %vm2924_vm0, %v2923_v25 }
  0x5a   : > { %2428 = vmatprep.subr.bf16.mxu1 %v2922_v24 }
  0x5b   : > { %2404 = vmatpush1.bf16.msra.mxu0 %v3117_v54 }
  0x5c   : > { %2406 = vmatprep.subr.bf16.mxu0 %v3122_v56 }
  0x5d   : > { %2430 = vmatpush3.bf16.msra.mxu1 %v3139_v4 }
  0x5e   : > { %2431 = vmatprep.subr.bf16.mxu1 %v2922_v24 }
  0x5f   : > { %2408 = vmatpush1.bf16.msra.mxu0 %v3135_v2 }
  0x60   : > { %2410 = vmatprep.subr.bf16.mxu0 %v3142_v5 }
  0x61   : > { %2433 = vmatpush3.bf16.msra.mxu1 %v3155_v13 }
  0x62   : > { %2434 = vmatprep.subr.bf16.mxu1 %v2922_v24 }
  0x63   : > { %2412 = vmatpush1.bf16.msra.mxu0 %v3151_v11 }
  0x64   : > { %2414 = vmatprep.subr.bf16.mxu0 %v3158_v14 }
  0x65   : > { %2436 = vmatpush3.bf16.msra.mxu1 %v3171_v22 }
  0x66   : > { %2437 = vmatprep.subr.bf16.mxu1 %v2922_v24 }
  0x67   : > { %2416 = vmatpush1.bf16.msra.mxu0 %v3167_v20 }
  0x68   : > { %2418 = vmatprep.subr.bf16.mxu0 %v3174_v23 }
  0x69   : > { %2439 = vmatpush3.bf16.msra.mxu1 %v3187_v36 }
  0x6a   : > { %2440 = vmatprep.subr.bf16.mxu1 %v2922_v24 }
  0x6b   : > { %2420 = vmatpush1.bf16.msra.mxu0 %v3183_v33 }
  0x6c   : > { %2422 = vmatprep.subr.bf16.mxu0 %v3190_v37 }
  0x6d   : > { %2442 = vmatpush3.bf16.msra.mxu1 %v3200_v44 }
  0x6e   : > { %2443 = vmatprep.subr.bf16.mxu1 %v2922_v24 }
  0x6f   : > { %2424 = vmatpush1.bf16.msra.mxu0 %v3197_v43 }
  0x70   : > { %2450 = vmatprep.subr.bf16.mxu0 %v3082_v34 }
  0x71   : > { %2445 = vmatpush3.bf16.msra.mxu1 %v3208_v49 }
  0x72   : > { %2446 = vmatprep.subr.bf16.mxu1 %v2922_v24 }
  0x75   : > { %2448 = vmatpush3.bf16.msra.mxu1 %v3216_v52 }
  0x76   : > { %2481 = vmatprep.subr.bf16.mxu1 %v2922_v24 }
  0xaf   : > { %v529_v28 = vpop.permute.xlu0 %528 }
  0xb0   : > { %vm530_vm5 = vcmp.eq.s32.totalorder %v529_v28, 1 }
  0xb3   : > { %v707_v28 = vpop.permute.xlu0 %706 }
  0xb4   : > { %vm708_vm10 = vcmp.eq.s32.totalorder %v707_v28, 1 }
 0x125   : > { %v419_v57 = vpop.f32.mrb[0].mxu0 }
 0x126   : > { %v494_v58 = vadd.f32 %v419_v57, %v302_v53  ;;  %v421_v59 = vpop.f32.mrb[1].mxu0  ;;  %v536_v53 = vld [vmem:[%s535_s18] sm:$0xff] }
 0x127   : > { %v501_v60 = vadd.f32 %v421_v59, %v303_v55  ;;  %v537_v55 = vld [vmem:[%s535_s18 + $0x8] sm:$0xff] }
 0x128   : > { %v1884_v61 = vmul.f32 -1.442695, %v494_v58 }
 0x129   : > { %v1885_v63 = vmul.f32 -1.442695, %v501_v60 }
 0x12a   : > { %2818 = vpow2.f32 %v1884_v61 }
 0x12b   : > { %v490_v0 = vpop.f32.mrb[0].mxu1  ;;  %2820 = vpow2.f32 %v1885_v63 }
 0x12c   : > { %v2091_v1 = vpop.f32.mrb[1].mxu1  ;;  %v515_v10 = vadd.f32 %v3266_v8, %v490_v0 }
 0x134   : > { %v2819_v3 = vpop.eup %2818 }
 0x135   : > { %v498_v6 = vadd.f32 1.0, %v2819_v3  ;;  %v2821_v7 = vpop.eup %2820 }
 0x136   : > { %v505_v9 = vadd.f32 1.0, %v2821_v7 }
 0x137   : > { %2822 = vrcp.f32 %v498_v6 }
 0x138   : > { %2824 = vrcp.f32 %v505_v9 }
 0x141   : > { %v2823_v12 = vpop.eup %2822 }
 0x142   : > { %v516_v16 = vmul.f32 %v2823_v12, %v515_v10  ;;  %v2825_v18 = vpop.eup %2824  ;;  %v538_v10 = vld [vmem:[%s535_s18 + $0x10] sm:$0xff] }
 0x143   : > { %v519_v19 = vsub.f32 1.0, %v2825_v18  ;;  %v521_v30 = vmul.f32 0.0, %v2825_v18 }
 0x144   : > { %v517_v17 = vadd.f32 %v516_v16, %v304_v15 }
 0x146   : > { %2826 = vtanh.f32 %v517_v17 }
 0x150   : > { %v2827_v21 = vpop.eup %2826 }
 0x151   : > { %v520_v29 = vmul.f32 %v2827_v21, %v519_v19 }
 0x153   : > { %v522_v31 = vadd.f32 %v521_v30, %v520_v29 }
 0x155   : > { %v3269_v32 = vsel %vm530_vm5, %v522_v31, 0.0  ;;  %1888 = vmatmul.mubr.msk.f32.vlgmr.msra.gmra.mrb[2].mxu0 %vm530_vm5, %v522_v31  ;;  %2125 = vmatmul.mubr.msk.f32.vlgmr.msra.gmra.mrb[2].mxu1 %vm530_vm5, %v522_v31  ;;  %v714_v31 = vld [vmem:[%s713_s8] sm:$0xff] }
 0x156   : > { %2452 = vmatpush1.bf16.msra.mxu0 %v3092_v38  ;;  %2483 = vmatpush3.bf16.msra.mxu1 %v3129_v62 }
 0x157   : > { %2454 = vmatprep.subr.bf16.mxu0 %v3094_v39  ;;  %2484 = vmatprep.subr.bf16.mxu1 %v2922_v24 }
 0x158   : > { %781 = vmatprep.mubr.f32.mxu0 %v2923_v25  ;;  %2159 = vmatprep.mubr.msk.f32.mxu1 %vm2924_vm0, %v2923_v25 }
 0x15a   : > { %2456 = vmatpush1.bf16.msra.mxu0 %v3105_v46  ;;  %2486 = vmatpush3.bf16.msra.mxu1 %v3139_v4 }
 0x15b   : > { %2458 = vmatprep.subr.bf16.mxu0 %v3108_v47  ;;  %2487 = vmatprep.subr.bf16.mxu1 %v2922_v24 }
 0x15e   : > { %2460 = vmatpush1.bf16.msra.mxu0 %v3117_v54  ;;  %2489 = vmatpush3.bf16.msra.mxu1 %v3155_v13 }
 0x15f   : > { %2462 = vmatprep.subr.bf16.mxu0 %v3122_v56  ;;  %2490 = vmatprep.subr.bf16.mxu1 %v2922_v24 }
 0x162   : > { %2464 = vmatpush1.bf16.msra.mxu0 %v3135_v2  ;;  %2492 = vmatpush3.bf16.msra.mxu1 %v3171_v22 }
 0x163   : > { %2466 = vmatprep.subr.bf16.mxu0 %v3142_v5  ;;  %2493 = vmatprep.subr.bf16.mxu1 %v2922_v24 }
 0x166   : > { %2468 = vmatpush1.bf16.msra.mxu0 %v3151_v11  ;;  %2495 = vmatpush3.bf16.msra.mxu1 %v3187_v36 }
 0x167   : > { %2470 = vmatprep.subr.bf16.mxu0 %v3158_v14  ;;  %2496 = vmatprep.subr.bf16.mxu1 %v2922_v24 }
 0x16a   : > { %2472 = vmatpush1.bf16.msra.mxu0 %v3167_v20  ;;  %2498 = vmatpush3.bf16.msra.mxu1 %v3200_v44 }
 0x16b   : > { %2474 = vmatprep.subr.bf16.mxu0 %v3174_v23  ;;  %2499 = vmatprep.subr.bf16.mxu1 %v2922_v24 }
 0x16e   : > { %2476 = vmatpush1.bf16.msra.mxu0 %v3183_v33  ;;  %2501 = vmatpush3.bf16.msra.mxu1 %v3208_v49 }
 0x16f   : > { %2478 = vmatprep.subr.bf16.mxu0 %v3190_v37  ;;  %2502 = vmatprep.subr.bf16.mxu1 %v2922_v24 }
 0x172   : > { %2480 = vmatpush1.bf16.msra.mxu0 %v3197_v43  ;;  %2504 = vmatpush3.bf16.msra.mxu1 %v3216_v52 }
 0x173   : > { %2506 = vmatprep.subr.bf16.mxu0 %v3082_v34  ;;  %2537 = vmatprep.subr.bf16.mxu1 %v2922_v24 }
 0x228   : > { %v605_v57 = vpop.f32.mrb[2].mxu0  ;;  %v676_v58 = vpop.f32.mrb[2].mxu1 }
 0x229   : > { %v680_v59 = vadd.f32 %v605_v57, %v536_v53  ;;  %v607_v60 = vpop.f32.mrb[3].mxu0  ;;  %v2126_v61 = vpop.f32.mrb[3].mxu1  ;;  %v694_v26 = vadd.f32 %v3266_v8, %v676_v58 }
 0x22a   : > { %v687_v63 = vadd.f32 %v607_v60, %v537_v55  ;;  %v716_v61 = vld [vmem:[%s713_s8 + $0x10] sm:$0xff] }
 0x22b   : > { %v1890_v0 = vmul.f32 -1.442695, %v680_v59 }
 0x22c   : > { %v1891_v1 = vmul.f32 -1.442695, %v687_v63 }
 0x22d   : > { %2828 = vpow2.f32 %v1890_v0 }
 0x22e   : > { %2830 = vpow2.f32 %v1891_v1 }
 0x237   : > { %v2829_v3 = vpop.eup %2828 }
 0x238   : > { %v2831_v27 = vpop.eup %2830  ;;  %v684_v6 = vadd.f32 1.0, %v2829_v3 }
 0x239   : > { %v691_v7 = vadd.f32 1.0, %v2831_v27 }
 0x23a   : > { %2832 = vrcp.f32 %v684_v6  ;;  %v885_v6 = vpop.permute.xlu1 %884 }
 0x23b   : > { %2834 = vrcp.f32 %v691_v7  ;;  %vm886_vm11 = vcmp.eq.s32.totalorder %v885_v6, 1 }
 0x244   : > { %v2833_v9 = vpop.eup %2832 }
 0x245   : > { %v2835_v12 = vpop.eup %2834  ;;  %v695_v15 = vmul.f32 %v2833_v9, %v694_v26 }
 0x246   : > { %v700_v16 = vmul.f32 %v2835_v12, %v3269_v32  ;;  %v698_v18 = vsub.f32 1.0, %v2835_v12  ;;  %v892_v12 = vld [vmem:[%s891_s10] sm:$0xff] }
 0x247   : > { %v696_v17 = vadd.f32 %v695_v15, %v538_v10 }
 0x249   : > { %2836 = vtanh.f32 %v696_v17 }
 0x253   : > { %v2837_v19 = vpop.eup %2836 }
 0x254   : > { %v699_v21 = vmul.f32 %v2837_v19, %v698_v18  ;;  %v893_v18 = vld [vmem:[%s891_s10 + $0x8] sm:$0xff] }
 0x256   : > { %v701_v29 = vadd.f32 %v700_v16, %v699_v21 }
 0x258   : > { %v3339_v30 = vsel %vm708_vm10, %v701_v29, %v3269_v32  ;;  %v715_v32 = vld [vmem:[%s713_s8 + $0x8] sm:$0xff] }
 0x259   : > { %782 = vmatmul.mubr.f32.vlgmr.msra.gmra.mrb[4].mxu0 %v3339_v30  ;;  %2160 = vmatmul.mubr.f32.vlgmr.msra.gmra.mrb[4].mxu1 %v3339_v30 }
 0x25a   : > { %2508 = vmatpush1.bf16.msra.mxu0 %v3092_v38  ;;  %2539 = vmatpush3.bf16.msra.mxu1 %v3129_v62 }
 0x25b   : > { %2510 = vmatprep.subr.bf16.mxu0 %v3094_v39  ;;  %2540 = vmatprep.subr.bf16.mxu1 %v2922_v24 }
 0x25c   : > { %959 = vmatprep.mubr.f32.mxu0 %v2923_v25  ;;  %2194 = vmatprep.mubr.msk.f32.mxu1 %vm2924_vm0, %v2923_v25 }
 0x25e   : > { %2512 = vmatpush1.bf16.msra.mxu0 %v3105_v46  ;;  %2542 = vmatpush3.bf16.msra.mxu1 %v3139_v4 }
 0x25f   : > { %2514 = vmatprep.subr.bf16.mxu0 %v3108_v47  ;;  %2543 = vmatprep.subr.bf16.mxu1 %v2922_v24 }
 0x262   : > { %2516 = vmatpush1.bf16.msra.mxu0 %v3117_v54  ;;  %2545 = vmatpush3.bf16.msra.mxu1 %v3155_v13 }
 0x263   : > { %2518 = vmatprep.subr.bf16.mxu0 %v3122_v56  ;;  %2546 = vmatprep.subr.bf16.mxu1 %v2922_v24 }
 0x266   : > { %2520 = vmatpush1.bf16.msra.mxu0 %v3135_v2  ;;  %2548 = vmatpush3.bf16.msra.mxu1 %v3171_v22 }
 0x267   : > { %2522 = vmatprep.subr.bf16.mxu0 %v3142_v5  ;;  %2549 = vmatprep.subr.bf16.mxu1 %v2922_v24 }
 0x26a   : > { %2524 = vmatpush1.bf16.msra.mxu0 %v3151_v11  ;;  %2551 = vmatpush3.bf16.msra.mxu1 %v3187_v36 }
 0x26b   : > { %2526 = vmatprep.subr.bf16.mxu0 %v3158_v14  ;;  %2552 = vmatprep.subr.bf16.mxu1 %v2922_v24 }
 0x26e   : > { %2528 = vmatpush1.bf16.msra.mxu0 %v3167_v20  ;;  %2554 = vmatpush3.bf16.msra.mxu1 %v3200_v44 }
 0x26f   : > { %2530 = vmatprep.subr.bf16.mxu0 %v3174_v23  ;;  %2555 = vmatprep.subr.bf16.mxu1 %v2922_v24 }
 0x272   : > { %2532 = vmatpush1.bf16.msra.mxu0 %v3183_v33  ;;  %2557 = vmatpush3.bf16.msra.mxu1 %v3208_v49 }
 0x273   : > { %2534 = vmatprep.subr.bf16.mxu0 %v3190_v37  ;;  %2558 = vmatprep.subr.bf16.mxu1 %v2922_v24 }
 0x276   : > { %2536 = vmatpush1.bf16.msra.mxu0 %v3197_v43  ;;  %2560 = vmatpush3.bf16.msra.mxu1 %v3216_v52 }
 0x277   : > { %2562 = vmatprep.subr.bf16.mxu0 %v3082_v34  ;;  %2593 = vmatprep.subr.bf16.mxu1 %v2922_v24 }
 0x32c   : > { %v783_v35 = vpop.f32.mrb[4].mxu0  ;;  %v854_v40 = vpop.f32.mrb[4].mxu1 }
 0x32d   : > { %v858_v41 = vadd.f32 %v783_v35, %v714_v31  ;;  %v785_v42 = vpop.f32.mrb[5].mxu0  ;;  %v2161_v45 = vpop.f32.mrb[5].mxu1  ;;  %v872_v59 = vadd.f32 %v3266_v8, %v854_v40 }
 0x32e   : > { %v865_v48 = vadd.f32 %v785_v42, %v715_v32  ;;  %v894_v45 = vld [vmem:[%s891_s10 + $0x10] sm:$0xff] }
 0x32f   : > { %v1893_v50 = vmul.f32 -1.442695, %v858_v41 }
 0x330   : > { %v1894_v51 = vmul.f32 -1.442695, %v865_v48 }
 0x331   : > { %2838 = vpow2.f32 %v1893_v50 }
 0x332   : > { %2840 = vpow2.f32 %v1894_v51 }
 0x33b   : > { %v2839_v53 = vpop.eup %2838 }
 0x33c   : > { %v862_v55 = vadd.f32 1.0, %v2839_v53  ;;  %v2841_v57 = vpop.eup %2840 }
 0x33d   : > { %v869_v58 = vadd.f32 1.0, %v2841_v57 }
 0x33e   : > { %2842 = vrcp.f32 %v862_v55 }
 0x33f   : > { %2844 = vrcp.f32 %v869_v58 }
 0x348   : > { %v2843_v60 = vpop.eup %2842 }
 0x349   : > { %v873_v63 = vmul.f32 %v2843_v60, %v872_v59  ;;  %v2845_v1 = vpop.eup %2844  ;;  %v1063_v59 = vpop.permute.xlu1 %1062 }
 0x34a   : > { %v876_v3 = vsub.f32 1.0, %v2845_v1  ;;  %v878_v26 = vmul.f32 %v2845_v1, %v3339_v30  ;;  %vm1064_vm12 = vcmp.eq.s32.totalorder %v1063_v59, 1 }
 0x34b   : > { %v874_v0 = vadd.f32 %v873_v63, %v716_v61  ;;  %v1070_v63 = vld [vmem:[%s1069_s12] sm:$0xff] }
 0x34d   : > { %2846 = vtanh.f32 %v874_v0 }
 0x357   : > { %v2847_v27 = vpop.eup %2846 }
 0x358   : > { %v877_v7 = vmul.f32 %v2847_v27, %v876_v3  ;;  %v1071_v27 = vld [vmem:[%s1069_s12 + $0x8] sm:$0xff] }
 0x35a   : > { %v879_v9 = vadd.f32 %v878_v26, %v877_v7 }
 0x35c   : > { %v3383_v10 = vsel %vm886_vm11, %v879_v9, %v3339_v30 }
 0x35d   : > { %960 = vmatmul.mubr.f32.vlgmr.msra.gmra.mrb[6].mxu0 %v3383_v10  ;;  %2195 = vmatmul.mubr.f32.vlgmr.msra.gmra.mrb[6].mxu1 %v3383_v10 }
 0x35e   : > { %2564 = vmatpush1.bf16.msra.mxu0 %v3092_v38  ;;  %2595 = vmatpush3.bf16.msra.mxu1 %v3129_v62 }
 0x35f   : > { %2566 = vmatprep.subr.bf16.mxu0 %v3094_v39  ;;  %2596 = vmatprep.subr.bf16.mxu1 %v2922_v24 }
 0x360   : > { %1137 = vmatprep.mubr.f32.mxu0 %v2923_v25  ;;  %2229 = vmatprep.mubr.msk.f32.mxu1 %vm2924_vm0, %v2923_v25 }
 0x362   : > { %2568 = vmatpush1.bf16.msra.mxu0 %v3105_v46  ;;  %2598 = vmatpush3.bf16.msra.mxu1 %v3139_v4 }
 0x363   : > { %2570 = vmatprep.subr.bf16.mxu0 %v3108_v47  ;;  %2599 = vmatprep.subr.bf16.mxu1 %v2922_v24 }
 0x366   : > { %2572 = vmatpush1.bf16.msra.mxu0 %v3117_v54  ;;  %2601 = vmatpush3.bf16.msra.mxu1 %v3155_v13 }
 0x367   : > { %2574 = vmatprep.subr.bf16.mxu0 %v3122_v56  ;;  %2602 = vmatprep.subr.bf16.mxu1 %v2922_v24 }
 0x36a   : > { %2576 = vmatpush1.bf16.msra.mxu0 %v3135_v2  ;;  %2604 = vmatpush3.bf16.msra.mxu1 %v3171_v22 }
 0x36b   : > { %2578 = vmatprep.subr.bf16.mxu0 %v3142_v5  ;;  %2605 = vmatprep.subr.bf16.mxu1 %v2922_v24 }
 0x36e   : > { %2580 = vmatpush1.bf16.msra.mxu0 %v3151_v11  ;;  %2607 = vmatpush3.bf16.msra.mxu1 %v3187_v36 }
 0x36f   : > { %2582 = vmatprep.subr.bf16.mxu0 %v3158_v14  ;;  %2608 = vmatprep.subr.bf16.mxu1 %v2922_v24 }
 0x372   : > { %2584 = vmatpush1.bf16.msra.mxu0 %v3167_v20  ;;  %2610 = vmatpush3.bf16.msra.mxu1 %v3200_v44 }
 0x373   : > { %2586 = vmatprep.subr.bf16.mxu0 %v3174_v23  ;;  %2611 = vmatprep.subr.bf16.mxu1 %v2922_v24 }
 0x376   : > { %2588 = vmatpush1.bf16.msra.mxu0 %v3183_v33  ;;  %2613 = vmatpush3.bf16.msra.mxu1 %v3208_v49 }
 0x377   : > { %2590 = vmatprep.subr.bf16.mxu0 %v3190_v37  ;;  %2614 = vmatprep.subr.bf16.mxu1 %v2922_v24 }
 0x37a   : > { %2592 = vmatpush1.bf16.msra.mxu0 %v3197_v43  ;;  %2616 = vmatpush3.bf16.msra.mxu1 %v3216_v52 }
 0x37b   : > { %2618 = vmatprep.subr.bf16.mxu0 %v3082_v34  ;;  %2649 = vmatprep.subr.bf16.mxu1 %v2922_v24 }
 0x430   : > { %v961_v15 = vpop.f32.mrb[6].mxu0  ;;  %v1032_v16 = vpop.f32.mrb[6].mxu1 }
 0x431   : > { %v1036_v17 = vadd.f32 %v961_v15, %v892_v12  ;;  %v963_v19 = vpop.f32.mrb[7].mxu0  ;;  %v2196_v21 = vpop.f32.mrb[7].mxu1  ;;  %v1050_v41 = vadd.f32 %v3266_v8, %v1032_v16 }
 0x432   : > { %v1043_v29 = vadd.f32 %v963_v19, %v893_v18  ;;  %v1072_v21 = vld [vmem:[%s1069_s12 + $0x10] sm:$0xff] }
 0x433   : > { %v1896_v28 = vmul.f32 -1.442695, %v1036_v17 }
 0x434   : > { %v1897_v30 = vmul.f32 -1.442695, %v1043_v29 }
 0x435   : > { %2848 = vpow2.f32 %v1896_v28 }
 0x436   : > { %2850 = vpow2.f32 %v1897_v30 }
 0x43f   : > { %v2849_v31 = vpop.eup %2848 }
 0x440   : > { %v1040_v32 = vadd.f32 1.0, %v2849_v31  ;;  %v2851_v35 = vpop.eup %2850 }
 0x441   : > { %v1047_v40 = vadd.f32 1.0, %v2851_v35 }
 0x442   : > { %2852 = vrcp.f32 %v1040_v32 }
 0x443   : > { %2854 = vrcp.f32 %v1047_v40 }
 0x44c   : > { %v2853_v42 = vpop.eup %2852 }
 0x44d   : > { %v1051_v48 = vmul.f32 %v2853_v42, %v1050_v41  ;;  %v2855_v51 = vpop.eup %2854  ;;  %v1241_v41 = vpop.permute.xlu0 %1240 }
 0x44e   : > { %v1054_v53 = vsub.f32 1.0, %v2855_v51  ;;  %v1056_v58 = vmul.f32 %v2855_v51, %v3383_v10  ;;  %vm1242_vm13 = vcmp.eq.s32.totalorder %v1241_v41, 1 }
 0x44f   : > { %v1052_v50 = vadd.f32 %v1051_v48, %v894_v45  ;;  %v1248_v48 = vld [vmem:[%s1247_s17] sm:$0xff] }
 0x451   : > { %2856 = vtanh.f32 %v1052_v50 }
 0x45b   : > { %v2857_v55 = vpop.eup %2856 }
 0x45c   : > { %v1055_v57 = vmul.f32 %v2857_v55, %v1054_v53  ;;  %v1249_v55 = vld [vmem:[%s1247_s17 + $0x8] sm:$0xff] }
 0x45e   : > { %v1057_v60 = vadd.f32 %v1056_v58, %v1055_v57 }
 0x460   : > { %v3427_v61 = vsel %vm1064_vm12, %v1057_v60, %v3383_v10 }
 0x461   : > { %1138 = vmatmul.mubr.f32.vlgmr.msra.gmra.mrb[8].mxu0 %v3427_v61  ;;  %2230 = vmatmul.mubr.f32.vlgmr.msra.gmra.mrb[8].mxu1 %v3427_v61 }
 0x462   : > { %2620 = vmatpush1.bf16.msra.mxu0 %v3092_v38  ;;  %2651 = vmatpush3.bf16.msra.mxu1 %v3129_v62 }
 0x463   : > { %2622 = vmatprep.subr.bf16.mxu0 %v3094_v39  ;;  %2652 = vmatprep.subr.bf16.mxu1 %v2922_v24 }
 0x464   : > { %1315 = vmatprep.mubr.f32.mxu0 %v2923_v25  ;;  %2264 = vmatprep.mubr.msk.f32.mxu1 %vm2924_vm0, %v2923_v25 }
 0x466   : > { %2624 = vmatpush1.bf16.msra.mxu0 %v3105_v46  ;;  %2654 = vmatpush3.bf16.msra.mxu1 %v3139_v4 }
 0x467   : > { %2626 = vmatprep.subr.bf16.mxu0 %v3108_v47  ;;  %2655 = vmatprep.subr.bf16.mxu1 %v2922_v24 }
 0x46a   : > { %2628 = vmatpush1.bf16.msra.mxu0 %v3117_v54  ;;  %2657 = vmatpush3.bf16.msra.mxu1 %v3155_v13 }
 0x46b   : > { %2630 = vmatprep.subr.bf16.mxu0 %v3122_v56  ;;  %2658 = vmatprep.subr.bf16.mxu1 %v2922_v24 }
 0x46e   : > { %2632 = vmatpush1.bf16.msra.mxu0 %v3135_v2  ;;  %2660 = vmatpush3.bf16.msra.mxu1 %v3171_v22 }
 0x46f   : > { %2634 = vmatprep.subr.bf16.mxu0 %v3142_v5  ;;  %2661 = vmatprep.subr.bf16.mxu1 %v2922_v24 }
 0x472   : > { %2636 = vmatpush1.bf16.msra.mxu0 %v3151_v11  ;;  %2663 = vmatpush3.bf16.msra.mxu1 %v3187_v36 }
 0x473   : > { %2638 = vmatprep.subr.bf16.mxu0 %v3158_v14  ;;  %2664 = vmatprep.subr.bf16.mxu1 %v2922_v24 }
 0x476   : > { %2640 = vmatpush1.bf16.msra.mxu0 %v3167_v20  ;;  %2666 = vmatpush3.bf16.msra.mxu1 %v3200_v44 }
 0x477   : > { %2642 = vmatprep.subr.bf16.mxu0 %v3174_v23  ;;  %2667 = vmatprep.subr.bf16.mxu1 %v2922_v24 }
 0x47a   : > { %2644 = vmatpush1.bf16.msra.mxu0 %v3183_v33  ;;  %2669 = vmatpush3.bf16.msra.mxu1 %v3208_v49 }
 0x47b   : > { %2646 = vmatprep.subr.bf16.mxu0 %v3190_v37  ;;  %2670 = vmatprep.subr.bf16.mxu1 %v2922_v24 }
 0x47e   : > { %2648 = vmatpush1.bf16.msra.mxu0 %v3197_v43  ;;  %2672 = vmatpush3.bf16.msra.mxu1 %v3216_v52 }
 0x47f   : > { %2674 = vmatprep.subr.bf16.mxu0 %v3082_v34  ;;  %2705 = vmatprep.subr.bf16.mxu1 %v2922_v24 }
 0x534   : > { %v1139_v0 = vpop.f32.mrb[8].mxu0  ;;  %v1210_v1 = vpop.f32.mrb[8].mxu1 }
 0x535   : > { %v1214_v3 = vadd.f32 %v1139_v0, %v1070_v63  ;;  %v1141_v6 = vpop.f32.mrb[9].mxu0  ;;  %v2231_v7 = vpop.f32.mrb[9].mxu1  ;;  %v1228_v18 = vadd.f32 %v3266_v8, %v1210_v1 }
 0x536   : > { %v1221_v9 = vadd.f32 %v1141_v6, %v1071_v27  ;;  %v1250_v6 = vld [vmem:[%s1247_s17 + $0x10] sm:$0xff] }
 0x537   : > { %v1899_v26 = vmul.f32 -1.442695, %v1214_v3 }
 0x538   : > { %v1900_v10 = vmul.f32 -1.442695, %v1221_v9 }
 0x539   : > { %2858 = vpow2.f32 %v1899_v26 }
 0x53a   : > { %2860 = vpow2.f32 %v1900_v10 }
 0x543   : > { %v2859_v12 = vpop.eup %2858 }
 0x544   : > { %v1218_v15 = vadd.f32 1.0, %v2859_v12  ;;  %v2861_v16 = vpop.eup %2860 }
 0x545   : > { %v1225_v17 = vadd.f32 1.0, %v2861_v16 }
 0x546   : > { %2862 = vrcp.f32 %v1218_v15 }
 0x547   : > { %2864 = vrcp.f32 %v1225_v17  ;;  %v1419_v17 = vpop.permute.xlu1 %1418 }
 0x548   : > { %vm1420_vm14 = vcmp.eq.s32.totalorder %v1419_v17, 1 }
 0x550   : > { %v2863_v19 = vpop.eup %2862 }
 0x551   : > { %v1229_v28 = vmul.f32 %v2863_v19, %v1228_v18  ;;  %v2865_v30 = vpop.eup %2864 }
 0x552   : > { %v1232_v31 = vsub.f32 1.0, %v2865_v30  ;;  %v1234_v40 = vmul.f32 %v2865_v30, %v3427_v61 }
 0x553   : > { %v1230_v29 = vadd.f32 %v1229_v28, %v1072_v21 }
 0x555   : > { %2866 = vtanh.f32 %v1230_v29  ;;  %v1604_v29 = vld [vmem:[%s1603_s24] sm:$0xff] }
 0x55f   : > { %v2867_v32 = vpop.eup %2866 }
 0x560   : > { %v1233_v35 = vmul.f32 %v2867_v32, %v1232_v31 }
 0x562   : > { %v1235_v42 = vadd.f32 %v1234_v40, %v1233_v35  ;;  %v1605_v35 = vld [vmem:[%s1603_s24 + $0x8] sm:$0xff] }
 0x564   : > { %v3471_v45 = vsel %vm1242_vm13, %v1235_v42, %v3427_v61 }
 0x565   : > { %1316 = vmatmul.mubr.f32.vlgmr.msra.gmra.mrb[10].mxu0 %v3471_v45  ;;  %2265 = vmatmul.mubr.f32.vlgmr.msra.gmra.mrb[10].mxu1 %v3471_v45 }
 0x566   : > { %2676 = vmatpush1.bf16.msra.mxu0 %v3092_v38  ;;  %2707 = vmatpush3.bf16.msra.mxu1 %v3129_v62 }
 0x567   : > { %2678 = vmatprep.subr.bf16.mxu0 %v3094_v39  ;;  %2708 = vmatprep.subr.bf16.mxu1 %v2922_v24 }
 0x568   : > { %1493 = vmatprep.mubr.f32.mxu0 %v2923_v25  ;;  %2299 = vmatprep.mubr.msk.f32.mxu1 %vm2924_vm0, %v2923_v25 }
 0x56a   : > { %2680 = vmatpush1.bf16.msra.mxu0 %v3105_v46  ;;  %2710 = vmatpush3.bf16.msra.mxu1 %v3139_v4 }
 0x56b   : > { %2682 = vmatprep.subr.bf16.mxu0 %v3108_v47  ;;  %2711 = vmatprep.subr.bf16.mxu1 %v2922_v24 }
 0x56e   : > { %2684 = vmatpush1.bf16.msra.mxu0 %v3117_v54  ;;  %2713 = vmatpush3.bf16.msra.mxu1 %v3155_v13 }
 0x56f   : > { %2686 = vmatprep.subr.bf16.mxu0 %v3122_v56  ;;  %2714 = vmatprep.subr.bf16.mxu1 %v2922_v24 }
 0x572   : > { %2688 = vmatpush1.bf16.msra.mxu0 %v3135_v2  ;;  %2716 = vmatpush3.bf16.msra.mxu1 %v3171_v22 }
 0x573   : > { %2690 = vmatprep.subr.bf16.mxu0 %v3142_v5  ;;  %2717 = vmatprep.subr.bf16.mxu1 %v2922_v24 }
 0x576   : > { %2692 = vmatpush1.bf16.msra.mxu0 %v3151_v11  ;;  %2719 = vmatpush3.bf16.msra.mxu1 %v3187_v36 }
 0x577   : > { %2694 = vmatprep.subr.bf16.mxu0 %v3158_v14  ;;  %2720 = vmatprep.subr.bf16.mxu1 %v2922_v24 }
 0x57a   : > { %2696 = vmatpush1.bf16.msra.mxu0 %v3167_v20  ;;  %2722 = vmatpush3.bf16.msra.mxu1 %v3200_v44 }
 0x57b   : > { %2698 = vmatprep.subr.bf16.mxu0 %v3174_v23  ;;  %2723 = vmatprep.subr.bf16.mxu1 %v2922_v24 }
 0x57e   : > { %2700 = vmatpush1.bf16.msra.mxu0 %v3183_v33  ;;  %2725 = vmatpush3.bf16.msra.mxu1 %v3208_v49 }
 0x57f   : > { %2702 = vmatprep.subr.bf16.mxu0 %v3190_v37  ;;  %2726 = vmatprep.subr.bf16.mxu1 %v2922_v24 }
 0x582   : > { %2704 = vmatpush1.bf16.msra.mxu0 %v3197_v43  ;;  %2728 = vmatpush3.bf16.msra.mxu1 %v3216_v52 }
 0x583   : > { %2730 = vmatprep.subr.bf16.mxu0 %v3082_v34  ;;  %2761 = vmatprep.subr.bf16.mxu1 %v2922_v24 }
 0x638   : > { %v1317_v50 = vpop.f32.mrb[10].mxu0  ;;  %v1388_v51 = vpop.f32.mrb[10].mxu1 }
 0x639   : > { %v1392_v53 = vadd.f32 %v1317_v50, %v1248_v48  ;;  %v1319_v57 = vpop.f32.mrb[11].mxu0  ;;  %v2266_v58 = vpop.f32.mrb[11].mxu1  ;;  %v1406_v3 = vadd.f32 %v3266_v8, %v1388_v51 }
 0x63a   : > { %v1399_v60 = vadd.f32 %v1319_v57, %v1249_v55 }
 0x63b   : > { %v1902_v59 = vmul.f32 -1.442695, %v1392_v53 }
 0x63c   : > { %v1903_v61 = vmul.f32 -1.442695, %v1399_v60 }
 0x63d   : > { %2868 = vpow2.f32 %v1902_v59  ;;  %v1606_v59 = vld [vmem:[%s1603_s24 + $0x10] sm:$0xff] }
 0x63e   : > { %2870 = vpow2.f32 %v1903_v61 }
 0x647   : > { %v2869_v63 = vpop.eup %2868 }
 0x648   : > { %v1396_v0 = vadd.f32 1.0, %v2869_v63  ;;  %v2871_v34 = vpop.eup %2870 }
 0x649   : > { %v1403_v1 = vadd.f32 1.0, %v2871_v34 }
 0x64a   : > { %2872 = vrcp.f32 %v1396_v0 }
 0x64b   : > { %2874 = vrcp.f32 %v1403_v1  ;;  %v1775_v1 = vpop.permute.xlu1 %1774 }
 0x654   : > { %v2873_v27 = vpop.eup %2872 }
 0x655   : > { %v1407_v7 = vmul.f32 %v2873_v27, %v1406_v3  ;;  %v2875_v9 = vpop.eup %2874 }
 0x656   : > { %v1410_v10 = vsub.f32 1.0, %v2875_v9  ;;  %v1412_v16 = vmul.f32 %v2875_v9, %v3471_v45 }
 0x657   : > { %v1408_v26 = vadd.f32 %v1407_v7, %v1250_v6 }
 0x659   : > { %2876 = vtanh.f32 %v1408_v26 }
 0x663   : > { %v2877_v12 = vpop.eup %2876 }
 0x664   : > { %v1411_v15 = vmul.f32 %v2877_v12, %v1410_v10 }
 0x666   : > { %v1413_v18 = vadd.f32 %v1412_v16, %v1411_v15 }
 0x668   : > { %v3515_v19 = vsel %vm1420_vm14, %v1413_v18, %v3471_v45 }
 0x669   : > { %1494 = vmatmul.mubr.f32.vlgmr.msra.gmra.mrb[12].mxu0 %v3515_v19  ;;  %2300 = vmatmul.mubr.f32.vlgmr.msra.gmra.mrb[12].mxu1 %v3515_v19 }
 0x66a   : > { %2732 = vmatpush1.bf16.msra.mxu0 %v3092_v38  ;;  %2763 = vmatpush3.bf16.msra.mxu1 %v3129_v62 }
 0x66b   : > { %2734 = vmatprep.subr.bf16.mxu0 %v3094_v39  ;;  %2764 = vmatprep.subr.bf16.mxu1 %v2922_v24 }
 0x66c   : > { %1671 = vmatprep.mubr.f32.mxu0 %v2923_v25  ;;  %2334 = vmatprep.mubr.msk.f32.mxu1 %vm2924_vm0, %v2923_v25  ;;  %v1426_v25 = vld [vmem:[%s1425_s21] sm:$0xff]  ;;  %vm1776_vm0 = vcmp.eq.s32.totalorder %v1775_v1, 1 }
 0x66e   : > { %2736 = vmatpush1.bf16.msra.mxu0 %v3105_v46  ;;  %2766 = vmatpush3.bf16.msra.mxu1 %v3139_v4 }
 0x66f   : > { %2738 = vmatprep.subr.bf16.mxu0 %v3108_v47  ;;  %2767 = vmatprep.subr.bf16.mxu1 %v2922_v24  ;;  %v1427_v47 = vld [vmem:[%s1425_s21 + $0x8] sm:$0xff] }
 0x672   : > { %2740 = vmatpush1.bf16.msra.mxu0 %v3117_v54  ;;  %2769 = vmatpush3.bf16.msra.mxu1 %v3155_v13 }
 0x673   : > { %2742 = vmatprep.subr.bf16.mxu0 %v3122_v56  ;;  %2770 = vmatprep.subr.bf16.mxu1 %v2922_v24 }
 0x676   : > { %2744 = vmatpush1.bf16.msra.mxu0 %v3135_v2  ;;  %2772 = vmatpush3.bf16.msra.mxu1 %v3171_v22  ;;  %v1428_v22 = vld [vmem:[%s1425_s21 + $0x10] sm:$0xff] }
 0x677   : > { %2746 = vmatprep.subr.bf16.mxu0 %v3142_v5  ;;  %2773 = vmatprep.subr.bf16.mxu1 %v2922_v24 }
 0x67a   : > { %2748 = vmatpush1.bf16.msra.mxu0 %v3151_v11  ;;  %2775 = vmatpush3.bf16.msra.mxu1 %v3187_v36 }
 0x67b   : > { %2750 = vmatprep.subr.bf16.mxu0 %v3158_v14  ;;  %2776 = vmatprep.subr.bf16.mxu1 %v2922_v24 }
 0x67e   : > { %2752 = vmatpush1.bf16.msra.mxu0 %v3167_v20  ;;  %2778 = vmatpush3.bf16.msra.mxu1 %v3200_v44  ;;  %v1597_v44 = vpop.permute.xlu0 %1596 }
 0x67f   : > { %2754 = vmatprep.subr.bf16.mxu0 %v3174_v23  ;;  %2779 = vmatprep.subr.bf16.mxu1 %v2922_v24  ;;  %vm1598_vm15 = vcmp.eq.s32.totalorder %v1597_v44, 1 }
 0x682   : > { %2756 = vmatpush1.bf16.msra.mxu0 %v3183_v33  ;;  %2781 = vmatpush3.bf16.msra.mxu1 %v3208_v49 }
 0x683   : > { %2758 = vmatprep.subr.bf16.mxu0 %v3190_v37  ;;  %2782 = vmatprep.subr.bf16.mxu1 %v2922_v24 }
 0x686   : > { %2760 = vmatpush1.bf16.msra.mxu0 %v3197_v43  ;;  %2784 = vmatpush3.bf16.msra.mxu1 %v3216_v52 }
 0x73c   : > { %v1495_v38 = vpop.f32.mrb[12].mxu0  ;;  %v1566_v39 = vpop.f32.mrb[12].mxu1 }
 0x73d   : > { %v1570_v46 = vadd.f32 %v1495_v38, %v1426_v25  ;;  %v1497_v54 = vpop.f32.mrb[13].mxu0  ;;  %v2301_v56 = vpop.f32.mrb[13].mxu1  ;;  %v1584_v14 = vadd.f32 %v3266_v8, %v1566_v39 }
 0x73e   : > { %v1577_v2 = vadd.f32 %v1497_v54, %v1427_v47 }
 0x73f   : > { %v1905_v62 = vmul.f32 -1.442695, %v1570_v46 }
 0x740   : > { %v1906_v4 = vmul.f32 -1.442695, %v1577_v2 }
 0x741   : > { %2878 = vpow2.f32 %v1905_v62 }
 0x742   : > { %2880 = vpow2.f32 %v1906_v4 }
 0x74b   : > { %v2879_v5 = vpop.eup %2878 }
 0x74c   : > { %v1574_v24 = vadd.f32 1.0, %v2879_v5  ;;  %v2881_v11 = vpop.eup %2880 }
 0x74d   : > { %v1581_v13 = vadd.f32 1.0, %v2881_v11 }
 0x74e   : > { %2882 = vrcp.f32 %v1574_v24 }
 0x74f   : > { %2884 = vrcp.f32 %v1581_v13 }
 0x758   : > { %v2883_v20 = vpop.eup %2882 }
 0x759   : > { %v1585_v23 = vmul.f32 %v2883_v20, %v1584_v14  ;;  %v2885_v36 = vpop.eup %2884 }
 0x75a   : > { %v1588_v37 = vsub.f32 1.0, %v2885_v36  ;;  %v1590_v52 = vmul.f32 %v2885_v36, %v3515_v19 }
 0x75b   : > { %v1586_v33 = vadd.f32 %v1585_v23, %v1428_v22 }
 0x75d   : > { %2886 = vtanh.f32 %v1586_v33 }
 0x767   : > { %v2887_v43 = vpop.eup %2886 }
 0x768   : > { %v1589_v49 = vmul.f32 %v2887_v43, %v1588_v37 }
 0x76a   : > { %v1591_v21 = vadd.f32 %v1590_v52, %v1589_v49 }
 0x76c   : > { %v1599_v28 = vsel %vm1598_vm15, %v1591_v21, %v3515_v19 }
 0x76d   : > { %1672 = vmatmul.mubr.f32.vlgmr.msra.gmra.mrb[14].mxu0 %v1599_v28  ;;  %2335 = vmatmul.mubr.f32.vlgmr.msra.gmra.mrb[14].mxu1 %v1599_v28 }
 0x840   : > { %v1673_v30 = vpop.f32.mrb[14].mxu0  ;;  %v1744_v31 = vpop.f32.mrb[14].mxu1 }
 0x841   : > { %v1748_v32 = vadd.f32 %v1673_v30, %v1604_v29  ;;  %v1675_v40 = vpop.f32.mrb[15].mxu0  ;;  %v2336_v41 = vpop.f32.mrb[15].mxu1  ;;  %v1762_v57 = vadd.f32 %v3266_v8, %v1744_v31 }
 0x842   : > { %v1755_v45 = vadd.f32 %v1675_v40, %v1605_v35 }
 0x843   : > { %v1908_v42 = vmul.f32 -1.442695, %v1748_v32 }
 0x844   : > { %v1909_v48 = vmul.f32 -1.442695, %v1755_v45 }
 0x845   : > { %2888 = vpow2.f32 %v1908_v42 }
 0x846   : > { %2890 = vpow2.f32 %v1909_v48 }
 0x84f   : > { %v2889_v50 = vpop.eup %2888 }
 0x850   : > { %v1752_v51 = vadd.f32 1.0, %v2889_v50  ;;  %v2891_v53 = vpop.eup %2890 }
 0x851   : > { %v1759_v55 = vadd.f32 1.0, %v2891_v53 }
 0x852   : > { %2892 = vrcp.f32 %v1752_v51 }
 0x853   : > { %2894 = vrcp.f32 %v1759_v55 }
 0x85c   : > { %v2893_v58 = vpop.eup %2892 }
 0x85d   : > { %v1763_v60 = vmul.f32 %v2893_v58, %v1762_v57  ;;  %v2895_v63 = vpop.eup %2894 }
 0x85e   : > { %v1766_v0 = vsub.f32 1.0, %v2895_v63  ;;  %v1768_v27 = vmul.f32 %v2895_v63, %v1599_v28 }
 0x85f   : > { %v1764_v61 = vadd.f32 %v1763_v60, %v1606_v59 }
 0x861   : > { %2896 = vtanh.f32 %v1764_v61 }
 0x86b   : > { %v2897_v34 = vpop.eup %2896 }
 0x86c   : > { %v1767_v3 = vmul.f32 %v2897_v34, %v1766_v0 }
 0x86e   : > { %v1769_v6 = vadd.f32 %v1768_v27, %v1767_v3 }
 0x870   : > { %v1777_v8 = vsel %vm1776_vm0, %v1769_v6, %v1599_v28 }
 0x871   : > { %1778 = vst [vmem:[%s296_s26] sm:$0xff] %v1777_v8 }
 0x872 PF: > { %p11_p10 = scmp.ge.s32.totalorder %s2970_s19, 4   ;;  %s3579_s15 = smov %s2916_s16 }
 0x873   : > { %s3580_s16 = smov %s2979_s22  ;;  %s3581_s17 = smov %s2970_s19 }
 0x874   :  { %13 = sbr.rel (!%p11_p10) target bundleno = 2 (0x2), region = 108 }

// kernel: forward.9
= control target key start
LH: loop header
LB: loop body
LE: loop exit
PB: predicated region body
PF: predicated region fallthrough
CT: control target
= control target key end

     0   :  { %vm125_vm0 = vcmask 39936   ;;  %s327_s1 = inlined_call_operand.vmem [shape: f32[256,5], index: 1, kind: input, shape index: {}]   ;;  %s328_s0 = inlined_call_operand.vmem [shape: f32[8,256], index: 0, kind: input, shape index: {}]   ;;  %s329_s2 = inlined_call_operand.vmem [shape: f32[1,5], index: 2, kind: input, shape index: {}]   ;;  %s330_s3 = inlined_call_operand.vmem [shape: f32[8,5], index: 3, kind: output, shape index: {}]  }
   0x1   :  { %v32_v0 = vld [vmem:[%s327_s1 + $0x80] sm:$0xff]  ;;  %v33_v1 = vld [vmem:[%s327_s1 + $0x88] sm:$0xff]  ;;  %v34_v5 = vld [vmem:[%s327_s1 + $0x90] sm:$0xff] }
   0x2   :  { %v16_v2 = vld [vmem:[%s327_s1] sm:$0xff]  ;;  %v167_v3 = vpack.c.bf16 %v33_v1, %v32_v0  ;;  %v17_v4 = vld [vmem:[%s327_s1 + $0x8] sm:$0xff]  ;;  %v35_v6 = vld [vmem:[%s327_s1 + $0x98] sm:$0xff] }
   0x3   :  { %v169_v7 = vpack.c.bf16 %v17_v4, %v16_v2  ;;  %v171_v8 = vpack.c.bf16 %v35_v6, %v34_v5  ;;  %v18_v9 = vld [vmem:[%s327_s1 + $0x10] sm:$0xff]  ;;  %v19_v10 = vld [vmem:[%s327_s1 + $0x18] sm:$0xff]  ;;  %v36_v11 = vld [vmem:[%s327_s1 + $0xa0] sm:$0xff] }
   0x4   :  { %168 = vmatprep.subr.bf16.mxu0 %v167_v3  ;;  %v37_v12 = vld [vmem:[%s327_s1 + $0xa8] sm:$0xff]  ;;  %v173_v13 = vpack.c.bf16 %v19_v10, %v18_v9  ;;  %v20_v15 = vld [vmem:[%s327_s1 + $0x20] sm:$0xff]  ;;  %v38_v17 = vld [vmem:[%s327_s1 + $0xb0] sm:$0xff] }
   0x5   :  { %170 = vmatpush3.bf16.msra.mxu0 %v169_v7  ;;  %v175_v14 = vpack.c.bf16 %v37_v12, %v36_v11  ;;  %v21_v16 = vld [vmem:[%s327_s1 + $0x28] sm:$0xff]  ;;  %v39_v18 = vld [vmem:[%s327_s1 + $0xb8] sm:$0xff]  ;;  %v22_v21 = vld [vmem:[%s327_s1 + $0x30] sm:$0xff] }
   0x6   :  { %172 = vmatprep.subr.bf16.mxu0 %v171_v8  ;;  %v177_v19 = vpack.c.bf16 %v21_v16, %v20_v15  ;;  %v179_v20 = vpack.c.bf16 %v39_v18, %v38_v17  ;;  %v23_v22 = vld [vmem:[%s327_s1 + $0x38] sm:$0xff]  ;;  %v40_v23 = vld [vmem:[%s327_s1 + $0xc0] sm:$0xff]  ;;  %v41_v24 = vld [vmem:[%s327_s1 + $0xc8] sm:$0xff] }
   0x7   :  { %v15_v25 = vld [vmem:[%s328_s0 + $0x8] sm:$0xff]  ;;  %v181_v26 = vpack.c.bf16 %v23_v22, %v22_v21  ;;  %v183_v27 = vpack.c.bf16 %v41_v24, %v40_v23  ;;  %v24_v28 = vld [vmem:[%s327_s1 + $0x40] sm:$0xff]  ;;  %v42_v30 = vld [vmem:[%s327_s1 + $0xd0] sm:$0xff] }
   0x8   :  { %119 = vmatprep.mubr.f32.mxu0 %v15_v25  ;;  %v25_v29 = vld [vmem:[%s327_s1 + $0x48] sm:$0xff]  ;;  %v43_v31 = vld [vmem:[%s327_s1 + $0xd8] sm:$0xff]  ;;  %v26_v34 = vld [vmem:[%s327_s1 + $0x50] sm:$0xff] }
   0x9   :  { %174 = vmatpush3.bf16.msra.mxu0 %v173_v13  ;;  %v185_v32 = vpack.c.bf16 %v25_v29, %v24_v28  ;;  %v187_v33 = vpack.c.bf16 %v43_v31, %v42_v30  ;;  %v27_v35 = vld [vmem:[%s327_s1 + $0x58] sm:$0xff]  ;;  %v44_v36 = vld [vmem:[%s327_s1 + $0xe0] sm:$0xff]  ;;  %v45_v37 = vld [vmem:[%s327_s1 + $0xe8] sm:$0xff] }
   0xa   :  { %176 = vmatprep.subr.bf16.mxu0 %v175_v14  ;;  %v189_v38 = vpack.c.bf16 %v27_v35, %v26_v34  ;;  %v191_v39 = vpack.c.bf16 %v45_v37, %v44_v36  ;;  %v28_v40 = vld [vmem:[%s327_s1 + $0x60] sm:$0xff]  ;;  %v29_v41 = vld [vmem:[%s327_s1 + $0x68] sm:$0xff]  ;;  %v46_v42 = vld [vmem:[%s327_s1 + $0xf0] sm:$0xff] }
   0xb   :  { %v47_v43 = vld [vmem:[%s327_s1 + $0xf8] sm:$0xff]  ;;  %v193_v44 = vpack.c.bf16 %v29_v41, %v28_v40  ;;  %v30_v46 = vld [vmem:[%s327_s1 + $0x70] sm:$0xff]  ;;  %v14_v49 = vld [vmem:[%s328_s0] sm:$0xff] }
   0xc   :  { %v195_v45 = vpack.c.bf16 %v47_v43, %v46_v42  ;;  %v31_v47 = vld [vmem:[%s327_s1 + $0x78] sm:$0xff]  ;;  %v131_v51 = vld [vmem:[%s329_s2] ss:$0 sm:$0xff] }
   0xd   :  { %178 = vmatpush3.bf16.msra.mxu0 %v177_v19  ;;  %v197_v48 = vpack.c.bf16 %v31_v47, %v30_v46 }
   0xe   :  { %180 = vmatprep.subr.bf16.mxu0 %v179_v20 }
  0x11   :  { %182 = vmatpush3.bf16.msra.mxu0 %v181_v26 }
  0x12   :  { %184 = vmatprep.subr.bf16.mxu0 %v183_v27 }
  0x15   :  { %186 = vmatpush3.bf16.msra.mxu0 %v185_v32 }
  0x16   :  { %188 = vmatprep.subr.bf16.mxu0 %v187_v33 }
  0x19   :  { %190 = vmatpush3.bf16.msra.mxu0 %v189_v38 }
  0x1a   :  { %192 = vmatprep.subr.bf16.mxu0 %v191_v39 }
  0x1d   :  { %194 = vmatpush3.bf16.msra.mxu0 %v193_v44 }
  0x1e   :  { %196 = vmatprep.subr.bf16.mxu0 %v195_v45 }
  0x21   :  { %198 = vmatpush3.bf16.msra.mxu0 %v197_v48 }
  0x24   :  { %120 = vmatmul.mubr.f32.vlgmr.msra.gmra.mrb[0].mxu0 %v14_v49 }
  0xf7   :  { %v164_v50 = vpop.f32.mrb[0].mxu0 }
  0xf8   :  { %v165_v52 = vpop.f32.mrb[1].mxu0 }
  0xf9   :  { %v166_v53 = vadd.f32 %v165_v52, %v164_v50 }
  0xfb   :  { %v122_v54 = vadd.f32 %v166_v53, %v131_v51 }
  0xfd   :  { %126 = vst.msk [vmem:[%s330_s3] sm:$0xff] %vm125_vm0, %v122_v54 }

// kernel: forward.6
= control target key start
LH: loop header
LB: loop body
LE: loop exit
PB: predicated region body
PF: predicated region fallthrough
CT: control target
= control target key end

     0   :  { %11 = vsyncpa [#allocation5], 0  ;;  %s4434_s0 = inlined_call_operand.vmem [shape: s32[8,1], index: 0, kind: input, shape index: {}]   ;;  %s4435_s1 = inlined_call_operand.vmem [shape: f32[8,8,768], index: 1, kind: input, shape index: {}]   ;;  %s4436_s2 = inlined_call_operand.vmem [shape: f32[2,128,384], index: 2, kind: input, shape index: {}]   ;;  %s4437_s3 = inlined_call_operand.vmem [shape: f32[2,1,128], index: 3, kind: input, shape index: {}]   ;;  %s4438_s4 = inlined_call_operand.vmem [shape: f32[8,8,256], index: 4, kind: output, shape index: {0}]   ;;  %s4439_s5 = inlined_call_operand.hbm [shape: f32[8,256], index: 5, kind: output, shape index: {1}]  }
   0x1   :  { %13 = vsyncpa [#allocation5 + $0x1], 0  ;;  %s3621_s18 = smov 0   ;;  %s3623_s19 = smov 0  }
   0x2   :  { %s3625_s20 = smov 0   ;;  %s3627_s21 = smov 0  }
   0x3 LB: > { %s3642_s22 = sadd.s32 4294967295, %s3584_s21   ;;  %s2465_s23 = sadd.s32 4294967294, %s3584_s21   ;;  %s3584_s21 = sphi %s3627_s21, %s4447_s21   ;;  %s3580_s20 = sphi %s3625_s20, %s4446_s20   ;;  %s3576_s19 = sphi %s3623_s19, %s4445_s19   ;;  %s3572_s18 = sphi %s3621_s18, %s4444_s18  }
   0x4   : > { %s3646_s24 = sadd.s32 1, %s3584_s21   ;;  %s47_s25 = sadd.s32 1, %s3580_s20 }
   0x5   : > { %s44_s26 = ssub.s32 %s3584_s21, %s3646_s24  ;;  %p54_p0 = scmp.ne.s32.totalorder %s3580_s20, %s3576_s19 }
   0x6   : > { %p45_p1 = scmp.eq.s32.totalorder %s44_s26, 0  ;;  %p55_p2 = scmp.eq.s32.totalorder %s3584_s21, 0 }
   0x7   : > { %p136_p3 = scmp.eq.s32.totalorder %s3642_s22, 1  ;;  %p167_p4 = scmp.ne.s32.totalorder %s3576_s19, %s3572_s18 }
   0x8   : > { %s3658_s27 = scalar_select %p45_p1, %s3580_s20, %s47_s25  }
   0x9   : > { %p56_p5 = por %p55_p2, %p54_p0  ;;  %p3662_p6 = por %p136_p3, %p54_p0 }
   0xa   : > { %p168_p7 = scmp.eq.s32.totalorder %s2465_s23, 1  ;;  %p4440_p9 = scmp.ge.s32.totalorder %s3584_s21, 2 }
   0xc   : > { %p3666_p8 = por %p168_p7, %p167_p4  ;;  %187 = sbr.rel (%p4440_p9) target bundleno = 36 (0x24), region = 20 }
  0x13   : > { %190 = sbr.rel (!%p56_p5) target bundleno = 36 (0x24), region = 24  ;;  %s192_s30 = sand.u32 (%p56_p5), 1, %s3580_s20  }
  0x14   : > { %s2521_s6 = smul.u32 (%p56_p5), 24, %s3584_s21 }
  0x15   : > { %s3394_s7 = smul.u32 (%p56_p5), 192, %s192_s30 }
  0x16   : > { %s3678_s10 = scalar_lea.vmem (%p56_p5), %s4435_s1, %s2521_s6 }
  0x17   : > { %v210_v0 = vld [vmem:[%s3678_s10] sm:$0xff] (%p56_p5)  ;;  %v212_v1 = vld [vmem:[%s3678_s10 + $0x8] sm:$0xff] (%p56_p5)  ;;  %v214_v2 = vld [vmem:[%s3678_s10 + $0x10] sm:$0xff] (%p56_p5)  ;;  %s3683_s11 = scalar_lea.vmem (%p56_p5), [#allocation2], %s3394_s7 }
  0x18   : > { %211 = vst [vmem:[%s3683_s11] sm:$0xff] (%p56_p5), %v210_v0  ;;  %213 = vst [vmem:[%s3683_s11 + $0x8] sm:$0xff] (%p56_p5), %v212_v1  ;;  %v216_v3 = vld [vmem:[%s3678_s10 + $0x30] sm:$0xff] (%p56_p5)  ;;  %v218_v4 = vld [vmem:[%s3678_s10 + $0x38] sm:$0xff] (%p56_p5) }
  0x19   : > { %215 = vst [vmem:[%s3683_s11 + $0x10] sm:$0xff] (%p56_p5), %v214_v2  ;;  %v220_v5 = vld [vmem:[%s3678_s10 + $0x40] sm:$0xff] (%p56_p5)  ;;  %217 = vst [vmem:[%s3683_s11 + $0x18] sm:$0xff] (%p56_p5), %v216_v3  ;;  %v224_v7 = vld [vmem:[%s3678_s10 + $0x68] sm:$0xff] (%p56_p5) }
  0x1a   : > { %219 = vst [vmem:[%s3683_s11 + $0x20] sm:$0xff] %v218_v4  ;;  %221 = vst [vmem:[%s3683_s11 + $0x28] sm:$0xff] %v220_v5  ;;  %v222_v6 = vld [vmem:[%s3678_s10 + $0x60] sm:$0xff]  ;;  %v226_v8 = vld [vmem:[%s3678_s10 + $0x70] sm:$0xff] }
  0x1b   : > { %223 = vst [vmem:[%s3683_s11 + $0x30] sm:$0xff] %v222_v6  ;;  %225 = vst [vmem:[%s3683_s11 + $0x38] sm:$0xff] %v224_v7  ;;  %v228_v9 = vld [vmem:[%s3678_s10 + $0x90] sm:$0xff]  ;;  %v230_v10 = vld [vmem:[%s3678_s10 + $0x98] sm:$0xff] }
  0x1c   : > { %227 = vst [vmem:[%s3683_s11 + $0x40] sm:$0xff] %v226_v8  ;;  %v232_v11 = vld [vmem:[%s3678_s10 + $0xa0] sm:$0xff]  ;;  %229 = vst [vmem:[%s3683_s11 + $0x48] sm:$0xff] %v228_v9  ;;  %v236_v13 = vld [vmem:[%s3678_s10 + $0xc8] sm:$0xff] }
  0x1d   : > { %231 = vst [vmem:[%s3683_s11 + $0x50] sm:$0xff] %v230_v10  ;;  %233 = vst [vmem:[%s3683_s11 + $0x58] sm:$0xff] %v232_v11  ;;  %v234_v12 = vld [vmem:[%s3678_s10 + $0xc0] sm:$0xff]  ;;  %v238_v14 = vld [vmem:[%s3678_s10 + $0xd0] sm:$0xff] }
  0x1e   : > { %235 = vst [vmem:[%s3683_s11 + $0x60] sm:$0xff] %v234_v12  ;;  %237 = vst [vmem:[%s3683_s11 + $0x68] sm:$0xff] %v236_v13  ;;  %v240_v15 = vld [vmem:[%s3678_s10 + $0xf0] sm:$0xff]  ;;  %v242_v16 = vld [vmem:[%s3678_s10 + $0xf8] sm:$0xff] }
  0x1f   : > { %239 = vst [vmem:[%s3683_s11 + $0x70] sm:$0xff] %v238_v14  ;;  %v244_v17 = vld [vmem:[%s3678_s10 + $0x100] sm:$0xff]  ;;  %241 = vst [vmem:[%s3683_s11 + $0x78] sm:$0xff] %v240_v15  ;;  %v248_v19 = vld [vmem:[%s3678_s10 + $0x128] sm:$0xff] }
  0x20   : > { %243 = vst [vmem:[%s3683_s11 + $0x80] sm:$0xff] %v242_v16  ;;  %245 = vst [vmem:[%s3683_s11 + $0x88] sm:$0xff] %v244_v17  ;;  %v246_v18 = vld [vmem:[%s3678_s10 + $0x120] sm:$0xff]  ;;  %v250_v20 = vld [vmem:[%s3678_s10 + $0x130] sm:$0xff] }
  0x21   : > { %247 = vst [vmem:[%s3683_s11 + $0x90] sm:$0xff] %v246_v18  ;;  %249 = vst [vmem:[%s3683_s11 + $0x98] sm:$0xff] %v248_v19  ;;  %v252_v21 = vld [vmem:[%s3678_s10 + $0x150] sm:$0xff]  ;;  %v254_v22 = vld [vmem:[%s3678_s10 + $0x158] sm:$0xff] }
  0x22   : > { %251 = vst [vmem:[%s3683_s11 + $0xa0] sm:$0xff] %v250_v20  ;;  %v256_v23 = vld [vmem:[%s3678_s10 + $0x160] sm:$0xff]  ;;  %253 = vst [vmem:[%s3683_s11 + $0xa8] sm:$0xff] %v252_v21 }
  0x23   : > { %255 = vst [vmem:[%s3683_s11 + $0xb0] sm:$0xff] %v254_v22  ;;  %257 = vst [vmem:[%s3683_s11 + $0xb8] sm:$0xff] %v256_v23 }
  0x24 PF: > { %p2469_p10 = scmp.ge.s32.totalorder %s3584_s21, 1  ;;  %p276_p11 = scmp.lt.s32.totalorder %s3584_s21, 3 }
  0x26   : > { %p277_p12 = pnand %p2469_p10, %p276_p11 }
  0x27   : > { %p323_p13 = scmp.lt.s32.totalorder (!%p277_p12), %s3642_s22, 1  ;;  %v3586_v24 = vmov (!%p277_p12), 0.0|0.0   ;;  %v3587_v25 = vmov (!%p277_p12), 0.0   ;;  %v3742_v26 = vld [vmem:[%s4434_s0] sm:$0xff] (!%p277_p12)  ;;  %vm3588_vm0 = vmmov (!%p277_p12), 0   ;;  %v3589_v27 = vmov (!%p277_p12), 0  }
  0x28   : > { %280 = sbr.rel (%p277_p12) target bundleno = 2204 (0x89c), region = 55  ;;  %2978 = vmatprep.subr.bf16.mxu1 (!%p277_p12), %v3586_v24  ;;  %451 = vmatprep.mubr.f32.mxu0 (!%p277_p12), %v3587_v25  ;;  %s3767_s30 = sand.u32 (!%p277_p12), 1, %s3576_s19  }
  0x29   : > { %2698 = vmatprep.mubr.msk.f32.mxu1 (!%p277_p12), %vm3588_vm0, %v3587_v25  ;;  %3440 = vset.pattern.permute.xlu0 (!%p277_p12), %v3589_v27  ;;  %s3395_s8 = smul.u32 (!%p277_p12), 192, %s3767_s30  ;;  %s2470_s23 = sshll.u32 (!%p277_p12), %s3767_s30, 6 }
  0x2a   : > { %3441 = vset.pattern.permute.xlu1 (!%p277_p12), %v3589_v27 }
  0x2b   : > { %s3952_s10 = scalar_lea.vmem (!%p277_p12), [#allocation2], %s3395_s8 }
  0x2f   : > { %s3737_s12 = scalar_select %p136_p3, 7, 0 }
  0x30   : > { %s3745_s15 = scalar_select %p323_p13, %s3642_s22, 1 }
  0x31   : > { %v558_v28 = vstv %s3737_s12  ;;  %s3753_s16 = scalar_select %p136_p3, 6, 1 }
  0x32   : > { %s3396_s17 = smul.u32 384, %s3745_s15  ;;  %vm559_vm1 = vcmp.lt.s32.totalorder %v558_v28, %v3742_v26  ;;  %s2477_s25 = sshll.u32 %s3737_s12, 3 }
  0x33   : > { %v560_v29 = vsel %vm559_vm1, 1, %v3589_v27  ;;  %v795_v30 = vstv %s3753_s16  ;;  %s3775_s6 = scalar_select %p136_p3, 3, 4 }
  0x34   : > { %s3763_s26 = scalar_lea.vmem %s4436_s2, %s3396_s17  ;;  %562 = vperm.xlu0 %3440, %v560_v29   ;;  %vm796_vm2 = vcmp.lt.s32.totalorder %v795_v30, %v3742_v26  ;;  %s2522_s9 = smul.u32 24, %s3737_s12 }
  0x35   : > { %v340_v31 = vld [vmem:[%s3763_s26 + $0x8] sm:$0xff]  ;;  %v343_v32 = vld [vmem:[%s3763_s26 + $0x20] sm:$0xff]  ;;  %v797_v34 = vsel %vm796_vm2, 1, %v3589_v27  ;;  %v342_v36 = vld [vmem:[%s3763_s26 + $0x18] sm:$0xff]  ;;  %v1509_v44 = vstv %s3775_s6  ;;  %s3799_s7 = scalar_select %p136_p3, 1, 6 }
  0x36   : > { %v339_v33 = vld [vmem:[%s3763_s26] sm:$0xff]  ;;  %v3777_v35 = vpack.c.bf16 %v343_v32, %v340_v31  ;;  %v346_v37 = vld [vmem:[%s3763_s26 + $0x38] sm:$0xff]  ;;  %v349_v38 = vld [vmem:[%s3763_s26 + $0x50] sm:$0xff]  ;;  %vm1510_vm3 = vcmp.lt.s32.totalorder %v1509_v44, %v3742_v26  ;;  %s335_s11 = scalar_lea.vmem %s3952_s10, %s2522_s9 [#allocation2]  ;;  %s3959_s17 = scalar_lea.vmem %s4437_s3, %s3745_s15 }
  0x37   : > { %v3782_v39 = vpack.c.bf16 %v342_v36, %v339_v33  ;;  %v3784_v40 = vpack.c.bf16 %v349_v38, %v346_v37  ;;  %v345_v41 = vld [vmem:[%s3763_s26 + $0x30] sm:$0xff]  ;;  %v348_v42 = vld [vmem:[%s3763_s26 + $0x48] sm:$0xff]  ;;  %v355_v45 = vld [vmem:[%s3763_s26 + $0x80] sm:$0xff]  ;;  %v1511_v47 = vsel %vm1510_vm3, 1, %v3589_v27  ;;  %v1985_v53 = vstv %s3799_s7  ;;  %s3967_s15 = scalar_lea.vmem [#allocation3], %s2470_s23  ;;  %s2523_s14 = smul.u32 24, %s3753_s16 }
  0x38   : > { %v352_v43 = vld [vmem:[%s3763_s26 + $0x68] sm:$0xff]  ;;  %2947 = vmatprep.subr.bf16.mxu0 %v3777_v35  ;;  %799 = vperm.xlu0 %3440, %v797_v34   ;;  %v3794_v46 = vpack.c.bf16 %v348_v42, %v345_v41  ;;  %v351_v49 = vld [vmem:[%s3763_s26 + $0x60] sm:$0xff]  ;;  %v354_v50 = vld [vmem:[%s3763_s26 + $0x78] sm:$0xff]  ;;  %vm1986_vm4 = vcmp.lt.s32.totalorder %v1985_v53, %v3742_v26  ;;  %s567_s8 = scalar_lea.vmem %s3967_s15, %s2477_s25 [#allocation3]  ;;  %s2484_s25 = sshll.u32 %s3753_s16, 3 }
  0x39   : > { %2949 = vmatpush1.bf16.msra.mxu0 %v3782_v39  ;;  %v3802_v48 = vpack.c.bf16 %v355_v45, %v352_v43  ;;  %v358_v51 = vld [vmem:[%s3763_s26 + $0x98] sm:$0xff]  ;;  %v361_v52 = vld [vmem:[%s3763_s26 + $0xb0] sm:$0xff]  ;;  %v3811_v54 = vpack.c.bf16 %v354_v50, %v351_v49  ;;  %v1987_v56 = vsel %vm1986_vm4, 1, %v3589_v27  ;;  %v360_v58 = vld [vmem:[%s3763_s26 + $0xa8] sm:$0xff]  ;;  %s4010_s12 = scalar_select %p136_p3, 5, 2 }
  0x3a   : > { %2951 = vmatprep.subr.bf16.mxu0 %v3784_v40  ;;  %v357_v55 = vld [vmem:[%s3763_s26 + $0x90] sm:$0xff]  ;;  %v3816_v57 = vpack.c.bf16 %v361_v52, %v358_v51  ;;  %v344_v60 = vld [vmem:[%s3763_s26 + $0x28] sm:$0xff]  ;;  %v367_v62 = vld [vmem:[%s3763_s26 + $0xe0] sm:$0xff]  ;;  %s4014_s9 = scalar_select %p136_p3, 4, 3 }
  0x3b   : > { %v341_v59 = vld [vmem:[%s3763_s26 + $0x10] sm:$0xff]  ;;  %v364_v61 = vld [vmem:[%s3763_s26 + $0xc8] sm:$0xff]  ;;  %v347_v0 = vld [vmem:[%s3763_s26 + $0x40] sm:$0xff]  ;;  %v3828_v2 = vpack.c.bf16 %v360_v58, %v357_v55  ;;  %s4029_s13 = scalar_select %p136_p3, 0, 7 }
  0x3c   : > { %1513 = vperm.xlu0 %3440, %v1511_v47   ;;  %v3823_v63 = vpack.c.bf16 %v344_v60, %v341_v59  ;;  %v350_v1 = vld [vmem:[%s3763_s26 + $0x58] sm:$0xff]  ;;  %v363_v3 = vld [vmem:[%s3763_s26 + $0xc0] sm:$0xff]  ;;  %v3835_v5 = vpack.c.bf16 %v367_v62, %v364_v61  ;;  %v353_v7 = vld [vmem:[%s3763_s26 + $0x70] sm:$0xff]  ;;  %s572_s23 = scalar_lea.vmem %s3952_s10, %s2523_s14 [#allocation2]  ;;  %s2524_s16 = smul.u32 24, %s4010_s12 }
  0x3d   : > { %2953 = vmatpush1.bf16.msra.mxu0 %v3794_v46  ;;  %v3832_v4 = vpack.c.bf16 %v350_v1, %v347_v0  ;;  %v366_v6 = vld [vmem:[%s3763_s26 + $0xd8] sm:$0xff]  ;;  %v356_v8 = vld [vmem:[%s3763_s26 + $0x88] sm:$0xff]  ;;  %v373_v10 = vld [vmem:[%s3763_s26 + $0x110] sm:$0xff] }
  0x3e   : > { %2955 = vmatprep.subr.bf16.mxu0 %v3802_v48  ;;  %2980 = vmatpush3.bf16.msra.mxu1 %v3823_v63  ;;  %v370_v9 = vld [vmem:[%s3763_s26 + $0xf8] sm:$0xff]  ;;  %v3844_v11 = vpack.c.bf16 %v366_v6, %v363_v3  ;;  %v369_v12 = vld [vmem:[%s3763_s26 + $0xf0] sm:$0xff]  ;;  %v3848_v13 = vpack.c.bf16 %v356_v8, %v353_v7  ;;  %v372_v15 = vld [vmem:[%s3763_s26 + $0x108] sm:$0xff]  ;;  %s810_s14 = scalar_lea.vmem %s3952_s10, %s2524_s16 [#allocation2]  ;;  %s2494_s16 = sshll.u32 %s4014_s9, 3 }
  0x3f   : > { %2981 = vmatprep.subr.bf16.mxu1 %v3586_v24  ;;  %v3851_v14 = vpack.c.bf16 %v373_v10, %v370_v9  ;;  %v359_v16 = vld [vmem:[%s3763_s26 + $0xa0] sm:$0xff]  ;;  %v362_v17 = vld [vmem:[%s3763_s26 + $0xb8] sm:$0xff]  ;;  %v376_v18 = vld [vmem:[%s3763_s26 + $0x128] sm:$0xff]  ;;  %v3860_v20 = vpack.c.bf16 %v372_v15, %v369_v12 }
  0x40   : > { %1989 = vperm.xlu0 %3440, %v1987_v56   ;;  %v379_v19 = vld [vmem:[%s3763_s26 + $0x140] sm:$0xff]  ;;  %v3864_v22 = vpack.c.bf16 %v362_v17, %v359_v16  ;;  %v378_v28 = vld [vmem:[%s3763_s26 + $0x138] sm:$0xff]  ;;  %v365_v29 = vld [vmem:[%s3763_s26 + $0xd0] sm:$0xff] }
  0x41   : > { %2957 = vmatpush1.bf16.msra.mxu0 %v3811_v54  ;;  %v375_v21 = vld [vmem:[%s3763_s26 + $0x120] sm:$0xff]  ;;  %v3867_v23 = vpack.c.bf16 %v379_v19, %v376_v18  ;;  %v368_v30 = vld [vmem:[%s3763_s26 + $0xe8] sm:$0xff]  ;;  %v382_v31 = vld [vmem:[%s3763_s26 + $0x158] sm:$0xff] }
  0x42   : > { %2959 = vmatprep.subr.bf16.mxu0 %v3816_v57  ;;  %2983 = vmatpush3.bf16.msra.mxu1 %v3832_v4  ;;  %v385_v32 = vld [vmem:[%s3763_s26 + $0x170] sm:$0xff]  ;;  %v3876_v33 = vpack.c.bf16 %v378_v28, %v375_v21  ;;  %v3880_v36 = vpack.c.bf16 %v368_v30, %v365_v29  ;;  %v384_v38 = vld [vmem:[%s3763_s26 + $0x168] sm:$0xff]  ;;  %v371_v41 = vld [vmem:[%s3763_s26 + $0x100] sm:$0xff] }
  0x43   : > { %2984 = vmatprep.subr.bf16.mxu1 %v3586_v24  ;;  %v381_v34 = vld [vmem:[%s3763_s26 + $0x150] sm:$0xff]  ;;  %v3883_v37 = vpack.c.bf16 %v385_v32, %v382_v31  ;;  %v374_v42 = vld [vmem:[%s3763_s26 + $0x118] sm:$0xff]  ;;  %v380_v47 = vld [vmem:[%s3763_s26 + $0x148] sm:$0xff] }
  0x44   : > { %v3890_v43 = vpack.c.bf16 %v384_v38, %v381_v34  ;;  %v3893_v44 = vpack.c.bf16 %v374_v42, %v371_v41  ;;  %v377_v45 = vld [vmem:[%s3763_s26 + $0x130] sm:$0xff]  ;;  %v383_v50 = vld [vmem:[%s3763_s26 + $0x160] sm:$0xff]  ;;  %v386_v51 = vld [vmem:[%s3763_s26 + $0x178] sm:$0xff] }
  0x45   : > { %2961 = vmatpush1.bf16.msra.mxu0 %v3828_v2  ;;  %v3901_v49 = vpack.c.bf16 %v380_v47, %v377_v45  ;;  %v3909_v52 = vpack.c.bf16 %v386_v51, %v383_v50  ;;  %v336_v53 = vld [vmem:[%s335_s11] sm:$0xff]  ;;  %v337_v58 = vld [vmem:[%s335_s11 + $0x8] sm:$0xff]  ;;  %v338_v15 = vld [vmem:[%s335_s11 + $0x10] sm:$0xff]  ;;  %s4019_s11 = scalar_select %p136_p3, 2, 5 }
  0x46   : > { %2963 = vmatprep.subr.bf16.mxu0 %v3835_v5  ;;  %2986 = vmatpush3.bf16.msra.mxu1 %v3848_v13  ;;  %v3962_v8 = vld [vmem:[%s3959_s17] ss:$0 sm:$0xff]  ;;  %v574_v45 = vld [vmem:[%s572_s23 + $0x8] sm:$0xff] }
  0x47   : > { %2987 = vmatprep.subr.bf16.mxu1 %v3586_v24  ;;  %v573_v38 = vld [vmem:[%s572_s23] sm:$0xff] }
  0x49   : > { %2965 = vmatpush1.bf16.msra.mxu0 %v3844_v11 }
  0x4a   : > { %2967 = vmatprep.subr.bf16.mxu0 %v3851_v14  ;;  %2989 = vmatpush3.bf16.msra.mxu1 %v3864_v22 }
  0x4b   : > { %2990 = vmatprep.subr.bf16.mxu1 %v3586_v24 }
  0x4d   : > { %2969 = vmatpush1.bf16.msra.mxu0 %v3860_v20 }
  0x4e   : > { %2971 = vmatprep.subr.bf16.mxu0 %v3867_v23  ;;  %2992 = vmatpush3.bf16.msra.mxu1 %v3880_v36 }
  0x4f   : > { %2993 = vmatprep.subr.bf16.mxu1 %v3586_v24 }
  0x51   : > { %2973 = vmatpush1.bf16.msra.mxu0 %v3876_v33 }
  0x52   : > { %2975 = vmatprep.subr.bf16.mxu0 %v3883_v37  ;;  %2995 = vmatpush3.bf16.msra.mxu1 %v3893_v44 }
  0x53   : > { %2996 = vmatprep.subr.bf16.mxu1 %v3586_v24 }
  0x55   : > { %2977 = vmatpush1.bf16.msra.mxu0 %v3890_v43 }
  0x56   : > { %3003 = vmatprep.subr.bf16.mxu0 %v3777_v35  ;;  %2998 = vmatpush3.bf16.msra.mxu1 %v3901_v49 }
  0x57   : > { %2999 = vmatprep.subr.bf16.mxu1 %v3586_v24 }
  0x58   : > { %452 = vmatmul.mubr.f32.vlgmr.msra.gmra.mrb[0].mxu0 %v3587_v25 }
  0x59   : > { %3005 = vmatpush1.bf16.msra.mxu0 %v3782_v39  ;;  %688 = vmatprep.mubr.f32.mxu0 %v3587_v25 }
  0x5a   : > { %3007 = vmatprep.subr.bf16.mxu0 %v3784_v40  ;;  %3001 = vmatpush3.bf16.msra.mxu1 %v3909_v52 }
  0x5b   : > { %3034 = vmatprep.subr.bf16.mxu1 %v3586_v24 }
  0x5d   : > { %3009 = vmatpush1.bf16.msra.mxu0 %v3794_v46  ;;  %2699 = vmatmul.mubr.f32.vlgmr.msra.gmra.mrb[0].mxu1 %v3587_v25 }
  0x5e   : > { %3011 = vmatprep.subr.bf16.mxu0 %v3802_v48  ;;  %3036 = vmatpush3.bf16.msra.mxu1 %v3823_v63 }
  0x5f   : > { %3037 = vmatprep.subr.bf16.mxu1 %v3586_v24  ;;  %2733 = vmatprep.mubr.msk.f32.mxu1 %vm3588_vm0, %v3587_v25 }
  0x61   : > { %3013 = vmatpush1.bf16.msra.mxu0 %v3811_v54 }
  0x62   : > { %3015 = vmatprep.subr.bf16.mxu0 %v3816_v57  ;;  %3039 = vmatpush3.bf16.msra.mxu1 %v3832_v4 }
  0x63   : > { %3040 = vmatprep.subr.bf16.mxu1 %v3586_v24 }
  0x65   : > { %3017 = vmatpush1.bf16.msra.mxu0 %v3828_v2 }
  0x66   : > { %3019 = vmatprep.subr.bf16.mxu0 %v3835_v5  ;;  %3042 = vmatpush3.bf16.msra.mxu1 %v3848_v13 }
  0x67   : > { %3043 = vmatprep.subr.bf16.mxu1 %v3586_v24 }
  0x69   : > { %3021 = vmatpush1.bf16.msra.mxu0 %v3844_v11 }
  0x6a   : > { %3023 = vmatprep.subr.bf16.mxu0 %v3851_v14  ;;  %3045 = vmatpush3.bf16.msra.mxu1 %v3864_v22 }
  0x6b   : > { %3046 = vmatprep.subr.bf16.mxu1 %v3586_v24 }
  0x6d   : > { %3025 = vmatpush1.bf16.msra.mxu0 %v3860_v20 }
  0x6e   : > { %3027 = vmatprep.subr.bf16.mxu0 %v3867_v23  ;;  %3048 = vmatpush3.bf16.msra.mxu1 %v3880_v36 }
  0x6f   : > { %3049 = vmatprep.subr.bf16.mxu1 %v3586_v24 }
  0x71   : > { %3029 = vmatpush1.bf16.msra.mxu0 %v3876_v33 }
  0x72   : > { %3031 = vmatprep.subr.bf16.mxu0 %v3883_v37  ;;  %3051 = vmatpush3.bf16.msra.mxu1 %v3893_v44 }
  0x73   : > { %3052 = vmatprep.subr.bf16.mxu1 %v3586_v24 }
  0x75   : > { %3033 = vmatpush1.bf16.msra.mxu0 %v3890_v43 }
  0x76   : > { %3059 = vmatprep.subr.bf16.mxu0 %v3777_v35  ;;  %3054 = vmatpush3.bf16.msra.mxu1 %v3901_v49 }
  0x77   : > { %3055 = vmatprep.subr.bf16.mxu1 %v3586_v24 }
  0x7a   : > { %3057 = vmatpush3.bf16.msra.mxu1 %v3909_v52 }
  0x7b   : > { %3090 = vmatprep.subr.bf16.mxu1 %v3586_v24 }
  0xb3   : > { %v563_v28 = vpop.permute.xlu0 %562 }
  0xb4   : > { %vm564_vm5 = vcmp.eq.s32.totalorder %v563_v28, 1 }
 0x12b   : > { %v453_v55 = vpop.f32.mrb[0].mxu0 }
 0x12c   : > { %v528_v56 = vadd.f32 %v453_v55, %v336_v53  ;;  %v455_v59 = vpop.f32.mrb[1].mxu0 }
 0x12d   : > { %v535_v61 = vadd.f32 %v455_v59, %v337_v58 }
 0x12e   : > { %v2474_v60 = vmul.f32 -1.442695, %v528_v56 }
 0x12f   : > { %v2475_v62 = vmul.f32 -1.442695, %v535_v61  ;;  %v575_v61 = vld [vmem:[%s572_s23 + $0x10] sm:$0xff]  ;;  %s2489_s23 = sshll.u32 %s4010_s12, 3 }
 0x130   : > { %3442 = vpow2.f32 %v2474_v60  ;;  %v524_v0 = vpop.f32.mrb[0].mxu1 }
 0x131   : > { %v2700_v1 = vpop.f32.mrb[1].mxu1  ;;  %3444 = vpow2.f32 %v2475_v62  ;;  %v549_v10 = vadd.f32 %v3962_v8, %v524_v0 }
 0x13a   : > { %v3443_v3 = vpop.eup %3442 }
 0x13b   : > { %v532_v6 = vadd.f32 1.0, %v3443_v3  ;;  %v3445_v7 = vpop.eup %3444 }
 0x13c   : > { %v539_v9 = vadd.f32 1.0, %v3445_v7 }
 0x13d   : > { %3446 = vrcp.f32 %v532_v6 }
 0x13e   : > { %3448 = vrcp.f32 %v539_v9 }
 0x147   : > { %v3447_v12 = vpop.eup %3446 }
 0x148   : > { %v550_v16 = vmul.f32 %v3447_v12, %v549_v10  ;;  %v3449_v18 = vpop.eup %3448  ;;  %v800_v10 = vpop.permute.xlu0 %799 }
 0x149   : > { %v553_v19 = vsub.f32 1.0, %v3449_v18  ;;  %v555_v30 = vmul.f32 0.0, %v3449_v18  ;;  %vm801_vm10 = vcmp.eq.s32.totalorder %v800_v10, 1 }
 0x14a   : > { %v551_v17 = vadd.f32 %v550_v16, %v338_v15 }
 0x14c   : > { %3450 = vtanh.f32 %v551_v17  ;;  %v1098_v17 = vld [vmem:[%s3763_s26 + $0x170] sm:$0xff] }
 0x156   : > { %v3451_v21 = vpop.eup %3450 }
 0x157   : > { %v554_v29 = vmul.f32 %v3451_v21, %v553_v19  ;;  %v1094_v19 = vld [vmem:[%s3763_s26 + $0x150] sm:$0xff]  ;;  %v1097_v21 = vld [vmem:[%s3763_s26 + $0x168] sm:$0xff] }
 0x158   : > { %v4105_v28 = vpack.c.bf16 %v1097_v21, %v1094_v19  ;;  %v1307_v21 = vld [vmem:[%s3763_s26 + $0x88] sm:$0xff] }
 0x159   : > { %v556_v31 = vadd.f32 %v555_v30, %v554_v29  ;;  %v811_v29 = vld [vmem:[%s810_s14] sm:$0xff] }
 0x15b   : > { %v3970_v32 = vsel %vm564_vm5, %v556_v31, 0.0  ;;  %2479 = vmatmul.mubr.msk.f32.vlgmr.msra.gmra.mrb[2].mxu0 %vm564_vm5, %v556_v31  ;;  %2734 = vmatmul.mubr.msk.f32.vlgmr.msra.gmra.mrb[2].mxu1 %vm564_vm5, %v556_v31 }
 0x15c   : > { %568 = vst [vmem:[%s567_s8] sm:$0xff] %v3970_v32  ;;  %3061 = vmatpush1.bf16.msra.mxu0 %v3782_v39  ;;  %3092 = vmatpush3.bf16.msra.mxu1 %v3823_v63  ;;  %s805_s8 = scalar_lea.vmem %s3967_s15, %s2484_s25 [#allocation3]  ;;  %s1043_s25 = scalar_lea.vmem %s3967_s15, %s2489_s23 [#allocation3] }
 0x15d   : > { %3063 = vmatprep.subr.bf16.mxu0 %v3784_v40  ;;  %3093 = vmatprep.subr.bf16.mxu1 %v3586_v24 }
 0x15e   : > { %926 = vmatprep.mubr.f32.mxu0 %v3587_v25  ;;  %2768 = vmatprep.mubr.msk.f32.mxu1 %vm3588_vm0, %v3587_v25 }
 0x160   : > { %3065 = vmatpush1.bf16.msra.mxu0 %v3794_v46  ;;  %3095 = vmatpush3.bf16.msra.mxu1 %v3832_v4 }
 0x161   : > { %3067 = vmatprep.subr.bf16.mxu0 %v3802_v48  ;;  %3096 = vmatprep.subr.bf16.mxu1 %v3586_v24 }
 0x164   : > { %3069 = vmatpush1.bf16.msra.mxu0 %v3811_v54  ;;  %3098 = vmatpush3.bf16.msra.mxu1 %v3848_v13 }
 0x165   : > { %3071 = vmatprep.subr.bf16.mxu0 %v3816_v57  ;;  %3099 = vmatprep.subr.bf16.mxu1 %v3586_v24 }
 0x168   : > { %3073 = vmatpush1.bf16.msra.mxu0 %v3828_v2  ;;  %3101 = vmatpush3.bf16.msra.mxu1 %v3864_v22 }
 0x169   : > { %3075 = vmatprep.subr.bf16.mxu0 %v3835_v5  ;;  %3102 = vmatprep.subr.bf16.mxu1 %v3586_v24 }
 0x16c   : > { %3077 = vmatpush1.bf16.msra.mxu0 %v3844_v11  ;;  %3104 = vmatpush3.bf16.msra.mxu1 %v3880_v36  ;;  %v1033_v11 = vstv %s4010_s12  ;;  %s2525_s12 = smul.u32 24, %s4014_s9 }
 0x16d   : > { %3079 = vmatprep.subr.bf16.mxu0 %v3851_v14  ;;  %3105 = vmatprep.subr.bf16.mxu1 %v3586_v24  ;;  %vm1034_vm6 = vcmp.lt.s32.totalorder %v1033_v11, %v3742_v26  ;;  %v1271_v14 = vstv %s4014_s9  ;;  %v812_v11 = vld [vmem:[%s810_s14 + $0x8] sm:$0xff]  ;;  %s2526_s9 = smul.u32 24, %s3775_s6 }
 0x16e   : > { %vm1272_vm7 = vcmp.lt.s32.totalorder %v1271_v14, %v3742_v26 }
 0x16f   : > { %s1286_s23 = scalar_lea.vmem %s3952_s10, %s2526_s9 [#allocation2] }
 0x170   : > { %3081 = vmatpush1.bf16.msra.mxu0 %v3860_v20  ;;  %3107 = vmatpush3.bf16.msra.mxu1 %v3893_v44  ;;  %v1747_v20 = vstv %s4019_s11 }
 0x171   : > { %3083 = vmatprep.subr.bf16.mxu0 %v3867_v23  ;;  %3108 = vmatprep.subr.bf16.mxu1 %v3586_v24  ;;  %v1273_v23 = vsel %vm1272_vm7, 1, %v3589_v27  ;;  %vm1748_vm8 = vcmp.lt.s32.totalorder %v1747_v20, %v3742_v26 }
 0x172   : > { %v1749_v34 = vsel %vm1748_vm8, 1, %v3589_v27 }
 0x174   : > { %3085 = vmatpush1.bf16.msra.mxu0 %v3876_v33  ;;  %3110 = vmatpush3.bf16.msra.mxu1 %v3901_v49  ;;  %v2223_v33 = vstv %s4029_s13 }
 0x175   : > { %3087 = vmatprep.subr.bf16.mxu0 %v3883_v37  ;;  %3111 = vmatprep.subr.bf16.mxu1 %v3586_v24  ;;  %vm2224_vm9 = vcmp.lt.s32.totalorder %v2223_v33, %v3742_v26 }
 0x176   : > { %v2225_v37 = vsel %vm2224_vm9, 1, %v3589_v27 }
 0x178   : > { %3089 = vmatpush1.bf16.msra.mxu0 %v3890_v43  ;;  %3113 = vmatpush3.bf16.msra.mxu1 %v3909_v52 }
 0x179   : > { %3115 = vmatprep.subr.bf16.mxu0 %v3777_v35  ;;  %3146 = vmatprep.subr.bf16.mxu1 %v3586_v24  ;;  %v1035_v35 = vsel %vm1034_vm6, 1, %v3589_v27 }
 0x17a   : > { %1037 = vperm.xlu1 %3441, %v1035_v35  }
 0x17e   : > { %1275 = vperm.xlu1 %3441, %v1273_v23  }
 0x182   : > { %1751 = vperm.xlu1 %3441, %v1749_v34  }
 0x186   : > { %2227 = vperm.xlu1 %3441, %v2225_v37  }
 0x22e   : > { %v690_v41 = vpop.f32.mrb[2].mxu0  ;;  %v761_v42 = vpop.f32.mrb[2].mxu1 }
 0x22f   : > { %v765_v43 = vadd.f32 %v690_v41, %v573_v38  ;;  %v692_v47 = vpop.f32.mrb[3].mxu0  ;;  %v2735_v50 = vpop.f32.mrb[3].mxu1  ;;  %v786_v59 = vadd.f32 %v3962_v8, %v761_v42 }
 0x230   : > { %v772_v53 = vadd.f32 %v692_v47, %v574_v45  ;;  %v813_v45 = vld [vmem:[%s810_s14 + $0x10] sm:$0xff]  ;;  %s1281_s14 = scalar_lea.vmem %s3967_s15, %s2494_s16 [#allocation3] }
 0x231   : > { %v2481_v51 = vmul.f32 -1.442695, %v765_v43 }
 0x232   : > { %v2482_v55 = vmul.f32 -1.442695, %v772_v53 }
 0x233   : > { %3452 = vpow2.f32 %v2481_v51 }
 0x234   : > { %3454 = vpow2.f32 %v2482_v55 }
 0x23d   : > { %v3453_v26 = vpop.eup %3452 }
 0x23e   : > { %v769_v56 = vadd.f32 1.0, %v3453_v26  ;;  %v3455_v27 = vpop.eup %3454  ;;  %v1038_v26 = vpop.permute.xlu1 %1037 }
 0x23f   : > { %v776_v58 = vadd.f32 1.0, %v3455_v27  ;;  %vm1039_vm11 = vcmp.eq.s32.totalorder %v1038_v26, 1  ;;  %v1334_v26 = vld [vmem:[%s3763_s26 + $0x160] sm:$0xff] }
 0x240   : > { %3456 = vrcp.f32 %v769_v56 }
 0x241   : > { %3458 = vrcp.f32 %v776_v58 }
 0x24a   : > { %v3457_v60 = vpop.eup %3456 }
 0x24b   : > { %v787_v62 = vmul.f32 %v3457_v60, %v786_v59  ;;  %v3459_v1 = vpop.eup %3458 }
 0x24c   : > { %v790_v3 = vsub.f32 1.0, %v3459_v1  ;;  %v792_v9 = vmul.f32 %v3459_v1, %v3970_v32  ;;  %v1290_v1 = vld [vmem:[%s3763_s26] sm:$0xff] }
 0x24d   : > { %v788_v0 = vadd.f32 %v787_v62, %v575_v61  ;;  %v1291_v61 = vld [vmem:[%s3763_s26 + $0x8] sm:$0xff]  ;;  %v1294_v62 = vld [vmem:[%s3763_s26 + $0x20] sm:$0xff] }
 0x24f   : > { %3460 = vtanh.f32 %v788_v0  ;;  %v4125_v0 = vpack.c.bf16 %v1294_v62, %v1291_v61 }
 0x259   : > { %v3461_v6 = vpop.eup %3460 }
 0x25a   : > { %v791_v7 = vmul.f32 %v3461_v6, %v790_v3  ;;  %v1293_v3 = vld [vmem:[%s3763_s26 + $0x18] sm:$0xff]  ;;  %v1292_v6 = vld [vmem:[%s3763_s26 + $0x10] sm:$0xff] }
 0x25c   : > { %v793_v12 = vadd.f32 %v792_v9, %v791_v7  ;;  %v4130_v7 = vpack.c.bf16 %v1293_v3, %v1290_v1  ;;  %v1295_v9 = vld [vmem:[%s3763_s26 + $0x28] sm:$0xff] }
 0x25d   : > { %v4134_v10 = vpack.c.bf16 %v1295_v9, %v1292_v6 }
 0x25e   : > { %v4043_v15 = vsel %vm801_vm10, %v793_v12, %v3970_v32  ;;  %v803_v16 = vsel %vm801_vm10, %v793_v12, 0.0  ;;  %v1297_v12 = vld [vmem:[%s3763_s26 + $0x38] sm:$0xff] }
 0x25f   : > { %806 = vst [vmem:[%s805_s8] sm:$0xff] %v803_v16  ;;  %927 = vmatmul.mubr.f32.vlgmr.msra.gmra.mrb[4].mxu0 %v4043_v15  ;;  %2769 = vmatmul.mubr.f32.vlgmr.msra.gmra.mrb[4].mxu1 %v4043_v15  ;;  %s1048_s8 = scalar_lea.vmem %s3952_s10, %s2525_s12 [#allocation2] }
 0x260   : > { %3117 = vmatpush1.bf16.msra.mxu0 %v3782_v39  ;;  %3148 = vmatpush3.bf16.msra.mxu1 %v3823_v63  ;;  %v1076_v39 = vld [vmem:[%s3763_s26 + $0xc0] sm:$0xff]  ;;  %v1082_v63 = vld [vmem:[%s3763_s26 + $0xf0] sm:$0xff]  ;;  %v1050_v1 = vld [vmem:[%s1048_s8 + $0x8] sm:$0xff] }
 0x261   : > { %3119 = vmatprep.subr.bf16.mxu0 %v3784_v40  ;;  %3149 = vmatprep.subr.bf16.mxu1 %v3586_v24  ;;  %v1079_v40 = vld [vmem:[%s3763_s26 + $0xd8] sm:$0xff] }
 0x262   : > { %1164 = vmatprep.mubr.f32.mxu0 %v3587_v25  ;;  %2803 = vmatprep.mubr.msk.f32.mxu1 %vm3588_vm0, %v3587_v25 }
 0x264   : > { %3121 = vmatpush1.bf16.msra.mxu0 %v3794_v46  ;;  %3151 = vmatpush3.bf16.msra.mxu1 %v3832_v4  ;;  %v4076_v46 = vpack.c.bf16 %v1079_v40, %v1076_v39  ;;  %v1296_v39 = vld [vmem:[%s3763_s26 + $0x30] sm:$0xff]  ;;  %v1299_v40 = vld [vmem:[%s3763_s26 + $0x48] sm:$0xff] }
 0x265   : > { %3123 = vmatprep.subr.bf16.mxu0 %v3802_v48  ;;  %3152 = vmatprep.subr.bf16.mxu1 %v3586_v24  ;;  %v1083_v48 = vld [vmem:[%s3763_s26 + $0xf8] sm:$0xff] }
 0x268   : > { %3125 = vmatpush1.bf16.msra.mxu0 %v3811_v54  ;;  %3154 = vmatpush3.bf16.msra.mxu1 %v3848_v13  ;;  %v1086_v54 = vld [vmem:[%s3763_s26 + $0x110] sm:$0xff]  ;;  %v1092_v13 = vld [vmem:[%s3763_s26 + $0x140] sm:$0xff] }
 0x269   : > { %3127 = vmatprep.subr.bf16.mxu0 %v3816_v57  ;;  %3155 = vmatprep.subr.bf16.mxu1 %v3586_v24  ;;  %v4081_v57 = vpack.c.bf16 %v1086_v54, %v1083_v48  ;;  %v1298_v48 = vld [vmem:[%s3763_s26 + $0x40] sm:$0xff]  ;;  %v4146_v54 = vpack.c.bf16 %v1299_v40, %v1296_v39 }
 0x26c   : > { %3129 = vmatpush1.bf16.msra.mxu0 %v3828_v2  ;;  %3157 = vmatpush3.bf16.msra.mxu1 %v3864_v22  ;;  %v1085_v2 = vld [vmem:[%s3763_s26 + $0x108] sm:$0xff] }
 0x26d   : > { %3131 = vmatprep.subr.bf16.mxu0 %v3835_v5  ;;  %3158 = vmatprep.subr.bf16.mxu1 %v3586_v24  ;;  %v4085_v4 = vpack.c.bf16 %v1085_v2, %v1082_v63  ;;  %v1089_v5 = vld [vmem:[%s3763_s26 + $0x128] sm:$0xff]  ;;  %v1301_v63 = vld [vmem:[%s3763_s26 + $0x58] sm:$0xff] }
 0x26e   : > { %v4091_v22 = vpack.c.bf16 %v1092_v13, %v1089_v5  ;;  %v4150_v2 = vpack.c.bf16 %v1301_v63, %v1298_v48  ;;  %v1303_v5 = vld [vmem:[%s3763_s26 + $0x68] sm:$0xff]  ;;  %v1306_v13 = vld [vmem:[%s3763_s26 + $0x80] sm:$0xff] }
 0x270   : > { %3160 = vmatpush3.bf16.msra.mxu1 %v3880_v36  ;;  %3133 = vmatpush1.bf16.msra.mxu0 %v4076_v46  ;;  %v1088_v36 = vld [vmem:[%s3763_s26 + $0x120] sm:$0xff] }
 0x271   : > { %3161 = vmatprep.subr.bf16.mxu1 %v3586_v24  ;;  %3135 = vmatprep.subr.bf16.mxu0 %v4081_v57 }
 0x274   : > { %3163 = vmatpush3.bf16.msra.mxu1 %v3893_v44  ;;  %3137 = vmatpush1.bf16.msra.mxu0 %v4085_v4  ;;  %v1091_v44 = vld [vmem:[%s3763_s26 + $0x138] sm:$0xff] }
 0x275   : > { %3164 = vmatprep.subr.bf16.mxu1 %v3586_v24  ;;  %3139 = vmatprep.subr.bf16.mxu0 %v4091_v22 }
 0x278   : > { %3166 = vmatpush3.bf16.msra.mxu1 %v3901_v49  ;;  %v4095_v49 = vpack.c.bf16 %v1091_v44, %v1088_v36  ;;  %v4156_v36 = vpack.c.bf16 %v1306_v13, %v1303_v5  ;;  %v1302_v44 = vld [vmem:[%s3763_s26 + $0x60] sm:$0xff] }
 0x279   : > { %3167 = vmatprep.subr.bf16.mxu1 %v3586_v24 }
 0x27a   : > { %3141 = vmatpush1.bf16.msra.mxu0 %v4095_v49 }
 0x27c   : > { %3169 = vmatpush3.bf16.msra.mxu1 %v3909_v52  ;;  %v1095_v52 = vld [vmem:[%s3763_s26 + $0x158] sm:$0xff] }
 0x27d   : > { %3202 = vmatprep.subr.bf16.mxu1 %v3586_v24  ;;  %v4101_v18 = vpack.c.bf16 %v1098_v17, %v1095_v52  ;;  %v1305_v52 = vld [vmem:[%s3763_s26 + $0x78] sm:$0xff]  ;;  %v1304_v17 = vld [vmem:[%s3763_s26 + $0x70] sm:$0xff] }
 0x27e   : > { %v4162_v19 = vpack.c.bf16 %v1305_v52, %v1302_v44  ;;  %v1051_v44 = vld [vmem:[%s1048_s8 + $0x10] sm:$0xff] }
 0x27f   : > { %3143 = vmatprep.subr.bf16.mxu0 %v4101_v18 }
 0x280   : > { %3145 = vmatpush1.bf16.msra.mxu0 %v4105_v28 }
 0x281   : > { %3171 = vmatprep.subr.bf16.mxu0 %v4125_v0 }
 0x332   : > { %v928_v30 = vpop.f32.mrb[4].mxu0  ;;  %v999_v31 = vpop.f32.mrb[4].mxu1 }
 0x333   : > { %v1003_v32 = vadd.f32 %v928_v30, %v811_v29  ;;  %v930_v14 = vpop.f32.mrb[5].mxu0  ;;  %v2770_v35 = vpop.f32.mrb[5].mxu1  ;;  %v1024_v42 = vadd.f32 %v3962_v8, %v999_v31  ;;  %v4166_v29 = vpack.c.bf16 %v1307_v21, %v1304_v17  ;;  %v1309_v30 = vld [vmem:[%s3763_s26 + $0x98] sm:$0xff]  ;;  %v1312_v31 = vld [vmem:[%s3763_s26 + $0xb0] sm:$0xff] }
 0x334   : > { %v1010_v23 = vadd.f32 %v930_v14, %v812_v11  ;;  %v1308_v11 = vld [vmem:[%s3763_s26 + $0x90] sm:$0xff]  ;;  %v1311_v14 = vld [vmem:[%s3763_s26 + $0xa8] sm:$0xff]  ;;  %v1310_v35 = vld [vmem:[%s3763_s26 + $0xa0] sm:$0xff] }
 0x335   : > { %v2486_v20 = vmul.f32 -1.442695, %v1003_v32  ;;  %v4172_v32 = vpack.c.bf16 %v1312_v31, %v1309_v30 }
 0x336   : > { %v2487_v33 = vmul.f32 -1.442695, %v1010_v23  ;;  %v1313_v23 = vld [vmem:[%s3763_s26 + $0xb8] sm:$0xff] }
 0x337   : > { %3462 = vpow2.f32 %v2486_v20  ;;  %v4178_v20 = vpack.c.bf16 %v1311_v14, %v1308_v11 }
 0x338   : > { %3464 = vpow2.f32 %v2487_v33  ;;  %v4182_v33 = vpack.c.bf16 %v1313_v23, %v1310_v35  ;;  %v1276_v35 = vpop.permute.xlu1 %1275 }
 0x339   : > { %vm1277_vm12 = vcmp.eq.s32.totalorder %v1276_v35, 1 }
 0x341   : > { %v3463_v34 = vpop.eup %3462 }
 0x342   : > { %v1007_v37 = vadd.f32 1.0, %v3463_v34  ;;  %v3465_v38 = vpop.eup %3464  ;;  %v1315_v34 = vld [vmem:[%s3763_s26 + $0xc8] sm:$0xff] }
 0x343   : > { %v1014_v41 = vadd.f32 1.0, %v3465_v38 }
 0x344   : > { %3466 = vrcp.f32 %v1007_v37  ;;  %v1318_v37 = vld [vmem:[%s3763_s26 + $0xe0] sm:$0xff] }
 0x345   : > { %3468 = vrcp.f32 %v1014_v41  ;;  %v4188_v38 = vpack.c.bf16 %v1318_v37, %v1315_v34  ;;  %v1316_v41 = vld [vmem:[%s3763_s26 + $0xd0] sm:$0xff] }
 0x34e   : > { %v3467_v43 = vpop.eup %3466 }
 0x34f   : > { %v1025_v47 = vmul.f32 %v3467_v43, %v1024_v42  ;;  %v3469_v51 = vpop.eup %3468  ;;  %v1319_v42 = vld [vmem:[%s3763_s26 + $0xe8] sm:$0xff] }
 0x350   : > { %v1028_v53 = vsub.f32 1.0, %v3469_v51  ;;  %v1030_v27 = vmul.f32 %v3469_v51, %v4043_v15  ;;  %v4193_v43 = vpack.c.bf16 %v1319_v42, %v1316_v41  ;;  %v1328_v51 = vld [vmem:[%s3763_s26 + $0x130] sm:$0xff] }
 0x351   : > { %v1026_v50 = vadd.f32 %v1025_v47, %v813_v45  ;;  %v1322_v45 = vld [vmem:[%s3763_s26 + $0x100] sm:$0xff]  ;;  %v1325_v47 = vld [vmem:[%s3763_s26 + $0x118] sm:$0xff] }
 0x353   : > { %3470 = vtanh.f32 %v1026_v50  ;;  %v4201_v50 = vpack.c.bf16 %v1325_v47, %v1322_v45  ;;  %v1288_v45 = vld [vmem:[%s1286_s23 + $0x8] sm:$0xff] }
 0x35d   : > { %v3471_v55 = vpop.eup %3470 }
 0x35e   : > { %v1029_v56 = vmul.f32 %v3471_v55, %v1028_v53  ;;  %v1331_v53 = vld [vmem:[%s3763_s26 + $0x148] sm:$0xff] }
 0x35f   : > { %v4209_v55 = vpack.c.bf16 %v1331_v53, %v1328_v51 }
 0x360   : > { %v1031_v58 = vadd.f32 %v1030_v27, %v1029_v56  ;;  %v1337_v56 = vld [vmem:[%s3763_s26 + $0x178] sm:$0xff] }
 0x361   : > { %v4217_v27 = vpack.c.bf16 %v1337_v56, %v1334_v26 }
 0x362   : > { %v4116_v59 = vsel %vm1039_vm11, %v1031_v58, %v4043_v15  ;;  %v1041_v60 = vsel %vm1039_vm11, %v1031_v58, 0.0  ;;  %v1300_v15 = vld [vmem:[%s3763_s26 + $0x50] sm:$0xff]  ;;  %v1049_v58 = vld [vmem:[%s1048_s8] sm:$0xff]  ;;  %s2504_s8 = sshll.u32 %s4019_s11, 3 }
 0x363   : > { %1044 = vst [vmem:[%s1043_s25] sm:$0xff] %v1041_v60  ;;  %1165 = vmatmul.mubr.f32.vlgmr.msra.gmra.mrb[6].mxu0 %v4116_v59  ;;  %2804 = vmatmul.mubr.f32.vlgmr.msra.gmra.mrb[6].mxu1 %v4116_v59  ;;  %v4140_v16 = vpack.c.bf16 %v1300_v15, %v1297_v12  ;;  %s2499_s25 = sshll.u32 %s3775_s6, 3  ;;  %s2527_s6 = smul.u32 24, %s4019_s11 }
 0x364   : > { %1402 = vmatprep.mubr.f32.mxu0 %v3587_v25  ;;  %2838 = vmatprep.mubr.msk.f32.mxu1 %vm3588_vm0, %v3587_v25  ;;  %s1519_s12 = scalar_lea.vmem %s3967_s15, %s2499_s25 [#allocation3]  ;;  %s1757_s16 = scalar_lea.vmem %s3967_s15, %s2504_s8 [#allocation3] }
 0x365   : > { %3173 = vmatpush1.bf16.msra.mxu0 %v4130_v7  ;;  %3204 = vmatpush3.bf16.msra.mxu1 %v4134_v10  ;;  %s2528_s11 = smul.u32 24, %s3799_s7 }
 0x366   : > { %3205 = vmatprep.subr.bf16.mxu1 %v3586_v24  ;;  %3175 = vmatprep.subr.bf16.mxu0 %v4140_v16 }
 0x369   : > { %3177 = vmatpush1.bf16.msra.mxu0 %v4146_v54  ;;  %3207 = vmatpush3.bf16.msra.mxu1 %v4150_v2 }
 0x36a   : > { %3208 = vmatprep.subr.bf16.mxu1 %v3586_v24  ;;  %3179 = vmatprep.subr.bf16.mxu0 %v4156_v36 }
 0x36d   : > { %3181 = vmatpush1.bf16.msra.mxu0 %v4162_v19  ;;  %3210 = vmatpush3.bf16.msra.mxu1 %v4166_v29 }
 0x36e   : > { %3211 = vmatprep.subr.bf16.mxu1 %v3586_v24  ;;  %3183 = vmatprep.subr.bf16.mxu0 %v4172_v32 }
 0x371   : > { %3185 = vmatpush1.bf16.msra.mxu0 %v4178_v20  ;;  %3213 = vmatpush3.bf16.msra.mxu1 %v4182_v33 }
 0x372   : > { %3214 = vmatprep.subr.bf16.mxu1 %v3586_v24  ;;  %3187 = vmatprep.subr.bf16.mxu0 %v4188_v38 }
 0x375   : > { %3189 = vmatpush1.bf16.msra.mxu0 %v4076_v46  ;;  %3216 = vmatpush3.bf16.msra.mxu1 %v4193_v43 }
 0x376   : > { %3191 = vmatprep.subr.bf16.mxu0 %v4081_v57  ;;  %3217 = vmatprep.subr.bf16.mxu1 %v3586_v24 }
 0x379   : > { %3193 = vmatpush1.bf16.msra.mxu0 %v4085_v4  ;;  %3219 = vmatpush3.bf16.msra.mxu1 %v4201_v50 }
 0x37a   : > { %3195 = vmatprep.subr.bf16.mxu0 %v4091_v22  ;;  %3220 = vmatprep.subr.bf16.mxu1 %v3586_v24 }
 0x37d   : > { %3197 = vmatpush1.bf16.msra.mxu0 %v4095_v49  ;;  %3222 = vmatpush3.bf16.msra.mxu1 %v4209_v55 }
 0x37e   : > { %3199 = vmatprep.subr.bf16.mxu0 %v4101_v18  ;;  %3223 = vmatprep.subr.bf16.mxu1 %v3586_v24 }
 0x381   : > { %3201 = vmatpush1.bf16.msra.mxu0 %v4105_v28  ;;  %3225 = vmatpush3.bf16.msra.mxu1 %v4217_v27 }
 0x382   : > { %3227 = vmatprep.subr.bf16.mxu0 %v4125_v0  ;;  %3258 = vmatprep.subr.bf16.mxu1 %v3586_v24 }
 0x436   : > { %v1166_v60 = vpop.f32.mrb[6].mxu0  ;;  %v1237_v61 = vpop.f32.mrb[6].mxu1 }
 0x437   : > { %v1241_v62 = vadd.f32 %v1166_v60, %v1049_v58  ;;  %v1168_v3 = vpop.f32.mrb[7].mxu0  ;;  %v2805_v6 = vpop.f32.mrb[7].mxu1  ;;  %v1262_v5 = vadd.f32 %v3962_v8, %v1237_v61 }
 0x438   : > { %v1248_v12 = vadd.f32 %v1168_v3, %v1050_v1 }
 0x439   : > { %v2491_v9 = vmul.f32 -1.442695, %v1241_v62  ;;  %v4273_v62 = vld [vmem:[%s3959_s17] ss:$0 sm:$0xff]  ;;  %s1524_s17 = scalar_lea.vmem %s3952_s10, %s2527_s6 [#allocation2] }
 0x43a   : > { %v2492_v15 = vmul.f32 -1.442695, %v1248_v12 }
 0x43b   : > { %3472 = vpow2.f32 %v2491_v9  ;;  %v1289_v9 = vld [vmem:[%s1286_s23 + $0x10] sm:$0xff] }
 0x43c   : > { %3474 = vpow2.f32 %v2492_v15 }
 0x445   : > { %v3473_v39 = vpop.eup %3472 }
 0x446   : > { %v1245_v40 = vadd.f32 1.0, %v3473_v39  ;;  %v3475_v48 = vpop.eup %3474 }
 0x447   : > { %v1252_v63 = vadd.f32 1.0, %v3475_v48 }
 0x448   : > { %3476 = vrcp.f32 %v1245_v40 }
 0x449   : > { %3478 = vrcp.f32 %v1252_v63 }
 0x452   : > { %v3477_v13 = vpop.eup %3476 }
 0x453   : > { %v1263_v52 = vmul.f32 %v3477_v13, %v1262_v5  ;;  %v3479_v21 = vpop.eup %3478  ;;  %v1514_v13 = vpop.permute.xlu0 %1513 }
 0x454   : > { %v1266_v30 = vsub.f32 1.0, %v3479_v21  ;;  %v1268_v14 = vmul.f32 %v3479_v21, %v4116_v59  ;;  %vm1515_vm13 = vcmp.eq.s32.totalorder %v1514_v13, 1 }
 0x455   : > { %v1264_v17 = vadd.f32 %v1263_v52, %v1051_v44 }
 0x457   : > { %3480 = vtanh.f32 %v1264_v17 }
 0x461   : > { %v3481_v31 = vpop.eup %3480 }
 0x462   : > { %v1267_v11 = vmul.f32 %v3481_v31, %v1266_v30 }
 0x464   : > { %v1269_v23 = vadd.f32 %v1268_v14, %v1267_v11 }
 0x466   : > { %v4231_v34 = vsel %vm1277_vm12, %v1269_v23, %v4116_v59  ;;  %v1279_v8 = vsel %vm1277_vm12, %v1269_v23, 0.0  ;;  %v1287_v59 = vld [vmem:[%s1286_s23] sm:$0xff]  ;;  %s2529_s23 = smul.u32 24, %s4029_s13 }
 0x467   : > { %1282 = vst [vmem:[%s1281_s14] sm:$0xff] %v1279_v8  ;;  %1403 = vmatmul.mubr.f32.vlgmr.msra.gmra.mrb[8].mxu0 %v4231_v34  ;;  %2839 = vmatmul.mubr.f32.vlgmr.msra.gmra.mrb[8].mxu1 %v4231_v34  ;;  %v1527_v8 = vld [vmem:[%s1524_s17 + $0x10] sm:$0xff]  ;;  %s1762_s14 = scalar_lea.vmem %s3952_s10, %s2528_s11 [#allocation2] }
 0x468   : > { %3229 = vmatpush1.bf16.msra.mxu0 %v4130_v7  ;;  %3260 = vmatpush3.bf16.msra.mxu1 %v4134_v10  ;;  %s2000_s25 = scalar_lea.vmem %s3952_s10, %s2529_s23 [#allocation2]  ;;  %s2471_s10 = sshll.u32 %s3767_s30, 3 }
 0x469   : > { %3231 = vmatprep.subr.bf16.mxu0 %v4140_v16  ;;  %3261 = vmatprep.subr.bf16.mxu1 %v3586_v24  ;;  %s321_s6 = scalar_lea.vmem [#allocation4], %s2471_s10 }
 0x46a   : > { %1640 = vmatprep.mubr.f32.mxu0 %v3587_v25  ;;  %2873 = vmatprep.mubr.msk.f32.mxu1 %vm3588_vm0, %v3587_v25 }
 0x46c   : > { %3233 = vmatpush1.bf16.msra.mxu0 %v4146_v54  ;;  %3263 = vmatpush3.bf16.msra.mxu1 %v4150_v2 }
 0x46d   : > { %3235 = vmatprep.subr.bf16.mxu0 %v4156_v36  ;;  %3264 = vmatprep.subr.bf16.mxu1 %v3586_v24 }
 0x470   : > { %3237 = vmatpush1.bf16.msra.mxu0 %v4162_v19  ;;  %3266 = vmatpush3.bf16.msra.mxu1 %v4166_v29 }
 0x471   : > { %3239 = vmatprep.subr.bf16.mxu0 %v4172_v32  ;;  %3267 = vmatprep.subr.bf16.mxu1 %v3586_v24 }
 0x474   : > { %3241 = vmatpush1.bf16.msra.mxu0 %v4178_v20  ;;  %3269 = vmatpush3.bf16.msra.mxu1 %v4182_v33 }
 0x475   : > { %3243 = vmatprep.subr.bf16.mxu0 %v4188_v38  ;;  %3270 = vmatprep.subr.bf16.mxu1 %v3586_v24 }
 0x478   : > { %3245 = vmatpush1.bf16.msra.mxu0 %v4076_v46  ;;  %3272 = vmatpush3.bf16.msra.mxu1 %v4193_v43 }
 0x479   : > { %3247 = vmatprep.subr.bf16.mxu0 %v4081_v57  ;;  %3273 = vmatprep.subr.bf16.mxu1 %v3586_v24 }
 0x47c   : > { %3249 = vmatpush1.bf16.msra.mxu0 %v4085_v4  ;;  %3275 = vmatpush3.bf16.msra.mxu1 %v4201_v50 }
 0x47d   : > { %3251 = vmatprep.subr.bf16.mxu0 %v4091_v22  ;;  %3276 = vmatprep.subr.bf16.mxu1 %v3586_v24 }
 0x480   : > { %3253 = vmatpush1.bf16.msra.mxu0 %v4095_v49  ;;  %3278 = vmatpush3.bf16.msra.mxu1 %v4209_v55 }
 0x481   : > { %3255 = vmatprep.subr.bf16.mxu0 %v4101_v18  ;;  %3279 = vmatprep.subr.bf16.mxu1 %v3586_v24 }
 0x484   : > { %3257 = vmatpush1.bf16.msra.mxu0 %v4105_v28  ;;  %3281 = vmatpush3.bf16.msra.mxu1 %v4217_v27 }
 0x485   : > { %3283 = vmatprep.subr.bf16.mxu0 %v4125_v0  ;;  %3314 = vmatprep.subr.bf16.mxu1 %v3586_v24 }
 0x53a   : > { %v1404_v37 = vpop.f32.mrb[8].mxu0  ;;  %v1475_v41 = vpop.f32.mrb[8].mxu1 }
 0x53b   : > { %v1479_v42 = vadd.f32 %v1404_v37, %v1287_v59  ;;  %v1406_v47 = vpop.f32.mrb[9].mxu0  ;;  %v2840_v51 = vpop.f32.mrb[9].mxu1  ;;  %v1500_v3 = vadd.f32 %v4273_v62, %v1475_v41 }
 0x53c   : > { %v1486_v26 = vadd.f32 %v1406_v47, %v1288_v45 }
 0x53d   : > { %v2496_v53 = vmul.f32 -1.442695, %v1479_v42 }
 0x53e   : > { %v2497_v56 = vmul.f32 -1.442695, %v1486_v26 }
 0x53f   : > { %3482 = vpow2.f32 %v2496_v53  ;;  %v1752_v53 = vpop.permute.xlu1 %1751 }
 0x540   : > { %3484 = vpow2.f32 %v2497_v56  ;;  %vm1753_vm14 = vcmp.eq.s32.totalorder %v1752_v53, 1 }
 0x549   : > { %v3483_v58 = vpop.eup %3482 }
 0x54a   : > { %v1483_v60 = vadd.f32 1.0, %v3483_v58  ;;  %v3485_v61 = vpop.eup %3484 }
 0x54b   : > { %v1490_v1 = vadd.f32 1.0, %v3485_v61  ;;  %v2049_v61 = vld [vmem:[%s3763_s26 + $0x168] sm:$0xff] }
 0x54c   : > { %3486 = vrcp.f32 %v1483_v60  ;;  %v2046_v60 = vld [vmem:[%s3763_s26 + $0x150] sm:$0xff] }
 0x54d   : > { %3488 = vrcp.f32 %v1490_v1  ;;  %v3368_v1 = vpack.c.bf16 %v2049_v61, %v2046_v60 }
 0x556   : > { %v3487_v6 = vpop.eup %3486 }
 0x557   : > { %v1501_v12 = vmul.f32 %v3487_v6, %v1500_v3  ;;  %v3489_v39 = vpop.eup %3488  ;;  %v1763_v3 = vld [vmem:[%s1762_s14] sm:$0xff] }
 0x558   : > { %v1504_v40 = vsub.f32 1.0, %v3489_v39  ;;  %v1506_v5 = vmul.f32 %v3489_v39, %v4231_v34 }
 0x559   : > { %v1502_v15 = vadd.f32 %v1501_v12, %v1289_v9 }
 0x55b   : > { %3490 = vtanh.f32 %v1502_v15  ;;  %v1764_v15 = vld [vmem:[%s1762_s14 + $0x8] sm:$0xff] }
 0x565   : > { %v3491_v48 = vpop.eup %3490 }
 0x566   : > { %v1505_v63 = vmul.f32 %v3491_v48, %v1504_v40 }
 0x568   : > { %v1507_v44 = vadd.f32 %v1506_v5, %v1505_v63 }
 0x56a   : > { %v4280_v52 = vsel %vm1515_vm13, %v1507_v44, %v4231_v34  ;;  %v1517_v17 = vsel %vm1515_vm13, %v1507_v44, 0.0 }
 0x56b   : > { %1520 = vst [vmem:[%s1519_s12] sm:$0xff] %v1517_v17  ;;  %1641 = vmatmul.mubr.f32.vlgmr.msra.gmra.mrb[10].mxu0 %v4280_v52  ;;  %2874 = vmatmul.mubr.f32.vlgmr.msra.gmra.mrb[10].mxu1 %v4280_v52 }
 0x56c   : > { %3285 = vmatpush1.bf16.msra.mxu0 %v4130_v7  ;;  %3316 = vmatpush3.bf16.msra.mxu1 %v4134_v10 }
 0x56d   : > { %3287 = vmatprep.subr.bf16.mxu0 %v4140_v16  ;;  %3317 = vmatprep.subr.bf16.mxu1 %v3586_v24 }
 0x56e   : > { %1878 = vmatprep.mubr.f32.mxu0 %v3587_v25  ;;  %2908 = vmatprep.mubr.msk.f32.mxu1 %vm3588_vm0, %v3587_v25 }
 0x570   : > { %3289 = vmatpush1.bf16.msra.mxu0 %v4146_v54  ;;  %3319 = vmatpush3.bf16.msra.mxu1 %v4150_v2 }
 0x571   : > { %3291 = vmatprep.subr.bf16.mxu0 %v4156_v36  ;;  %3320 = vmatprep.subr.bf16.mxu1 %v3586_v24 }
 0x574   : > { %3293 = vmatpush1.bf16.msra.mxu0 %v4162_v19  ;;  %3322 = vmatpush3.bf16.msra.mxu1 %v4166_v29 }
 0x575   : > { %3295 = vmatprep.subr.bf16.mxu0 %v4172_v32  ;;  %3323 = vmatprep.subr.bf16.mxu1 %v3586_v24 }
 0x578   : > { %3297 = vmatpush1.bf16.msra.mxu0 %v4178_v20  ;;  %3325 = vmatpush3.bf16.msra.mxu1 %v4182_v33 }
 0x579   : > { %3299 = vmatprep.subr.bf16.mxu0 %v4188_v38  ;;  %3326 = vmatprep.subr.bf16.mxu1 %v3586_v24 }
 0x57c   : > { %3301 = vmatpush1.bf16.msra.mxu0 %v4076_v46  ;;  %3328 = vmatpush3.bf16.msra.mxu1 %v4193_v43  ;;  %v1525_v46 = vld [vmem:[%s1524_s17] sm:$0xff] }
 0x57d   : > { %3303 = vmatprep.subr.bf16.mxu0 %v4081_v57  ;;  %3329 = vmatprep.subr.bf16.mxu1 %v3586_v24 }
 0x580   : > { %3305 = vmatpush1.bf16.msra.mxu0 %v4085_v4  ;;  %3331 = vmatpush3.bf16.msra.mxu1 %v4201_v50 }
 0x581   : > { %3307 = vmatprep.subr.bf16.mxu0 %v4091_v22  ;;  %3332 = vmatprep.subr.bf16.mxu1 %v3586_v24 }
 0x584   : > { %3309 = vmatpush1.bf16.msra.mxu0 %v4095_v49  ;;  %3334 = vmatpush3.bf16.msra.mxu1 %v4209_v55  ;;  %v1526_v49 = vld [vmem:[%s1524_s17 + $0x8] sm:$0xff]  ;;  %s2241_s17 = scalar_lea.sflag [#allocation5], %s3767_s30 }
 0x585   : > { %3311 = vmatprep.subr.bf16.mxu0 %v4101_v18  ;;  %3335 = vmatprep.subr.bf16.mxu1 %v3586_v24 }
 0x588   : > { %3313 = vmatpush1.bf16.msra.mxu0 %v4105_v28  ;;  %3337 = vmatpush3.bf16.msra.mxu1 %v4217_v27 }
 0x589   : > { %3339 = vmatprep.subr.bf16.mxu0 %v4125_v0  ;;  %3370 = vmatprep.subr.bf16.mxu1 %v3586_v24 }
 0x63e   : > { %v1642_v57 = vpop.f32.mrb[10].mxu0  ;;  %v1713_v4 = vpop.f32.mrb[10].mxu1 }
 0x63f   : > { %v1717_v22 = vadd.f32 %v1642_v57, %v1525_v46  ;;  %v1644_v21 = vpop.f32.mrb[11].mxu0  ;;  %v2875_v30 = vpop.f32.mrb[11].mxu1  ;;  %v1738_v23 = vadd.f32 %v4273_v62, %v1713_v4  ;;  %v1765_v4 = vld [vmem:[%s1762_s14 + $0x10] sm:$0xff] }
 0x640   : > { %v1724_v31 = vadd.f32 %v1644_v21, %v1526_v49 }
 0x641   : > { %v2501_v18 = vmul.f32 -1.442695, %v1717_v22 }
 0x642   : > { %v2502_v11 = vmul.f32 -1.442695, %v1724_v31  ;;  %v1990_v31 = vpop.permute.xlu0 %1989 }
 0x643   : > { %3492 = vpow2.f32 %v2501_v18  ;;  %vm1991_vm15 = vcmp.eq.s32.totalorder %v1990_v31, 1 }
 0x644   : > { %3494 = vpow2.f32 %v2502_v11 }
 0x64d   : > { %v3493_v28 = vpop.eup %3492 }
 0x64e   : > { %v1721_v14 = vadd.f32 1.0, %v3493_v28  ;;  %v3495_v0 = vpop.eup %3494 }
 0x64f   : > { %v1728_v35 = vadd.f32 1.0, %v3495_v0 }
 0x650   : > { %3496 = vrcp.f32 %v1721_v14 }
 0x651   : > { %3498 = vrcp.f32 %v1728_v35 }
 0x65a   : > { %v3497_v34 = vpop.eup %3496 }
 0x65b   : > { %v1739_v59 = vmul.f32 %v3497_v34, %v1738_v23  ;;  %v3499_v41 = vpop.eup %3498  ;;  %v2001_v23 = vld [vmem:[%s2000_s25] sm:$0xff] }
 0x65c   : > { %v1742_v42 = vsub.f32 1.0, %v3499_v41  ;;  %v1744_v51 = vmul.f32 %v3499_v41, %v4280_v52 }
 0x65d   : > { %v1740_v37 = vadd.f32 %v1739_v59, %v1527_v8 }
 0x65f   : > { %3500 = vtanh.f32 %v1740_v37  ;;  %v2002_v37 = vld [vmem:[%s2000_s25 + $0x8] sm:$0xff] }
 0x669   : > { %v3501_v45 = vpop.eup %3500 }
 0x66a   : > { %v1743_v47 = vmul.f32 %v3501_v45, %v1742_v42 }
 0x66c   : > { %v1745_v26 = vadd.f32 %v1744_v51, %v1743_v47 }
 0x66e   : > { %v4326_v56 = vsel %vm1753_vm14, %v1745_v26, %v4280_v52  ;;  %v1755_v58 = vsel %vm1753_vm14, %v1745_v26, 0.0 }
 0x66f   : > { %1758 = vst [vmem:[%s1757_s16] sm:$0xff] %v1755_v58  ;;  %1879 = vmatmul.mubr.f32.vlgmr.msra.gmra.mrb[12].mxu0 %v4326_v56  ;;  %2909 = vmatmul.mubr.f32.vlgmr.msra.gmra.mrb[12].mxu1 %v4326_v56 }
 0x670   : > { %3341 = vmatpush1.bf16.msra.mxu0 %v4130_v7  ;;  %3372 = vmatpush3.bf16.msra.mxu1 %v4134_v10  ;;  %v2031_v7 = vld [vmem:[%s3763_s26 + $0xd8] sm:$0xff] }
 0x671   : > { %3343 = vmatprep.subr.bf16.mxu0 %v4140_v16  ;;  %3373 = vmatprep.subr.bf16.mxu1 %v3586_v24  ;;  %v2035_v16 = vld [vmem:[%s3763_s26 + $0xf8] sm:$0xff] }
 0x672   : > { %2116 = vmatprep.mubr.f32.mxu0 %v3587_v25  ;;  %2943 = vmatprep.mubr.msk.f32.mxu1 %vm3588_vm0, %v3587_v25  ;;  %v2028_v25 = vld [vmem:[%s3763_s26 + $0xc0] sm:$0xff] }
 0x673   : > { %v3356_v10 = vpack.c.bf16 %v2031_v7, %v2028_v25 }
 0x674   : > { %3345 = vmatpush1.bf16.msra.mxu0 %v4146_v54  ;;  %3375 = vmatpush3.bf16.msra.mxu1 %v4150_v2  ;;  %v2038_v54 = vld [vmem:[%s3763_s26 + $0x110] sm:$0xff] }
 0x675   : > { %3347 = vmatprep.subr.bf16.mxu0 %v4156_v36  ;;  %3376 = vmatprep.subr.bf16.mxu1 %v3586_v24  ;;  %v2034_v2 = vld [vmem:[%s3763_s26 + $0xf0] sm:$0xff]  ;;  %v3358_v36 = vpack.c.bf16 %v2038_v54, %v2035_v16 }
 0x678   : > { %3349 = vmatpush1.bf16.msra.mxu0 %v4162_v19  ;;  %3378 = vmatpush3.bf16.msra.mxu1 %v4166_v29  ;;  %v2037_v19 = vld [vmem:[%s3763_s26 + $0x108] sm:$0xff] }
 0x679   : > { %3351 = vmatprep.subr.bf16.mxu0 %v4172_v32  ;;  %3379 = vmatprep.subr.bf16.mxu1 %v3586_v24  ;;  %v2041_v29 = vld [vmem:[%s3763_s26 + $0x128] sm:$0xff]  ;;  %v2044_v32 = vld [vmem:[%s3763_s26 + $0x140] sm:$0xff] }
 0x67c   : > { %3353 = vmatpush1.bf16.msra.mxu0 %v4178_v20  ;;  %3381 = vmatpush3.bf16.msra.mxu1 %v4182_v33  ;;  %v3360_v20 = vpack.c.bf16 %v2037_v19, %v2034_v2  ;;  %v2040_v33 = vld [vmem:[%s3763_s26 + $0x120] sm:$0xff] }
 0x67d   : > { %3355 = vmatprep.subr.bf16.mxu0 %v4188_v38  ;;  %3382 = vmatprep.subr.bf16.mxu1 %v3586_v24  ;;  %v2043_v38 = vld [vmem:[%s3763_s26 + $0x138] sm:$0xff] }
 0x680   : > { %3384 = vmatpush3.bf16.msra.mxu1 %v4193_v43  ;;  %3357 = vmatpush1.bf16.msra.mxu0 %v3356_v10  ;;  %v2047_v43 = vld [vmem:[%s3763_s26 + $0x158] sm:$0xff]  ;;  %v2003_v10 = vld [vmem:[%s2000_s25 + $0x10] sm:$0xff] }
 0x681   : > { %3385 = vmatprep.subr.bf16.mxu1 %v3586_v24  ;;  %3359 = vmatprep.subr.bf16.mxu0 %v3358_v36 }
 0x684   : > { %3387 = vmatpush3.bf16.msra.mxu1 %v4201_v50  ;;  %v2050_v50 = vld [vmem:[%s3763_s26 + $0x170] sm:$0xff]  ;;  %3361 = vmatpush1.bf16.msra.mxu0 %v3360_v20  ;;  %s2509_s26 = sshll.u32 %s3799_s7, 3  ;;  %s2514_s7 = sshll.u32 %s4029_s13, 3 }
 0x685   : > { %3388 = vmatprep.subr.bf16.mxu1 %v3586_v24  ;;  %s1995_s9 = scalar_lea.vmem %s3967_s15, %s2509_s26 [#allocation3]  ;;  %s2233_s12 = scalar_lea.vmem %s3967_s15, %s2514_s7 [#allocation3] }
 0x686   : > { %s2517_s13 = sshll.u32 (%p3662_p6), %s3642_s22, 3 }
 0x687   : > { %s2249_s11 = scalar_lea.vmem (%p3662_p6), %s4438_s4, %s2517_s13 }
 0x688   : > { %3390 = vmatpush3.bf16.msra.mxu1 %v4209_v55  ;;  %v3364_v55 = vpack.c.bf16 %v2043_v38, %v2040_v33 }
 0x689   : > { %3391 = vmatprep.subr.bf16.mxu1 %v3586_v24  ;;  %v3362_v24 = vpack.c.bf16 %v2044_v32, %v2041_v29  ;;  %v2228_v29 = vpop.permute.xlu1 %2227 }
 0x68a   : > { %vm2229_vm0 = vcmp.eq.s32.totalorder %v2228_v29, 1 }
 0x68b   : > { %3363 = vmatprep.subr.bf16.mxu0 %v3362_v24 }
 0x68c   : > { %3393 = vmatpush3.bf16.msra.mxu1 %v4217_v27  ;;  %v3366_v27 = vpack.c.bf16 %v2050_v50, %v2047_v43  ;;  %3365 = vmatpush1.bf16.msra.mxu0 %v3364_v55 }
 0x68e   : > { %3367 = vmatprep.subr.bf16.mxu0 %v3366_v27 }
 0x690   : > { %3369 = vmatpush1.bf16.msra.mxu0 %v3368_v1 }
 0x742   : > { %v1880_v6 = vpop.f32.mrb[12].mxu0  ;;  %v1951_v9 = vpop.f32.mrb[12].mxu1 }
 0x743   : > { %v1955_v12 = vadd.f32 %v1880_v6, %v1763_v3  ;;  %v1882_v39 = vpop.f32.mrb[13].mxu0  ;;  %v2910_v40 = vpop.f32.mrb[13].mxu1  ;;  %v1976_v46 = vadd.f32 %v4273_v62, %v1951_v9 }
 0x744   : > { %v1962_v63 = vadd.f32 %v1882_v39, %v1764_v15 }
 0x745   : > { %v2506_v48 = vmul.f32 -1.442695, %v1955_v12 }
 0x746   : > { %v2507_v5 = vmul.f32 -1.442695, %v1962_v63 }
 0x747   : > { %3502 = vpow2.f32 %v2506_v48 }
 0x748   : > { %3504 = vpow2.f32 %v2507_v5 }
 0x751   : > { %v3503_v13 = vpop.eup %3502 }
 0x752   : > { %v1959_v44 = vadd.f32 1.0, %v3503_v13  ;;  %v3505_v52 = vpop.eup %3504 }
 0x753   : > { %v1966_v17 = vadd.f32 1.0, %v3505_v52 }
 0x754   : > { %3506 = vrcp.f32 %v1959_v44 }
 0x755   : > { %3508 = vrcp.f32 %v1966_v17 }
 0x75e   : > { %v3507_v57 = vpop.eup %3506 }
 0x75f   : > { %v1977_v22 = vmul.f32 %v3507_v57, %v1976_v46  ;;  %v3509_v21 = vpop.eup %3508 }
 0x760   : > { %v1980_v30 = vsub.f32 1.0, %v3509_v21  ;;  %v1982_v28 = vmul.f32 %v3509_v21, %v4326_v56 }
 0x761   : > { %v1978_v49 = vadd.f32 %v1977_v22, %v1765_v4 }
 0x763   : > { %3510 = vtanh.f32 %v1978_v49 }
 0x76d   : > { %v3511_v18 = vpop.eup %3510 }
 0x76e   : > { %v1981_v11 = vmul.f32 %v3511_v18, %v1980_v30 }
 0x770   : > { %v1983_v14 = vadd.f32 %v1982_v28, %v1981_v11 }
 0x772   : > { %v1992_v0 = vsel %vm1991_vm15, %v1983_v14, %v4326_v56  ;;  %v1993_v35 = vsel %vm1991_vm15, %v1983_v14, 0.0 }
 0x773   : > { %1996 = vst [vmem:[%s1995_s9] sm:$0xff] %v1993_v35  ;;  %2117 = vmatmul.mubr.f32.vlgmr.msra.gmra.mrb[14].mxu0 %v1992_v0  ;;  %2944 = vmatmul.mubr.f32.vlgmr.msra.gmra.mrb[14].mxu1 %v1992_v0 }
 0x846   : > { %v2118_v34 = vpop.f32.mrb[14].mxu0  ;;  %v2189_v8 = vpop.f32.mrb[14].mxu1 }
 0x847   : > { %v2193_v59 = vadd.f32 %v2118_v34, %v2001_v23  ;;  %v2120_v41 = vpop.f32.mrb[15].mxu0  ;;  %v2945_v42 = vpop.f32.mrb[15].mxu1  ;;  %v2214_v25 = vadd.f32 %v4273_v62, %v2189_v8 }
 0x848   : > { %v2200_v47 = vadd.f32 %v2120_v41, %v2002_v37 }
 0x849   : > { %v2511_v45 = vmul.f32 -1.442695, %v2193_v59 }
 0x84a   : > { %v2512_v51 = vmul.f32 -1.442695, %v2200_v47 }
 0x84b   : > { %3512 = vpow2.f32 %v2511_v45 }
 0x84c   : > { %3514 = vpow2.f32 %v2512_v51 }
 0x855   : > { %v3513_v53 = vpop.eup %3512 }
 0x856   : > { %v2197_v26 = vadd.f32 1.0, %v3513_v53  ;;  %v3515_v56 = vpop.eup %3514 }
 0x857   : > { %v2204_v58 = vadd.f32 1.0, %v3515_v56 }
 0x858   : > { %3516 = vrcp.f32 %v2197_v26 }
 0x859   : > { %3518 = vrcp.f32 %v2204_v58 }
 0x862   : > { %v3517_v7 = vpop.eup %3516 }
 0x863   : > { %v2215_v16 = vmul.f32 %v3517_v7, %v2214_v25  ;;  %v3519_v2 = vpop.eup %3518 }
 0x864   : > { %v2218_v36 = vsub.f32 1.0, %v3519_v2  ;;  %v2220_v20 = vmul.f32 %v3519_v2, %v1992_v0 }
 0x865   : > { %v2216_v54 = vadd.f32 %v2215_v16, %v2003_v10 }
 0x867   : > { %3520 = vtanh.f32 %v2216_v54 }
 0x871   : > { %v3521_v19 = vpop.eup %3520  ;;  %2247 = sbr.rel (!%p3662_p6) target bundleno = 2180 (0x884), region = 63 }
 0x872   : > { %v2219_v32 = vmul.f32 %v3521_v19, %v2218_v36 }
 0x874   : > { %v2221_v24 = vadd.f32 %v2220_v20, %v2219_v32 }
 0x876   : > { %v2230_v33 = vsel %vm2229_vm0, %v2221_v24, %v1992_v0  ;;  %v2231_v62 = vsel %vm2229_vm0, %v2221_v24, 0.0 }
 0x877   : > { %2234 = vst [vmem:[%s2233_s12] sm:$0xff] %v2231_v62  ;;  %2235 = vst [vmem:[%s321_s6] sm:$0xff] %v2230_v33 }
 0x87e   : > { %v2291_v38 = vld [vmem:[%s3967_s15] sm:$0xff]  ;;  %v2293_v43 = vld [vmem:[%s3967_s15 + $0x8] sm:$0xff]  ;;  %v2295_v50 = vld [vmem:[%s3967_s15 + $0x10] sm:$0xff] }
 0x87f   : > { %v2297_v55 = vld [vmem:[%s3967_s15 + $0x18] sm:$0xff]  ;;  %v2299_v27 = vld [vmem:[%s3967_s15 + $0x20] sm:$0xff]  ;;  %v2301_v60 = vld [vmem:[%s3967_s15 + $0x28] sm:$0xff]  ;;  %2292 = vst [vmem:[%s2249_s11] sm:$0xff] %v2291_v38 }
 0x880   : > { %2294 = vst [vmem:[%s2249_s11 + $0x10] sm:$0xff] %v2293_v43  ;;  %2296 = vst [vmem:[%s2249_s11 + $0x20] sm:$0xff] %v2295_v50  ;;  %v2303_v61 = vld [vmem:[%s3967_s15 + $0x30] sm:$0xff]  ;;  %v2305_v1 = vld [vmem:[%s3967_s15 + $0x38] sm:$0xff] }
 0x881   : > { %2298 = vst [vmem:[%s2249_s11 + $0x30] sm:$0xff] %v2297_v55  ;;  %2300 = vst [vmem:[%s2249_s11 + $0x40] sm:$0xff] %v2299_v27 }
 0x882   : > { %2302 = vst [vmem:[%s2249_s11 + $0x50] sm:$0xff] %v2301_v60  ;;  %2304 = vst [vmem:[%s2249_s11 + $0x60] sm:$0xff] %v2303_v61 }
 0x883   : > { %2306 = vst [vmem:[%s2249_s11 + $0x70] sm:$0xff] %v2305_v1 }
 0x884 PF: > { %s2518_s14 = sshll.u32 %s3642_s22, 7  ;;  %s2319_s26 = sshll.u32 %s321_s6, 4  ;;  %s2320_s26 = int_to_ptr.vmem [resolvable:$true] %s2319_s26 }
 0x885   : > { %s2317_s25 = scalar_lea.hbm %s4439_s5, %s2518_s14  ;;  %s3522_s7 = scalar_lea.vmem %s2320_s26, 128 }
 0x886   : > { %p3523_p0 = scmp.ne.s32.totalorder %s2320_s26, %s3522_s7  ;;  %s3590_s10 = smov [#allocation4]  }
 0x887   : > { %s3526_s12 = sshll.u32 %s3590_s10, 4  ;;  %s3527_s12 = int_to_ptr.vmem [resolvable:$false] %s3526_s12 }
 0x888   : > { %p3524_p1 = pnand %p3523_p0, %p3662_p6  ;;  %s3528_s15 = scalar_lea.vmem %s3527_s12, 256 }
 0x889   : > { %p3529_p3 = scmp.lt.s32.totalorder %s2320_s26, %s3527_s12  ;;  %p3530_p4 = scmp.lt.s32.totalorder %s3528_s15, %s3522_s7 }
 0x88a   : > { %p3525_p2 = pneg %p3524_p1 }
 0x88b   : > { %p3531_p5 = por %p3530_p4, %p3529_p3 }
 0x88d   : > { %p3532_p7 = pnand %p3531_p5, %p3525_p2 }
 0x88f   : > { %3535 = shalt.err (!%p3532_p7)
}
 0x890   : > { %s3536_s22 = scalar_lea.hbm %s2317_s25, 128  ;;  %s3540_s8 = scalar_lea.hbm %s4439_s5, 256 }
 0x891   : > { %p3537_p10 = scmp.ne.s32.totalorder %s2317_s25, %s3536_s22  ;;  %p3541_p13 = scmp.lt.u32.totalorder %s2317_s25, %s4439_s5 }
 0x892   : > { %p3542_p0 = scmp.lt.u32.totalorder %s3540_s8, %s3536_s22  ;;  %p3544_p9 = scmp.lt.u32.totalorder %s3536_s22, %s2317_s25 }
 0x893   : > { %p3538_p11 = pnand %p3537_p10, %p3662_p6 }
 0x894   : > { %p3543_p1 = por %p3542_p0, %p3541_p13 }
 0x895   : > { %p3539_p12 = pneg %p3538_p11 }
 0x896   : > { %p3545_p3 = por %p3544_p9, %p3543_p1 }
 0x898   : > { %p3546_p2 = pnand %p3545_p3, %p3539_p12 }
 0x89a   : > { %3549 = shalt.err (!%p3546_p2)
}
 0x89b   : > { %3397 = dma.vmem_to_hbm [thread:$0]  (%p3662_p6), %s2320_s26, 128, %s2317_s25, %s2241_s17  }
 0x89c PF: > { %s2338_s14 = sand.u32 1, %s3572_s18   ;;  %p4443_p4 = scmp.ge.s32.totalorder %s3584_s21, 2 }
 0x89d   : > { %s2339_s9 = scalar_lea.sflag [#allocation5], %s2338_s14 }
 0x89e   : > { %p3400_p5 = pnand %p4443_p4, %p3666_p8 }
 0x8a0   : > { %3567 = dma.done.wait (!%p3400_p5), %s2339_s9, 128  }
 0x8a1   : > { %3569 = vsyncadd (!%p3400_p5), %s2339_s9, 4294967168  ;;  %p16_p9 = scmp.ge.s32.totalorder %s3646_s24, 4   ;;  %s4444_s18 = smov %s3576_s19 }
 0x8a2   : > { %s4445_s19 = smov %s3580_s20  ;;  %s4446_s20 = smov %s3658_s27 }
 0x8a3   : > { %s4447_s21 = smov %s3646_s24  ;;  %18 = sbr.rel (!%p16_p9) target bundleno = 3 (0x3), region = 171 }
 0x8aa   :  { %2344 = vsyncpa [#allocation5], 1 }
 0x8ab   :  { %2346 = vsyncpa [#allocation5 + $0x1], 1 }

</bundles_post_ra>
